<compile_context>
chip_gen: v7x
topology: tpu7x:2x2x1
jax: 0.10.0
libtpu: 0.0.40
codegen_flags: <defaults>
</compile_context>

<pallas_src>
import functools

import jax
import jax.numpy as jnp
from jax import lax
from jax.experimental import pallas as pl
from jax.experimental.pallas import tpu as pltpu


_EPS = 1e-3  # matches nn.BatchNorm2d(eps=0.001)


# --------------------------------------------------------------------------- #
# helpers
# --------------------------------------------------------------------------- #

def _vmem_limit(byte_estimate):
    # ~4x slack over the raw tile estimate, capped at 40 MiB so it stays safe
    # on v7x's 64 MiB physical VMEM (a no-op at the toy harness sizes).
    return int(min(max(4 * byte_estimate, 8 << 20), 40 << 20))


def _pick_tile_h(H, W, N, row_target=512, min_steps=4):
    """Largest divisor of H whose row tile (tile_h*W) stays near `row_target`
    rows, shrunk until the grid has at least `min_steps` steps (keeps both v7x
    TensorCores busy and the input/output DMA double-buffered)."""
    divisors = [d for d in range(1, H + 1) if H % d == 0]
    fit = [d for d in divisors if d * W <= row_target]
    th = max(fit) if fit else 1
    while N * (H // th) < min_steps:
        smaller = [d for d in divisors if d < th]
        if not smaller:
            break
        th = max(smaller)
    return th


def _fold_bn(p):
    """Fold the eval-mode BatchNorm scale into the conv weights (host side)."""
    w = p['w'] * p['scale']          # (taps, Cin, Cout) * (Cout,)
    return w, p['bias']


def _taps_dot(load_tap, w_ref, ntaps):
    """sum_t load_tap(t) @ w_ref[t] with f32 accumulation on the MXU."""
    acc = None
    for t in range(ntaps):
        part = jnp.dot(load_tap(t), w_ref[t], preferred_element_type=jnp.float32)
        acc = part if acc is None else acc + part
    return acc


# --------------------------------------------------------------------------- #
# Pallas kernels
# --------------------------------------------------------------------------- #

def _fused_1x1_kernel(x_ref, w_ref, b_ref, o_ref, *, th, W, cin, ctot):
    """One (1, th, W, Cin) row tile of relu(x @ W + b); W holds the three
    concatenated 1x1 branches (BN scale pre-folded, bias in the epilogue)."""
    rows = th * W
    x = x_ref[...].reshape(rows, cin)
    acc = jnp.dot(x, w_ref[...], preferred_element_type=jnp.float32)
    y = jnp.maximum(acc + b_ref[...], 0.0)
    o_ref[...] = y.reshape(1, th, W, ctot).astype(o_ref.dtype)


def _pair_w_then_h_kernel(x_ref, w1_ref, b1_ref, w2_ref, b2_ref, o_ref, t_ref,
                          *, H, W, cin, cmid, cout, cdt):
    """(1x3 conv + BN + ReLU) -> (3x1 conv + BN + ReLU) for one image; the
    intermediate only ever exists in the VMEM scratch t_ref."""
    rows = H * W
    # conv 1x3 along W (input block is the image padded by 1 along W).
    acc1 = _taps_dot(lambda t: x_ref[0, :, t:t + W, :].reshape(rows, cin),
                     w1_ref, 3)
    y1 = jnp.maximum(acc1 + b1_ref[...], 0.0)                     # (rows, cmid) f32

    # zero-padded-along-H intermediate in VMEM (conv2's padding is on the
    # post-ReLU intermediate, so the halo rows must be explicit zeros).
    t_ref[...] = jnp.zeros(t_ref.shape, t_ref.dtype)
    t_ref[1:H + 1, :, :] = y1.reshape(H, W, cmid)

    # conv 3x1 along H on the VMEM intermediate.
    acc2 = _taps_dot(lambda t: t_ref[t:t + H, :, :].reshape(rows, cmid).astype(cdt),
                     w2_ref, 3)
    y2 = jnp.maximum(acc2 + b2_ref[...], 0.0)
    o_ref[...] = y2.reshape(1, H, W, cout).astype(o_ref.dtype)


def _pair_h_then_w_kernel(x_ref, w1_ref, b1_ref, w2_ref, b2_ref, o_ref, t_ref,
                          *, H, W, cin, cmid, cout, cdt):
    """(3x1 conv + BN + ReLU) -> (1x3 conv + BN + ReLU) for one image."""
    rows = H * W
    # conv 3x1 along H (input block is the image padded by 1 along H).
    acc1 = _taps_dot(lambda t: x_ref[0, t:t + H, :, :].reshape(rows, cin),
                     w1_ref, 3)
    y1 = jnp.maximum(acc1 + b1_ref[...], 0.0)

    # zero-padded-along-W intermediate in VMEM.
    t_ref[...] = jnp.zeros(t_ref.shape, t_ref.dtype)
    t_ref[:, 1:W + 1, :] = y1.reshape(H, W, cmid)

    # conv 1x3 along W on the VMEM intermediate.
    acc2 = _taps_dot(lambda t: t_ref[:, t:t + W, :].reshape(rows, cmid).astype(cdt),
                     w2_ref, 3)
    y2 = jnp.maximum(acc2 + b2_ref[...], 0.0)
    o_ref[...] = y2.reshape(1, H, W, cout).astype(o_ref.dtype)


def _avgpool3_conv1x1_kernel(x_ref, w_ref, b_ref, o_ref, *, H, W, cin, cout, cdt):
    """avg_pool2d(3, stride 1, pad 1, count_include_pad=True) on the VPU
    (8 adds + 1 mul over the halo block) followed by a single K=Cin MXU matmul
    for the 1x1 conv, with BN bias + ReLU epilogue."""
    s = None
    for dh in range(3):
        for dw in range(3):
            v = x_ref[0, dh:dh + H, dw:dw + W, :].astype(jnp.float32)
            s = v if s is None else s + v
    s = s * (1.0 / 9.0)
    acc = jnp.dot(s.reshape(H * W, cin).astype(cdt), w_ref[...],
                  preferred_element_type=jnp.float32)
    y = jnp.maximum(acc + b_ref[...], 0.0)
    o_ref[...] = y.reshape(1, H, W, cout).astype(o_ref.dtype)


# --------------------------------------------------------------------------- #
# pallas_call wrappers
# --------------------------------------------------------------------------- #

def fused_conv1x1_bn_relu(x, w, b, *, compute_dtype=None, row_target=512):
    """relu(x @ w + b) per pixel; w is (Cin, Ctot) with BN scales pre-folded.
    Ctot is the concatenation of the three 1x1 branches that read x."""
    N, H, W, Cin = x.shape
    Ctot = w.shape[-1]
    cdt = jnp.dtype(compute_dtype) if compute_dtype is not None else x.dtype
    isz = cdt.itemsize
    th = _pick_tile_h(H, W, N, row_target)

    xs = x.astype(cdt)
    wc = w.astype(cdt)
    bc = b.reshape(1, Ctot).astype(jnp.float32)

    vmem = _vmem_limit((2 * th * W * Cin + Cin * Ctot + 2 * th * W * Ctot) * isz
                       + Ctot * 4)
    kernel = functools.partial(_fused_1x1_kernel, th=th, W=W, cin=Cin, ctot=Ctot)
    # TODO(synk): pad Ctot to a multiple of 128 (pad weights) on v5e for fully
    # unmasked output stores, and single-buffer (pl.Buffered(1)) the constant
    # weight/bias blocks to halve their footprint on 64 MiB v7x parts.
    return pl.pallas_call(
        kernel,
        out_shape=jax.ShapeDtypeStruct((N, H, W, Ctot), cdt),
        grid=(N, H // th),
        in_specs=[
            pl.BlockSpec((1, th, W, Cin), lambda n, h: (n, h, 0, 0)),
            pl.BlockSpec((Cin, Ctot), lambda n, h: (0, 0)),   # VMEM-resident
            pl.BlockSpec((1, Ctot), lambda n, h: (0, 0)),     # VMEM-resident
        ],
        out_specs=pl.BlockSpec((1, th, W, Ctot), lambda n, h: (n, h, 0, 0)),
        compiler_params=pltpu.CompilerParams(
            dimension_semantics=("parallel", "parallel"),
            vmem_limit_bytes=vmem),
    )(xs, wc, bc)


def _conv_pair(kernel_fn, x_padded, scratch_shape, out_hw, w1, b1, w2, b2, cdt):
    N = x_padded.shape[0]
    _, Hp, Wp, Cin = x_padded.shape
    Cmid, Cout = w1.shape[-1], w2.shape[-1]
    H, W = out_hw
    isz = cdt.itemsize
    vmem = _vmem_limit((2 * Hp * Wp * Cin + 2 * H * W * Cout
                        + 3 * Cin * Cmid + 3 * Cmid * Cout) * isz
                       + scratch_shape[0] * scratch_shape[1] * Cmid * 4)
    return pl.pallas_call(
        kernel_fn,
        out_shape=jax.ShapeDtypeStruct((N, H, W, Cout), cdt),
        grid=(N,),
        in_specs=[
            pl.BlockSpec((1, Hp, Wp, Cin), lambda n: (n, 0, 0, 0)),
            pl.BlockSpec((3, Cin, Cmid), lambda n: (0, 0, 0)),
            pl.BlockSpec((1, Cmid), lambda n: (0, 0)),
            pl.BlockSpec((3, Cmid, Cout), lambda n: (0, 0, 0)),
            pl.BlockSpec((1, Cout), lambda n: (0, 0)),
        ],
        out_specs=pl.BlockSpec((1, H, W, Cout), lambda n: (n, 0, 0, 0)),
        scratch_shapes=[pltpu.VMEM(scratch_shape + (Cmid,), jnp.float32)],
        compiler_params=pltpu.CompilerParams(
            dimension_semantics=("parallel",), vmem_limit_bytes=vmem),
    )(x_padded, w1.astype(cdt), b1.reshape(1, Cmid).astype(jnp.float32),
      w2.astype(cdt), b2.reshape(1, Cout).astype(jnp.float32))


def conv_pair_w_then_h(x, w1, b1, w2, b2, *, compute_dtype=None):
    """Fused 1x3 -> 3x1 BasicConv2d pair (intermediate stays in VMEM)."""
    N, H, W, Cin = x.shape
    cdt = jnp.dtype(compute_dtype) if compute_dtype is not None else x.dtype
    xp = jnp.pad(x.astype(cdt), ((0, 0), (0, 0), (1, 1), (0, 0)))  # W halo only
    # TODO(synk): halo-tile over H (pl.Element offsets) if images ever outgrow
    # a single VMEM block; at InceptionC sizes the whole image fits easily.
    kernel = functools.partial(_pair_w_then_h_kernel, H=H, W=W,
                               cin=Cin, cmid=w1.shape[-1], cout=w2.shape[-1],
                               cdt=cdt)
    return _conv_pair(kernel, xp, (H + 2, W), (H, W), w1, b1, w2, b2, cdt)


def conv_pair_h_then_w(x, w1, b1, w2, b2, *, compute_dtype=None):
    """Fused 3x1 -> 1x3 BasicConv2d pair (intermediate stays in VMEM)."""
    N, H, W, Cin = x.shape
    cdt = jnp.dtype(compute_dtype) if compute_dtype is not None else x.dtype
    xp = jnp.pad(x.astype(cdt), ((0, 0), (1, 1), (0, 0), (0, 0)))  # H halo only
    kernel = functools.partial(_pair_h_then_w_kernel, H=H, W=W,
                               cin=Cin, cmid=w1.shape[-1], cout=w2.shape[-1],
                               cdt=cdt)
    return _conv_pair(kernel, xp, (H, W + 2), (H, W), w1, b1, w2, b2, cdt)


def avgpool3_conv1x1_bn_relu(x, w, b, *, compute_dtype=None):
    """3x3 average pool (stride 1, pad 1) + 1x1 conv + BN + ReLU, one kernel."""
    N, H, W, Cin = x.shape
    Cout = w.shape[-1]
    cdt = jnp.dtype(compute_dtype) if compute_dtype is not None else x.dtype
    isz = cdt.itemsize
    xp = jnp.pad(x.astype(cdt), ((0, 0), (1, 1), (1, 1), (0, 0)))
    vmem = _vmem_limit((2 * (H + 2) * (W + 2) * Cin + Cin * Cout
                        + 2 * H * W * Cout) * isz + Cout * 4)
    kernel = functools.partial(_avgpool3_conv1x1_kernel, H=H, W=W,
                               cin=Cin, cout=Cout, cdt=cdt)
    return pl.pallas_call(
        kernel,
        out_shape=jax.ShapeDtypeStruct((N, H, W, Cout), cdt),
        grid=(N,),
        in_specs=[
            pl.BlockSpec((1, H + 2, W + 2, Cin), lambda n: (n, 0, 0, 0)),
            pl.BlockSpec((Cin, Cout), lambda n: (0, 0)),
            pl.BlockSpec((1, Cout), lambda n: (0, 0)),
        ],
        out_specs=pl.BlockSpec((1, H, W, Cout), lambda n: (n, 0, 0, 0)),
        compiler_params=pltpu.CompilerParams(
            dimension_semantics=("parallel",), vmem_limit_bytes=vmem),
    )(xp, w.astype(cdt), b.reshape(1, Cout).astype(jnp.float32))


# --------------------------------------------------------------------------- #
# parameter construction (deterministic, synthetic)
# --------------------------------------------------------------------------- #

def init_basic_conv(key, cin, cout, kh, kw):
    """All leaves are arrays (no python ints in the pytree -> jit-safe)."""
    k1, k2, k3, k4, k5 = jax.random.split(key, 5)
    w = jax.random.normal(k1, (kh * kw, cin, cout), jnp.float32) * 0.1
    gamma = jax.random.uniform(k2, (cout,), jnp.float32, 0.5, 1.5)
    beta = jax.random.normal(k3, (cout,), jnp.float32) * 0.1
    mean = jax.random.normal(k4, (cout,), jnp.float32) * 0.1
    var = jax.random.uniform(k5, (cout,), jnp.float32, 0.5, 1.5)
    scale = gamma / jnp.sqrt(var + _EPS)      # eval-mode BN folded to affine
    bias = beta - mean * scale
    return dict(w=w, scale=scale, bias=bias,
                gamma=gamma, beta=beta, mean=mean, var=var)


# --------------------------------------------------------------------------- #
# forward pass
# --------------------------------------------------------------------------- #

def inception_forward(params, x_nchw, *, compute_dtype=None):
    """Inception cell forward. NCHW in / NCHW out (matches the PyTorch module).
    compute_dtype=jnp.bfloat16 runs the MXU in bf16 (f32 accumulation kept)."""
    orig_dtype = x_nchw.dtype
    x = jnp.transpose(x_nchw, (0, 2, 3, 1))   # NCHW -> NHWC (channels on lanes)
    # TODO(synk): when embedded in a larger NHWC network, drop the boundary
    # transposes and take/return NHWC directly.

    p = params
    c1 = p['branch1x1']['w'].shape[-1]
    c7 = p['branch7x7_1']['w'].shape[-1]

    # --- stage 1: the three 1x1 convs that read x, fused into one call -------
    w_f = jnp.concatenate([_fold_bn(p['branch1x1'])[0][0],
                           _fold_bn(p['branch7x7_1'])[0][0],
                           _fold_bn(p['branch7x7dbl_1'])[0][0]], axis=-1)
    b_f = jnp.concatenate([p['branch1x1']['bias'],
                           p['branch7x7_1']['bias'],
                           p['branch7x7dbl_1']['bias']])
    y = fused_conv1x1_bn_relu(x, w_f, b_f, compute_dtype=compute_dtype)
    b1x1 = y[..., :c1]
    b7 = y[..., c1:c1 + c7]
    bd = y[..., c1 + c7:c1 + 2 * c7]

    # --- 7x7 branch: 1x3 -> 3x1 fused pair ------------------------------------
    w2, bb2 = _fold_bn(p['branch7x7_2'])
    w3, bb3 = _fold_bn(p['branch7x7_3'])
    b7 = conv_pair_w_then_h(b7, w2, bb2, w3, bb3, compute_dtype=compute_dtype)

    # --- 7x7dbl branch: (3x1 -> 1x3) x 2 fused pairs --------------------------
    wd2, bd2 = _fold_bn(p['branch7x7dbl_2'])
    wd3, bd3 = _fold_bn(p['branch7x7dbl_3'])
    bd = conv_pair_h_then_w(bd, wd2, bd2, wd3, bd3, compute_dtype=compute_dtype)
    wd4, bd4 = _fold_bn(p['branch7x7dbl_4'])
    wd5, bd5 = _fold_bn(p['branch7x7dbl_5'])
    bd = conv_pair_h_then_w(bd, wd4, bd4, wd5, bd5, compute_dtype=compute_dtype)

    # --- pool branch: in-kernel 3x3 avg pool + 1x1 conv ------------------------
    wp, bpb = _fold_bn(p['branch_pool'])
    bpool = avgpool3_conv1x1_bn_relu(x, wp[0], bpb, compute_dtype=compute_dtype)

    # TODO(synk): write each final-stage branch directly into its channel slice
    # of the concat buffer (input_output_aliases) to drop this last concat pass.
    out = jnp.concatenate([b1x1, b7, bd, bpool], axis=-1).astype(orig_dtype)
    return jnp.transpose(out, (0, 3, 1, 2))   # NHWC -> NCHW


# --------------------------------------------------------------------------- #
# pure-JAX reference (independent of the BN folding / fusions)
# --------------------------------------------------------------------------- #

def _ref_conv_bn_relu(x_nhwc, p, kh, kw):
    cin, cout = p['w'].shape[1], p['w'].shape[2]
    w_hwio = p['w'].reshape(kh, kw, cin, cout)
    y = lax.conv_general_dilated(
        x_nhwc, w_hwio, window_strides=(1, 1),
        padding=((kh // 2, kh // 2), (kw // 2, kw // 2)),
        dimension_numbers=('NHWC', 'HWIO', 'NHWC'),
        precision=lax.Precision.HIGHEST)
    y = (y - p['mean']) / jnp.sqrt(p['var'] + _EPS) * p['gamma'] + p['beta']
    return jnp.maximum(y, 0.0)


def _ref_avg_pool3(x_nhwc):
    N, H, W, C = x_nhwc.shape
    xp = jnp.pad(x_nhwc, ((0, 0), (1, 1), (1, 1), (0, 0)))
    acc = sum(xp[:, dh:dh + H, dw:dw + W, :]
              for dh in range(3) for dw in range(3))
    return acc / 9.0


def _ref_inception(params, x_nchw):
    x = jnp.transpose(x_nchw, (0, 2, 3, 1))
    b1 = _ref_conv_bn_relu(x, params['branch1x1'], 1, 1)
    b7 = _ref_conv_bn_relu(x, params['branch7x7_1'], 1, 1)
    b7 = _ref_conv_bn_relu(b7, params['branch7x7_2'], 1, 3)
    b7 = _ref_conv_bn_relu(b7, params['branch7x7_3'], 3, 1)
    bd = _ref_conv_bn_relu(x, params['branch7x7dbl_1'], 1, 1)
    bd = _ref_conv_bn_relu(bd, params['branch7x7dbl_2'], 3, 1)
    bd = _ref_conv_bn_relu(bd, params['branch7x7dbl_3'], 1, 3)
    bd = _ref_conv_bn_relu(bd, params['branch7x7dbl_4'], 3, 1)
    bd = _ref_conv_bn_relu(bd, params['branch7x7dbl_5'], 1, 3)
    bp = _ref_conv_bn_relu(_ref_avg_pool3(x), params['branch_pool'], 1, 1)
    out = jnp.concatenate([b1, b7, bd, bp], axis=-1)
    return jnp.transpose(out, (0, 3, 1, 2))


# --------------------------------------------------------------------------- #
# main
# --------------------------------------------------------------------------- #

if __name__ == "__main__":
    key = jax.random.PRNGKey(0)
    N, Cin, H, W = 2, 16, 16, 16
    c7, cout = 16, 16

    keys = jax.random.split(key, 11)
    params = {
        'branch1x1':      init_basic_conv(keys[0], Cin, cout, 1, 1),
        'branch7x7_1':    init_basic_conv(keys[1], Cin, c7, 1, 1),
        'branch7x7_2':    init_basic_conv(keys[2], c7, c7, 1, 3),
        'branch7x7_3':    init_basic_conv(keys[3], c7, cout, 3, 1),
        'branch7x7dbl_1': init_basic_conv(keys[4], Cin, c7, 1, 1),
        'branch7x7dbl_2': init_basic_conv(keys[5], c7, c7, 3, 1),
        'branch7x7dbl_3': init_basic_conv(keys[6], c7, c7, 1, 3),
        'branch7x7dbl_4': init_basic_conv(keys[7], c7, c7, 3, 1),
        'branch7x7dbl_5': init_basic_conv(keys[8], c7, cout, 1, 3),
        'branch_pool':    init_basic_conv(keys[9], Cin, cout, 1, 1),
    }
    x = jax.random.normal(keys[10], (N, Cin, H, W), jnp.float32)  # NCHW input

    ref = _ref_inception(params, x)

    # strict f32 path
    fwd_f32 = jax.jit(functools.partial(inception_forward, compute_dtype=None))
    out_f32 = jax.block_until_ready(fwd_f32(params, x))
    assert out_f32.shape == (N, 4 * cout, H, W), out_f32.shape
    err_f32 = float(jnp.max(jnp.abs(out_f32 - ref)))
    assert err_f32 < 2e-3, f"f32 max abs error vs reference: {err_f32}"

    # production bf16 MXU path (f32 accumulation), dtype-aware tolerance
    fwd_bf16 = jax.jit(functools.partial(inception_forward,
                                         compute_dtype=jnp.bfloat16))
    out_bf16 = jax.block_until_ready(fwd_bf16(params, x))
    err_bf16 = float(jnp.max(jnp.abs(out_bf16.astype(jnp.float32) - ref)))
    assert err_bf16 < 0.5, f"bf16 max abs error vs reference: {err_bf16}"

    print("KERNEL_OK")
</pallas_src>

<mosaic_0001>
module attributes {stable_mosaic.version = 11 : i64} {
  func.func @_fused_1x1_kernel(%arg0: i32, %arg1: i32, %arg2: memref<1x8x16x16xf32, #tpu.memory_space<vmem>>, %arg3: memref<16x48xf32, #tpu.memory_space<vmem>>, %arg4: memref<1x48xf32, #tpu.memory_space<vmem>>, %arg5: memref<1x8x16x48xf32, #tpu.memory_space<vmem>>) attributes {dimension_semantics = [#tpu.dimension_semantics<parallel>, #tpu.dimension_semantics<parallel>], iteration_bounds = array<i64: 2, 2>, scalar_prefetch = 0 : i64, scratch_operands = 0 : i64, tpu.core_type = #tpu.core_type<tc>, window_params = [{transform_indices = @transform_0, window_bounds = array<i64: 1, 8, 16, 16>}, {pipeline_mode = #tpu.pipeline_mode<synchronous>, transform_indices = @transform_1, window_bounds = array<i64: 16, 48>}, {pipeline_mode = #tpu.pipeline_mode<synchronous>, transform_indices = @transform_2, window_bounds = array<i64: 1, 48>}, {transform_indices = @transform_3, window_bounds = array<i64: 1, 8, 16, 48>}]} {
    %c0 = arith.constant 0 : index
    %c0_0 = arith.constant 0 : index
    %c0_1 = arith.constant 0 : index
    %c0_2 = arith.constant 0 : index
    %0 = vector.load %arg2[%c0, %c0_0, %c0_1, %c0_2] : memref<1x8x16x16xf32, #tpu.memory_space<vmem>>, vector<1x8x16x16xf32>
    %1 = vector.shape_cast %0 : vector<1x8x16x16xf32> to vector<128x16xf32>
    %c0_3 = arith.constant 0 : index
    %c0_4 = arith.constant 0 : index
    %2 = vector.load %arg3[%c0_3, %c0_4] : memref<16x48xf32, #tpu.memory_space<vmem>>, vector<16x48xf32>
    %cst = arith.constant dense<0.000000e+00> : vector<128x48xf32>
    %3 = tpu.matmul %1, %2, %cst {dimension_numbers = #tpu.dot_dimension_numbers<[1], [0], [0], [1], [0, 0, 1, 1], [], []>} : vector<128x16xf32>, vector<16x48xf32>, vector<128x48xf32> -> vector<128x48xf32>
    %c0_5 = arith.constant 0 : index
    %c0_6 = arith.constant 0 : index
    %4 = vector.load %arg4[%c0_5, %c0_6] : memref<1x48xf32, #tpu.memory_space<vmem>>, vector<1x48xf32>
    %5 = vector.broadcast %4 : vector<1x48xf32> to vector<128x48xf32>
    %6 = arith.addf %3, %5 : vector<128x48xf32>
    %cst_7 = arith.constant 0.000000e+00 : f32
    %7 = vector.broadcast %cst_7 : f32 to vector<128x48xf32>
    %8 = arith.maximumf %6, %7 : vector<128x48xf32>
    %9 = vector.shape_cast %8 : vector<128x48xf32> to vector<1x8x16x48xf32>
    %c0_8 = arith.constant 0 : index
    %c0_9 = arith.constant 0 : index
    %c0_10 = arith.constant 0 : index
    %c0_11 = arith.constant 0 : index
    %10 = vector.load %arg5[%c0_8, %c0_9, %c0_10, %c0_11] : memref<1x8x16x48xf32, #tpu.memory_space<vmem>>, vector<1x8x16x48xf32>
    tpu.vector_store %arg5[%c0_8, %c0_9, %c0_10, %c0_11], %9 {strides = array<i32>} : memref<1x8x16x48xf32, #tpu.memory_space<vmem>>, vector<1x8x16x48xf32>,
    return
  }
  func.func @transform_0(%arg0: i32, %arg1: i32) -> (i32, i32, i32, i32) {
    %c0_i32 = arith.constant 0 : i32
    %c0_i32_0 = arith.constant 0 : i32
    %c0_i32_1 = arith.constant 0 : i32
    return %arg0, %arg1, %c0_i32, %c0_i32_0 : i32, i32, i32, i32
  }
  func.func @transform_1(%arg0: i32, %arg1: i32) -> (i32, i32) {
    %c0_i32 = arith.constant 0 : i32
    %c0_i32_0 = arith.constant 0 : i32
    %c0_i32_1 = arith.constant 0 : i32
    return %c0_i32, %c0_i32_0 : i32, i32
  }
  func.func @transform_2(%arg0: i32, %arg1: i32) -> (i32, i32) {
    %c0_i32 = arith.constant 0 : i32
    %c0_i32_0 = arith.constant 0 : i32
    %c0_i32_1 = arith.constant 0 : i32
    return %c0_i32, %c0_i32_0 : i32, i32
  }
  func.func @transform_3(%arg0: i32, %arg1: i32) -> (i32, i32, i32, i32) {
    %c0_i32 = arith.constant 0 : i32
    %c0_i32_0 = arith.constant 0 : i32
    %c0_i32_1 = arith.constant 0 : i32
    return %arg0, %arg1, %c0_i32, %c0_i32_0 : i32, i32, i32, i32
  }
}

module attributes {stable_mosaic.version = 11 : i64} {
  func.func @_avgpool3_conv1x1_kernel(%arg0: i32, %arg1: memref<1x18x18x16xf32, #tpu.memory_space<vmem>>, %arg2: memref<16x16xf32, #tpu.memory_space<vmem>>, %arg3: memref<1x16xf32, #tpu.memory_space<vmem>>, %arg4: memref<1x16x16x16xf32, #tpu.memory_space<vmem>>) attributes {dimension_semantics = [#tpu.dimension_semantics<parallel>], iteration_bounds = array<i64: 2>, scalar_prefetch = 0 : i64, scratch_operands = 0 : i64, tpu.core_type = #tpu.core_type<tc>, window_params = [{transform_indices = @transform_0, window_bounds = array<i64: 1, 18, 18, 16>}, {pipeline_mode = #tpu.pipeline_mode<synchronous>, transform_indices = @transform_1, window_bounds = array<i64: 16, 16>}, {pipeline_mode = #tpu.pipeline_mode<synchronous>, transform_indices = @transform_2, window_bounds = array<i64: 1, 16>}, {transform_indices = @transform_3, window_bounds = array<i64: 1, 16, 16, 16>}]} {
    %c0 = arith.constant 0 : index
    %c0_0 = arith.constant 0 : index
    %c0_1 = arith.constant 0 : index
    %c0_2 = arith.constant 0 : index
    %0 = vector.load %arg1[%c0, %c0_0, %c0_1, %c0_2] : memref<1x18x18x16xf32, #tpu.memory_space<vmem>>, vector<1x16x16x16xf32>
    %1 = vector.shape_cast %0 : vector<1x16x16x16xf32> to vector<16x16x16xf32>
    %c0_3 = arith.constant 0 : index
    %c0_4 = arith.constant 0 : index
    %c1 = arith.constant 1 : index
    %c0_5 = arith.constant 0 : index
    %2 = vector.load %arg1[%c0_3, %c0_4, %c1, %c0_5] : memref<1x18x18x16xf32, #tpu.memory_space<vmem>>, vector<1x16x16x16xf32>
    %3 = vector.shape_cast %2 : vector<1x16x16x16xf32> to vector<16x16x16xf32>
    %4 = arith.addf %1, %3 : vector<16x16x16xf32>
    %c0_6 = arith.constant 0 : index
    %c0_7 = arith.constant 0 : index
    %c2 = arith.constant 2 : index
    %c0_8 = arith.constant 0 : index
    %5 = vector.load %arg1[%c0_6, %c0_7, %c2, %c0_8] : memref<1x18x18x16xf32, #tpu.memory_space<vmem>>, vector<1x16x16x16xf32>
    %6 = vector.shape_cast %5 : vector<1x16x16x16xf32> to vector<16x16x16xf32>
    %7 = arith.addf %4, %6 : vector<16x16x16xf32>
    %c0_9 = arith.constant 0 : index
    %c1_10 = arith.constant 1 : index
    %c0_11 = arith.constant 0 : index
    %c0_12 = arith.constant 0 : index
    %8 = vector.load %arg1[%c0_9, %c1_10, %c0_11, %c0_12] : memref<1x18x18x16xf32, #tpu.memory_space<vmem>>, vector<1x16x16x16xf32>
    %9 = vector.shape_cast %8 : vector<1x16x16x16xf32> to vector<16x16x16xf32>
    %10 = arith.addf %7, %9 : vector<16x16x16xf32>
    %c0_13 = arith.constant 0 : index
    %c1_14 = arith.constant 1 : index
    %c1_15 = arith.constant 1 : index
    %c0_16 = arith.constant 0 : index
    %11 = vector.load %arg1[%c0_13, %c1_14, %c1_15, %c0_16] : memref<1x18x18x16xf32, #tpu.memory_space<vmem>>, vector<1x16x16x16xf32>
    %12 = vector.shape_cast %11 : vector<1x16x16x16xf32> to vector<16x16x16xf32>
    %13 = arith.addf %10, %12 : vector<16x16x16xf32>
    %c0_17 = arith.constant 0 : index
    %c1_18 = arith.constant 1 : index
    %c2_19 = arith.constant 2 : index
    %c0_20 = arith.constant 0 : index
    %14 = vector.load %arg1[%c0_17, %c1_18, %c2_19, %c0_20] : memref<1x18x18x16xf32, #tpu.memory_space<vmem>>, vector<1x16x16x16xf32>
    %15 = vector.shape_cast %14 : vector<1x16x16x16xf32> to vector<16x16x16xf32>
    %16 = arith.addf %13, %15 : vector<16x16x16xf32>
    %c0_21 = arith.constant 0 : index
    %c2_22 = arith.constant 2 : index
    %c0_23 = arith.constant 0 : index
    %c0_24 = arith.constant 0 : index
    %17 = vector.load %arg1[%c0_21, %c2_22, %c0_23, %c0_24] : memref<1x18x18x16xf32, #tpu.memory_space<vmem>>, vector<1x16x16x16xf32>
    %18 = vector.shape_cast %17 : vector<1x16x16x16xf32> to vector<16x16x16xf32>
    %19 = arith.addf %16, %18 : vector<16x16x16xf32>
    %c0_25 = arith.constant 0 : index
    %c2_26 = arith.constant 2 : index
    %c1_27 = arith.constant 1 : index
    %c0_28 = arith.constant 0 : index
    %20 = vector.load %arg1[%c0_25, %c2_26, %c1_27, %c0_28] : memref<1x18x18x16xf32, #tpu.memory_space<vmem>>, vector<1x16x16x16xf32>
    %21 = vector.shape_cast %20 : vector<1x16x16x16xf32> to vector<16x16x16xf32>
    %22 = arith.addf %19, %21 : vector<16x16x16xf32>
    %c0_29 = arith.constant 0 : index
    %c2_30 = arith.constant 2 : index
    %c2_31 = arith.constant 2 : index
    %c0_32 = arith.constant 0 : index
    %23 = vector.load %arg1[%c0_29, %c2_30, %c2_31, %c0_32] : memref<1x18x18x16xf32, #tpu.memory_space<vmem>>, vector<1x16x16x16xf32>
    %24 = vector.shape_cast %23 : vector<1x16x16x16xf32> to vector<16x16x16xf32>
    %25 = arith.addf %22, %24 : vector<16x16x16xf32>
    %cst = arith.constant 0.111111112 : f32
    %26 = vector.broadcast %cst : f32 to vector<16x16x16xf32>
    %27 = arith.mulf %25, %26 : vector<16x16x16xf32>
    %28 = vector.shape_cast %27 : vector<16x16x16xf32> to vector<256x16xf32>
    %c0_33 = arith.constant 0 : index
    %c0_34 = arith.constant 0 : index
    %29 = vector.load %arg2[%c0_33, %c0_34] : memref<16x16xf32, #tpu.memory_space<vmem>>, vector<16x16xf32>
    %cst_35 = arith.constant dense<0.000000e+00> : vector<256x16xf32>
    %30 = tpu.matmul %28, %29, %cst_35 {dimension_numbers = #tpu.dot_dimension_numbers<[1], [0], [0], [1], [0, 0, 1, 1], [], []>} : vector<256x16xf32>, vector<16x16xf32>, vector<256x16xf32> -> vector<256x16xf32>
    %c0_36 = arith.constant 0 : index
    %c0_37 = arith.constant 0 : index
    %31 = vector.load %arg3[%c0_36, %c0_37] : memref<1x16xf32, #tpu.memory_space<vmem>>, vector<1x16xf32>
    %32 = vector.broadcast %31 : vector<1x16xf32> to vector<256x16xf32>
    %33 = arith.addf %30, %32 : vector<256x16xf32>
    %cst_38 = arith.constant 0.000000e+00 : f32
    %34 = vector.broadcast %cst_38 : f32 to vector<256x16xf32>
    %35 = arith.maximumf %33, %34 : vector<256x16xf32>
    %36 = vector.shape_cast %35 : vector<256x16xf32> to vector<1x16x16x16xf32>
    %c0_39 = arith.constant 0 : index
    %c0_40 = arith.constant 0 : index
    %c0_41 = arith.constant 0 : index
    %c0_42 = arith.constant 0 : index
    %37 = vector.load %arg4[%c0_39, %c0_40, %c0_41, %c0_42] : memref<1x16x16x16xf32, #tpu.memory_space<vmem>>, vector<1x16x16x16xf32>
    tpu.vector_store %arg4[%c0_39, %c0_40, %c0_41, %c0_42], %36 {strides = array<i32>} : memref<1x16x16x16xf32, #tpu.memory_space<vmem>>, vector<1x16x16x16xf32>,
    return
  }
  func.func @transform_0(%arg0: i32) -> (i32, i32, i32, i32) {
    %c0_i32 = arith.constant 0 : i32
    %c0_i32_0 = arith.constant 0 : i32
    %c0_i32_1 = arith.constant 0 : i32
    %c0_i32_2 = arith.constant 0 : i32
    return %arg0, %c0_i32, %c0_i32_0, %c0_i32_1 : i32, i32, i32, i32
  }
  func.func @transform_1(%arg0: i32) -> (i32, i32) {
    %c0_i32 = arith.constant 0 : i32
    %c0_i32_0 = arith.constant 0 : i32
    %c0_i32_1 = arith.constant 0 : i32
    return %c0_i32, %c0_i32_0 : i32, i32
  }
  func.func @transform_2(%arg0: i32) -> (i32, i32) {
    %c0_i32 = arith.constant 0 : i32
    %c0_i32_0 = arith.constant 0 : i32
    %c0_i32_1 = arith.constant 0 : i32
    return %c0_i32, %c0_i32_0 : i32, i32
  }
  func.func @transform_3(%arg0: i32) -> (i32, i32, i32, i32) {
    %c0_i32 = arith.constant 0 : i32
    %c0_i32_0 = arith.constant 0 : i32
    %c0_i32_1 = arith.constant 0 : i32
    %c0_i32_2 = arith.constant 0 : i32
    return %arg0, %c0_i32, %c0_i32_0, %c0_i32_1 : i32, i32, i32, i32
  }
}

module attributes {stable_mosaic.version = 11 : i64} {
  func.func @_pair_h_then_w_kernel(%arg0: i32, %arg1: memref<1x18x16x16xf32, #tpu.memory_space<vmem>>, %arg2: memref<3x16x16xf32, #tpu.memory_space<vmem>>, %arg3: memref<1x16xf32, #tpu.memory_space<vmem>>, %arg4: memref<3x16x16xf32, #tpu.memory_space<vmem>>, %arg5: memref<1x16xf32, #tpu.memory_space<vmem>>, %arg6: memref<1x16x16x16xf32, #tpu.memory_space<vmem>>, %arg7: memref<16x18x16xf32, #tpu.memory_space<vmem>>) attributes {dimension_semantics = [#tpu.dimension_semantics<parallel>], iteration_bounds = array<i64: 2>, scalar_prefetch = 0 : i64, scratch_operands = 1 : i64, tpu.core_type = #tpu.core_type<tc>, window_params = [{transform_indices = @transform_0, window_bounds = array<i64: 1, 18, 16, 16>}, {pipeline_mode = #tpu.pipeline_mode<synchronous>, transform_indices = @transform_1, window_bounds = array<i64: 3, 16, 16>}, {pipeline_mode = #tpu.pipeline_mode<synchronous>, transform_indices = @transform_2, window_bounds = array<i64: 1, 16>}, {pipeline_mode = #tpu.pipeline_mode<synchronous>, transform_indices = @transform_3, window_bounds = array<i64: 3, 16, 16>}, {pipeline_mode = #tpu.pipeline_mode<synchronous>, transform_indices = @transform_4, window_bounds = array<i64: 1, 16>}, {transform_indices = @transform_5, window_bounds = array<i64: 1, 16, 16, 16>}]} {
    %c0 = arith.constant 0 : index
    %c0_0 = arith.constant 0 : index
    %c0_1 = arith.constant 0 : index
    %c0_2 = arith.constant 0 : index
    %0 = vector.load %arg1[%c0, %c0_0, %c0_1, %c0_2] : memref<1x18x16x16xf32, #tpu.memory_space<vmem>>, vector<1x16x16x16xf32>
    %1 = vector.shape_cast %0 : vector<1x16x16x16xf32> to vector<16x16x16xf32>
    %2 = vector.shape_cast %1 : vector<16x16x16xf32> to vector<256x16xf32>
    %c0_3 = arith.constant 0 : index
    %c0_4 = arith.constant 0 : index
    %c0_5 = arith.constant 0 : index
    %3 = vector.load %arg2[%c0_3, %c0_4, %c0_5] : memref<3x16x16xf32, #tpu.memory_space<vmem>>, vector<1x16x16xf32>
    %4 = vector.shape_cast %3 : vector<1x16x16xf32> to vector<16x16xf32>
    %cst = arith.constant dense<0.000000e+00> : vector<256x16xf32>
    %5 = tpu.matmul %2, %4, %cst {dimension_numbers = #tpu.dot_dimension_numbers<[1], [0], [0], [1], [0, 0, 1, 1], [], []>} : vector<256x16xf32>, vector<16x16xf32>, vector<256x16xf32> -> vector<256x16xf32>
    %c0_6 = arith.constant 0 : index
    %c1 = arith.constant 1 : index
    %c0_7 = arith.constant 0 : index
    %c0_8 = arith.constant 0 : index
    %6 = vector.load %arg1[%c0_6, %c1, %c0_7, %c0_8] : memref<1x18x16x16xf32, #tpu.memory_space<vmem>>, vector<1x16x16x16xf32>
    %7 = vector.shape_cast %6 : vector<1x16x16x16xf32> to vector<16x16x16xf32>
    %8 = vector.shape_cast %7 : vector<16x16x16xf32> to vector<256x16xf32>
    %c1_9 = arith.constant 1 : index
    %c0_10 = arith.constant 0 : index
    %c0_11 = arith.constant 0 : index
    %9 = vector.load %arg2[%c1_9, %c0_10, %c0_11] : memref<3x16x16xf32, #tpu.memory_space<vmem>>, vector<1x16x16xf32>
    %10 = vector.shape_cast %9 : vector<1x16x16xf32> to vector<16x16xf32>
    %cst_12 = arith.constant dense<0.000000e+00> : vector<256x16xf32>
    %11 = tpu.matmul %8, %10, %cst_12 {dimension_numbers = #tpu.dot_dimension_numbers<[1], [0], [0], [1], [0, 0, 1, 1], [], []>} : vector<256x16xf32>, vector<16x16xf32>, vector<256x16xf32> -> vector<256x16xf32>
    %12 = arith.addf %5, %11 : vector<256x16xf32>
    %c0_13 = arith.constant 0 : index
    %c2 = arith.constant 2 : index
    %c0_14 = arith.constant 0 : index
    %c0_15 = arith.constant 0 : index
    %13 = vector.load %arg1[%c0_13, %c2, %c0_14, %c0_15] : memref<1x18x16x16xf32, #tpu.memory_space<vmem>>, vector<1x16x16x16xf32>
    %14 = vector.shape_cast %13 : vector<1x16x16x16xf32> to vector<16x16x16xf32>
    %15 = vector.shape_cast %14 : vector<16x16x16xf32> to vector<256x16xf32>
    %c2_16 = arith.constant 2 : index
    %c0_17 = arith.constant 0 : index
    %c0_18 = arith.constant 0 : index
    %16 = vector.load %arg2[%c2_16, %c0_17, %c0_18] : memref<3x16x16xf32, #tpu.memory_space<vmem>>, vector<1x16x16xf32>
    %17 = vector.shape_cast %16 : vector<1x16x16xf32> to vector<16x16xf32>
    %cst_19 = arith.constant dense<0.000000e+00> : vector<256x16xf32>
    %18 = tpu.matmul %15, %17, %cst_19 {dimension_numbers = #tpu.dot_dimension_numbers<[1], [0], [0], [1], [0, 0, 1, 1], [], []>} : vector<256x16xf32>, vector<16x16xf32>, vector<256x16xf32> -> vector<256x16xf32>
    %19 = arith.addf %12, %18 : vector<256x16xf32>
    %c0_20 = arith.constant 0 : index
    %c0_21 = arith.constant 0 : index
    %20 = vector.load %arg3[%c0_20, %c0_21] : memref<1x16xf32, #tpu.memory_space<vmem>>, vector<1x16xf32>
    %21 = vector.broadcast %20 : vector<1x16xf32> to vector<256x16xf32>
    %22 = arith.addf %19, %21 : vector<256x16xf32>
    %cst_22 = arith.constant 0.000000e+00 : f32
    %23 = vector.broadcast %cst_22 : f32 to vector<256x16xf32>
    %24 = arith.maximumf %22, %23 : vector<256x16xf32>
    %cst_23 = arith.constant 0.000000e+00 : f32
    %25 = vector.broadcast %cst_23 : f32 to vector<16x18x16xf32>
    %c0_24 = arith.constant 0 : index
    %c0_25 = arith.constant 0 : index
    %c0_26 = arith.constant 0 : index
    %26 = vector.load %arg7[%c0_24, %c0_25, %c0_26] : memref<16x18x16xf32, #tpu.memory_space<vmem>>, vector<16x18x16xf32>
    tpu.vector_store %arg7[%c0_24, %c0_25, %c0_26], %25 {strides = array<i32>} : memref<16x18x16xf32, #tpu.memory_space<vmem>>, vector<16x18x16xf32>,
    %27 = vector.shape_cast %24 : vector<256x16xf32> to vector<16x16x16xf32>
    %c0_27 = arith.constant 0 : index
    %c1_28 = arith.constant 1 : index
    %c0_29 = arith.constant 0 : index
    %28 = vector.load %arg7[%c0_27, %c1_28, %c0_29] : memref<16x18x16xf32, #tpu.memory_space<vmem>>, vector<16x16x16xf32>
    tpu.vector_store %arg7[%c0_27, %c1_28, %c0_29], %27 {strides = array<i32>} : memref<16x18x16xf32, #tpu.memory_space<vmem>>, vector<16x16x16xf32>,
    %c0_30 = arith.constant 0 : index
    %c0_31 = arith.constant 0 : index
    %c0_32 = arith.constant 0 : index
    %29 = vector.load %arg7[%c0_30, %c0_31, %c0_32] : memref<16x18x16xf32, #tpu.memory_space<vmem>>, vector<16x16x16xf32>
    %30 = vector.shape_cast %29 : vector<16x16x16xf32> to vector<256x16xf32>
    %c0_33 = arith.constant 0 : index
    %c0_34 = arith.constant 0 : index
    %c0_35 = arith.constant 0 : index
    %31 = vector.load %arg4[%c0_33, %c0_34, %c0_35] : memref<3x16x16xf32, #tpu.memory_space<vmem>>, vector<1x16x16xf32>
    %32 = vector.shape_cast %31 : vector<1x16x16xf32> to vector<16x16xf32>
    %cst_36 = arith.constant dense<0.000000e+00> : vector<256x16xf32>
    %33 = tpu.matmul %30, %32, %cst_36 {dimension_numbers = #tpu.dot_dimension_numbers<[1], [0], [0], [1], [0, 0, 1, 1], [], []>} : vector<256x16xf32>, vector<16x16xf32>, vector<256x16xf32> -> vector<256x16xf32>
    %c0_37 = arith.constant 0 : index
    %c1_38 = arith.constant 1 : index
    %c0_39 = arith.constant 0 : index
    %34 = vector.load %arg7[%c0_37, %c1_38, %c0_39] : memref<16x18x16xf32, #tpu.memory_space<vmem>>, vector<16x16x16xf32>
    %35 = vector.shape_cast %34 : vector<16x16x16xf32> to vector<256x16xf32>
    %c1_40 = arith.constant 1 : index
    %c0_41 = arith.constant 0 : index
    %c0_42 = arith.constant 0 : index
    %36 = vector.load %arg4[%c1_40, %c0_41, %c0_42] : memref<3x16x16xf32, #tpu.memory_space<vmem>>, vector<1x16x16xf32>
    %37 = vector.shape_cast %36 : vector<1x16x16xf32> to vector<16x16xf32>
    %cst_43 = arith.constant dense<0.000000e+00> : vector<256x16xf32>
    %38 = tpu.matmul %35, %37, %cst_43 {dimension_numbers = #tpu.dot_dimension_numbers<[1], [0], [0], [1], [0, 0, 1, 1], [], []>} : vector<256x16xf32>, vector<16x16xf32>, vector<256x16xf32> -> vector<256x16xf32>
    %39 = arith.addf %33, %38 : vector<256x16xf32>
    %c0_44 = arith.constant 0 : index
    %c2_45 = arith.constant 2 : index
    %c0_46 = arith.constant 0 : index
    %40 = vector.load %arg7[%c0_44, %c2_45, %c0_46] : memref<16x18x16xf32, #tpu.memory_space<vmem>>, vector<16x16x16xf32>
    %41 = vector.shape_cast %40 : vector<16x16x16xf32> to vector<256x16xf32>
    %c2_47 = arith.constant 2 : index
    %c0_48 = arith.constant 0 : index
    %c0_49 = arith.constant 0 : index
    %42 = vector.load %arg4[%c2_47, %c0_48, %c0_49] : memref<3x16x16xf32, #tpu.memory_space<vmem>>, vector<1x16x16xf32>
    %43 = vector.shape_cast %42 : vector<1x16x16xf32> to vector<16x16xf32>
    %cst_50 = arith.constant dense<0.000000e+00> : vector<256x16xf32>
    %44 = tpu.matmul %41, %43, %cst_50 {dimension_numbers = #tpu.dot_dimension_numbers<[1], [0], [0], [1], [0, 0, 1, 1], [], []>} : vector<256x16xf32>, vector<16x16xf32>, vector<256x16xf32> -> vector<256x16xf32>
    %45 = arith.addf %39, %44 : vector<256x16xf32>
    %c0_51 = arith.constant 0 : index
    %c0_52 = arith.constant 0 : index
    %46 = vector.load %arg5[%c0_51, %c0_52] : memref<1x16xf32, #tpu.memory_space<vmem>>, vector<1x16xf32>
    %47 = vector.broadcast %46 : vector<1x16xf32> to vector<256x16xf32>
    %48 = arith.addf %45, %47 : vector<256x16xf32>
    %cst_53 = arith.constant 0.000000e+00 : f32
    %49 = vector.broadcast %cst_53 : f32 to vector<256x16xf32>
    %50 = arith.maximumf %48, %49 : vector<256x16xf32>
    %51 = vector.shape_cast %50 : vector<256x16xf32> to vector<1x16x16x16xf32>
    %c0_54 = arith.constant 0 : index
    %c0_55 = arith.constant 0 : index
    %c0_56 = arith.constant 0 : index
    %c0_57 = arith.constant 0 : index
    %52 = vector.load %arg6[%c0_54, %c0_55, %c0_56, %c0_57] : memref<1x16x16x16xf32, #tpu.memory_space<vmem>>, vector<1x16x16x16xf32>
    tpu.vector_store %arg6[%c0_54, %c0_55, %c0_56, %c0_57], %51 {strides = array<i32>} : memref<1x16x16x16xf32, #tpu.memory_space<vmem>>, vector<1x16x16x16xf32>,
    return
  }
  func.func @transform_0(%arg0: i32) -> (i32, i32, i32, i32) {
    %c0_i32 = arith.constant 0 : i32
    %c0_i32_0 = arith.constant 0 : i32
    %c0_i32_1 = arith.constant 0 : i32
    %c0_i32_2 = arith.constant 0 : i32
    return %arg0, %c0_i32, %c0_i32_0, %c0_i32_1 : i32, i32, i32, i32
  }
  func.func @transform_1(%arg0: i32) -> (i32, i32, i32) {
    %c0_i32 = arith.constant 0 : i32
    %c0_i32_0 = arith.constant 0 : i32
    %c0_i32_1 = arith.constant 0 : i32
    %c0_i32_2 = arith.constant 0 : i32
    return %c0_i32, %c0_i32_0, %c0_i32_1 : i32, i32, i32
  }
  func.func @transform_2(%arg0: i32) -> (i32, i32) {
    %c0_i32 = arith.constant 0 : i32
    %c0_i32_0 = arith.constant 0 : i32
    %c0_i32_1 = arith.constant 0 : i32
    return %c0_i32, %c0_i32_0 : i32, i32
  }
  func.func @transform_3(%arg0: i32) -> (i32, i32, i32) {
    %c0_i32 = arith.constant 0 : i32
    %c0_i32_0 = arith.constant 0 : i32
    %c0_i32_1 = arith.constant 0 : i32
    %c0_i32_2 = arith.constant 0 : i32
    return %c0_i32, %c0_i32_0, %c0_i32_1 : i32, i32, i32
  }
  func.func @transform_4(%arg0: i32) -> (i32, i32) {
    %c0_i32 = arith.constant 0 : i32
    %c0_i32_0 = arith.constant 0 : i32
    %c0_i32_1 = arith.constant 0 : i32
    return %c0_i32, %c0_i32_0 : i32, i32
  }
  func.func @transform_5(%arg0: i32) -> (i32, i32, i32, i32) {
    %c0_i32 = arith.constant 0 : i32
    %c0_i32_0 = arith.constant 0 : i32
    %c0_i32_1 = arith.constant 0 : i32
    %c0_i32_2 = arith.constant 0 : i32
    return %arg0, %c0_i32, %c0_i32_0, %c0_i32_1 : i32, i32, i32, i32
  }
}

module attributes {stable_mosaic.version = 11 : i64} {
  func.func @_pair_w_then_h_kernel(%arg0: i32, %arg1: memref<1x16x18x16xf32, #tpu.memory_space<vmem>>, %arg2: memref<3x16x16xf32, #tpu.memory_space<vmem>>, %arg3: memref<1x16xf32, #tpu.memory_space<vmem>>, %arg4: memref<3x16x16xf32, #tpu.memory_space<vmem>>, %arg5: memref<1x16xf32, #tpu.memory_space<vmem>>, %arg6: memref<1x16x16x16xf32, #tpu.memory_space<vmem>>, %arg7: memref<18x16x16xf32, #tpu.memory_space<vmem>>) attributes {dimension_semantics = [#tpu.dimension_semantics<parallel>], iteration_bounds = array<i64: 2>, scalar_prefetch = 0 : i64, scratch_operands = 1 : i64, tpu.core_type = #tpu.core_type<tc>, window_params = [{transform_indices = @transform_0, window_bounds = array<i64: 1, 16, 18, 16>}, {pipeline_mode = #tpu.pipeline_mode<synchronous>, transform_indices = @transform_1, window_bounds = array<i64: 3, 16, 16>}, {pipeline_mode = #tpu.pipeline_mode<synchronous>, transform_indices = @transform_2, window_bounds = array<i64: 1, 16>}, {pipeline_mode = #tpu.pipeline_mode<synchronous>, transform_indices = @transform_3, window_bounds = array<i64: 3, 16, 16>}, {pipeline_mode = #tpu.pipeline_mode<synchronous>, transform_indices = @transform_4, window_bounds = array<i64: 1, 16>}, {transform_indices = @transform_5, window_bounds = array<i64: 1, 16, 16, 16>}]} {
    %c0 = arith.constant 0 : index
    %c0_0 = arith.constant 0 : index
    %c0_1 = arith.constant 0 : index
    %c0_2 = arith.constant 0 : index
    %0 = vector.load %arg1[%c0, %c0_0, %c0_1, %c0_2] : memref<1x16x18x16xf32, #tpu.memory_space<vmem>>, vector<1x16x16x16xf32>
    %1 = vector.shape_cast %0 : vector<1x16x16x16xf32> to vector<16x16x16xf32>
    %2 = vector.shape_cast %1 : vector<16x16x16xf32> to vector<256x16xf32>
    %c0_3 = arith.constant 0 : index
    %c0_4 = arith.constant 0 : index
    %c0_5 = arith.constant 0 : index
    %3 = vector.load %arg2[%c0_3, %c0_4, %c0_5] : memref<3x16x16xf32, #tpu.memory_space<vmem>>, vector<1x16x16xf32>
    %4 = vector.shape_cast %3 : vector<1x16x16xf32> to vector<16x16xf32>
    %cst = arith.constant dense<0.000000e+00> : vector<256x16xf32>
    %5 = tpu.matmul %2, %4, %cst {dimension_numbers = #tpu.dot_dimension_numbers<[1], [0], [0], [1], [0, 0, 1, 1], [], []>} : vector<256x16xf32>, vector<16x16xf32>, vector<256x16xf32> -> vector<256x16xf32>
    %c0_6 = arith.constant 0 : index
    %c0_7 = arith.constant 0 : index
    %c1 = arith.constant 1 : index
    %c0_8 = arith.constant 0 : index
    %6 = vector.load %arg1[%c0_6, %c0_7, %c1, %c0_8] : memref<1x16x18x16xf32, #tpu.memory_space<vmem>>, vector<1x16x16x16xf32>
    %7 = vector.shape_cast %6 : vector<1x16x16x16xf32> to vector<16x16x16xf32>
    %8 = vector.shape_cast %7 : vector<16x16x16xf32> to vector<256x16xf32>
    %c1_9 = arith.constant 1 : index
    %c0_10 = arith.constant 0 : index
    %c0_11 = arith.constant 0 : index
    %9 = vector.load %arg2[%c1_9, %c0_10, %c0_11] : memref<3x16x16xf32, #tpu.memory_space<vmem>>, vector<1x16x16xf32>
    %10 = vector.shape_cast %9 : vector<1x16x16xf32> to vector<16x16xf32>
    %cst_12 = arith.constant dense<0.000000e+00> : vector<256x16xf32>
    %11 = tpu.matmul %8, %10, %cst_12 {dimension_numbers = #tpu.dot_dimension_numbers<[1], [0], [0], [1], [0, 0, 1, 1], [], []>} : vector<256x16xf32>, vector<16x16xf32>, vector<256x16xf32> -> vector<256x16xf32>
    %12 = arith.addf %5, %11 : vector<256x16xf32>
    %c0_13 = arith.constant 0 : index
    %c0_14 = arith.constant 0 : index
    %c2 = arith.constant 2 : index
    %c0_15 = arith.constant 0 : index
    %13 = vector.load %arg1[%c0_13, %c0_14, %c2, %c0_15] : memref<1x16x18x16xf32, #tpu.memory_space<vmem>>, vector<1x16x16x16xf32>
    %14 = vector.shape_cast %13 : vector<1x16x16x16xf32> to vector<16x16x16xf32>
    %15 = vector.shape_cast %14 : vector<16x16x16xf32> to vector<256x16xf32>
    %c2_16 = arith.constant 2 : index
    %c0_17 = arith.constant 0 : index
    %c0_18 = arith.constant 0 : index
    %16 = vector.load %arg2[%c2_16, %c0_17, %c0_18] : memref<3x16x16xf32, #tpu.memory_space<vmem>>, vector<1x16x16xf32>
    %17 = vector.shape_cast %16 : vector<1x16x16xf32> to vector<16x16xf32>
    %cst_19 = arith.constant dense<0.000000e+00> : vector<256x16xf32>
    %18 = tpu.matmul %15, %17, %cst_19 {dimension_numbers = #tpu.dot_dimension_numbers<[1], [0], [0], [1], [0, 0, 1, 1], [], []>} : vector<256x16xf32>, vector<16x16xf32>, vector<256x16xf32> -> vector<256x16xf32>
    %19 = arith.addf %12, %18 : vector<256x16xf32>
    %c0_20 = arith.constant 0 : index
    %c0_21 = arith.constant 0 : index
    %20 = vector.load %arg3[%c0_20, %c0_21] : memref<1x16xf32, #tpu.memory_space<vmem>>, vector<1x16xf32>
    %21 = vector.broadcast %20 : vector<1x16xf32> to vector<256x16xf32>
    %22 = arith.addf %19, %21 : vector<256x16xf32>
    %cst_22 = arith.constant 0.000000e+00 : f32
    %23 = vector.broadcast %cst_22 : f32 to vector<256x16xf32>
    %24 = arith.maximumf %22, %23 : vector<256x16xf32>
    %cst_23 = arith.constant 0.000000e+00 : f32
    %25 = vector.broadcast %cst_23 : f32 to vector<18x16x16xf32>
    %c0_24 = arith.constant 0 : index
    %c0_25 = arith.constant 0 : index
    %c0_26 = arith.constant 0 : index
    %26 = vector.load %arg7[%c0_24, %c0_25, %c0_26] : memref<18x16x16xf32, #tpu.memory_space<vmem>>, vector<18x16x16xf32>
    tpu.vector_store %arg7[%c0_24, %c0_25, %c0_26], %25 {strides = array<i32>} : memref<18x16x16xf32, #tpu.memory_space<vmem>>, vector<18x16x16xf32>,
    %27 = vector.shape_cast %24 : vector<256x16xf32> to vector<16x16x16xf32>
    %c1_27 = arith.constant 1 : index
    %c0_28 = arith.constant 0 : index
    %c0_29 = arith.constant 0 : index
    %28 = vector.load %arg7[%c1_27, %c0_28, %c0_29] : memref<18x16x16xf32, #tpu.memory_space<vmem>>, vector<16x16x16xf32>
    tpu.vector_store %arg7[%c1_27, %c0_28, %c0_29], %27 {strides = array<i32>} : memref<18x16x16xf32, #tpu.memory_space<vmem>>, vector<16x16x16xf32>,
    %c0_30 = arith.constant 0 : index
    %c0_31 = arith.constant 0 : index
    %c0_32 = arith.constant 0 : index
    %29 = vector.load %arg7[%c0_30, %c0_31, %c0_32] : memref<18x16x16xf32, #tpu.memory_space<vmem>>, vector<16x16x16xf32>
    %30 = vector.shape_cast %29 : vector<16x16x16xf32> to vector<256x16xf32>
    %c0_33 = arith.constant 0 : index
    %c0_34 = arith.constant 0 : index
    %c0_35 = arith.constant 0 : index
    %31 = vector.load %arg4[%c0_33, %c0_34, %c0_35] : memref<3x16x16xf32, #tpu.memory_space<vmem>>, vector<1x16x16xf32>
    %32 = vector.shape_cast %31 : vector<1x16x16xf32> to vector<16x16xf32>
    %cst_36 = arith.constant dense<0.000000e+00> : vector<256x16xf32>
    %33 = tpu.matmul %30, %32, %cst_36 {dimension_numbers = #tpu.dot_dimension_numbers<[1], [0], [0], [1], [0, 0, 1, 1], [], []>} : vector<256x16xf32>, vector<16x16xf32>, vector<256x16xf32> -> vector<256x16xf32>
    %c1_37 = arith.constant 1 : index
    %c0_38 = arith.constant 0 : index
    %c0_39 = arith.constant 0 : index
    %34 = vector.load %arg7[%c1_37, %c0_38, %c0_39] : memref<18x16x16xf32, #tpu.memory_space<vmem>>, vector<16x16x16xf32>
    %35 = vector.shape_cast %34 : vector<16x16x16xf32> to vector<256x16xf32>
    %c1_40 = arith.constant 1 : index
    %c0_41 = arith.constant 0 : index
    %c0_42 = arith.constant 0 : index
    %36 = vector.load %arg4[%c1_40, %c0_41, %c0_42] : memref<3x16x16xf32, #tpu.memory_space<vmem>>, vector<1x16x16xf32>
    %37 = vector.shape_cast %36 : vector<1x16x16xf32> to vector<16x16xf32>
    %cst_43 = arith.constant dense<0.000000e+00> : vector<256x16xf32>
    %38 = tpu.matmul %35, %37, %cst_43 {dimension_numbers = #tpu.dot_dimension_numbers<[1], [0], [0], [1], [0, 0, 1, 1], [], []>} : vector<256x16xf32>, vector<16x16xf32>, vector<256x16xf32> -> vector<256x16xf32>
    %39 = arith.addf %33, %38 : vector<256x16xf32>
    %c2_44 = arith.constant 2 : index
    %c0_45 = arith.constant 0 : index
    %c0_46 = arith.constant 0 : index
    %40 = vector.load %arg7[%c2_44, %c0_45, %c0_46] : memref<18x16x16xf32, #tpu.memory_space<vmem>>, vector<16x16x16xf32>
    %41 = vector.shape_cast %40 : vector<16x16x16xf32> to vector<256x16xf32>
    %c2_47 = arith.constant 2 : index
    %c0_48 = arith.constant 0 : index
    %c0_49 = arith.constant 0 : index
    %42 = vector.load %arg4[%c2_47, %c0_48, %c0_49] : memref<3x16x16xf32, #tpu.memory_space<vmem>>, vector<1x16x16xf32>
    %43 = vector.shape_cast %42 : vector<1x16x16xf32> to vector<16x16xf32>
    %cst_50 = arith.constant dense<0.000000e+00> : vector<256x16xf32>
    %44 = tpu.matmul %41, %43, %cst_50 {dimension_numbers = #tpu.dot_dimension_numbers<[1], [0], [0], [1], [0, 0, 1, 1], [], []>} : vector<256x16xf32>, vector<16x16xf32>, vector<256x16xf32> -> vector<256x16xf32>
    %45 = arith.addf %39, %44 : vector<256x16xf32>
    %c0_51 = arith.constant 0 : index
    %c0_52 = arith.constant 0 : index
    %46 = vector.load %arg5[%c0_51, %c0_52] : memref<1x16xf32, #tpu.memory_space<vmem>>, vector<1x16xf32>
    %47 = vector.broadcast %46 : vector<1x16xf32> to vector<256x16xf32>
    %48 = arith.addf %45, %47 : vector<256x16xf32>
    %cst_53 = arith.constant 0.000000e+00 : f32
    %49 = vector.broadcast %cst_53 : f32 to vector<256x16xf32>
    %50 = arith.maximumf %48, %49 : vector<256x16xf32>
    %51 = vector.shape_cast %50 : vector<256x16xf32> to vector<1x16x16x16xf32>
    %c0_54 = arith.constant 0 : index
    %c0_55 = arith.constant 0 : index
    %c0_56 = arith.constant 0 : index
    %c0_57 = arith.constant 0 : index
    %52 = vector.load %arg6[%c0_54, %c0_55, %c0_56, %c0_57] : memref<1x16x16x16xf32, #tpu.memory_space<vmem>>, vector<1x16x16x16xf32>
    tpu.vector_store %arg6[%c0_54, %c0_55, %c0_56, %c0_57], %51 {strides = array<i32>} : memref<1x16x16x16xf32, #tpu.memory_space<vmem>>, vector<1x16x16x16xf32>,
    return
  }
  func.func @transform_0(%arg0: i32) -> (i32, i32, i32, i32) {
    %c0_i32 = arith.constant 0 : i32
    %c0_i32_0 = arith.constant 0 : i32
    %c0_i32_1 = arith.constant 0 : i32
    %c0_i32_2 = arith.constant 0 : i32
    return %arg0, %c0_i32, %c0_i32_0, %c0_i32_1 : i32, i32, i32, i32
  }
  func.func @transform_1(%arg0: i32) -> (i32, i32, i32) {
    %c0_i32 = arith.constant 0 : i32
    %c0_i32_0 = arith.constant 0 : i32
    %c0_i32_1 = arith.constant 0 : i32
    %c0_i32_2 = arith.constant 0 : i32
    return %c0_i32, %c0_i32_0, %c0_i32_1 : i32, i32, i32
  }
  func.func @transform_2(%arg0: i32) -> (i32, i32) {
    %c0_i32 = arith.constant 0 : i32
    %c0_i32_0 = arith.constant 0 : i32
    %c0_i32_1 = arith.constant 0 : i32
    return %c0_i32, %c0_i32_0 : i32, i32
  }
  func.func @transform_3(%arg0: i32) -> (i32, i32, i32) {
    %c0_i32 = arith.constant 0 : i32
    %c0_i32_0 = arith.constant 0 : i32
    %c0_i32_1 = arith.constant 0 : i32
    %c0_i32_2 = arith.constant 0 : i32
    return %c0_i32, %c0_i32_0, %c0_i32_1 : i32, i32, i32
  }
  func.func @transform_4(%arg0: i32) -> (i32, i32) {
    %c0_i32 = arith.constant 0 : i32
    %c0_i32_0 = arith.constant 0 : i32
    %c0_i32_1 = arith.constant 0 : i32
    return %c0_i32, %c0_i32_0 : i32, i32
  }
  func.func @transform_5(%arg0: i32) -> (i32, i32, i32, i32) {
    %c0_i32 = arith.constant 0 : i32
    %c0_i32_0 = arith.constant 0 : i32
    %c0_i32_1 = arith.constant 0 : i32
    %c0_i32_2 = arith.constant 0 : i32
    return %arg0, %c0_i32, %c0_i32_0, %c0_i32_1 : i32, i32, i32, i32
  }
}

</mosaic_0001>

<bundles_post_ra>
// kernel: inception_forward.5
= control target key start
LH: loop header
LB: loop body
LE: loop exit
PB: predicated region body
PF: predicated region fallthrough
CT: control target
= control target key end

     0   :  { %s750_s12 = smov 0   ;;  %s752_s13 = smov 0   ;;  %s867_s0 = inlined_call_operand.vmem [shape: f32[2,16,16,16], index: 0, kind: input, shape index: {}]   ;;  %s868_s1 = inlined_call_operand.vmem [shape: f32[16,48], index: 1, kind: input, shape index: {}]   ;;  %s869_s2 = inlined_call_operand.vmem [shape: f32[1,48], index: 2, kind: input, shape index: {}]   ;;  %s870_s3 = inlined_call_operand.vmem [shape: f32[2,16,16,48], index: 3, kind: output, shape index: {}]  }
   0x1   :  { %s754_s14 = smov 0   ;;  %s756_s15 = smov 0  }
   0x2   :  { %s758_s16 = smov 0  }
   0x3 LB: > { %s22_s17 = sadd.s32 1, %s720_s14  ;;  %s25_s18 = sadd.s32 1, %s724_s15  ;;  %s728_s16 = sphi %s758_s16, %s13_s16   ;;  %s724_s15 = sphi %s756_s15, %s874_s15   ;;  %s720_s14 = sphi %s754_s14, %s873_s14   ;;  %s716_s13 = sphi %s752_s13, %s872_s13   ;;  %s712_s12 = sphi %s750_s12, %s871_s12  }
   0x4   : > { %p23_p0 = scmp.ge.s32.totalorder %s22_s17, 2  ;;  %p570_p1 = scmp.ge.s32.totalorder %s728_s16, 1 }
   0x5   : > { %p159_p2 = scmp.lt.s32.totalorder %s728_s16, 5 }
   0x6   : > { %s876_s17 = smov (%p23_p0, %s22_s17), 0  ;;  %s878_s18 = smov (!%p23_p0, %s25_s18), %s724_s15 }
   0x7   : > { %p160_p3 = pnand %p570_p1, %p159_p2  ;;  %p27_p4 = scmp.ge.s32.totalorder %s878_s18, 2 }
   0x8   : > { %v231_v0 = vld [vmem:[%s868_s1] sm:$0xff] (!%p160_p3)  ;;  %v232_v1 = vld [vmem:[%s868_s1 + $0x8] sm:$0xff] (!%p160_p3)  ;;  %s571_s23 = sshll.u32 (!%p160_p3), %s712_s12, 3  ;;  %p194_p5 = scmp.lt.s32.totalorder (!%p160_p3), %s716_s13, 1  ;;  %vm240_vm0 = vcmask (!%p160_p3), 130048   ;;  %vm450_vm1 = vcmask (!%p160_p3), 392192  }
   0x9   : > { %s880_s18 = smov (%p27_p4, %s878_s18), 0  ;;  %163 = sbr.rel (%p160_p3) target bundleno = 254 (0xfe), region = 32 }
   0xa   : > { %v644_v2 = vpack.c.bf16 (!%p160_p3), %v232_v1, %v231_v0  ;;  %p196_p6 = scmp.lt.s32.totalorder (!%p160_p3), %s571_s23, 15  ;;  %v579_v19 = vld [vmem:[%s869_s2] ss:$0 sm:$0xff] (!%p160_p3) }
   0xc   : > { %645 = vmatprep.subr.bf16.mxu0 (!%p160_p3), %v644_v2  ;;  %648 = vmatprep.subr.bf16.mxu1 (!%p160_p3), %v644_v2 }
   0xd   : > { %647 = vmatpush3.bf16.msra.mxu0 (!%p160_p3), %v644_v2  ;;  %649 = vmatpush3.bf16.msra.mxu1 (!%p160_p3), %v644_v2 }
  0x10   : > { %s882_s13 = smov (!%p194_p5, %s716_s13), 1  ;;  %s884_s23 = smov (!%p196_p6, %s571_s23), 15 }
  0x11   : > { %s573_s24 = sshll.u32 %s882_s13, 5  ;;  %s572_s25 = sshll.u32 %s884_s23, 1 }
  0x12   : > { %s786_s26 = sadd.s32 %s573_s24, %s572_s25 }
  0x13   : > { %s574_s27 = sshll.u32 %s786_s26, 3 }
  0x14   : > { %s202_s30 = scalar_lea.vmem %s867_s0, %s574_s27  ;;  %s818_s8 = scalar_lea.vmem %s870_s3, %s574_s27 }
  0x15   : > { %v215_v3 = vld [vmem:[%s202_s30] sm:$0xff]  ;;  %v216_v5 = vld [vmem:[%s202_s30 + $0x8] sm:$0xff]  ;;  %v217_v7 = vld [vmem:[%s202_s30 + $0x10] sm:$0xff] }
  0x16   : > { %v223_v4 = vld [vmem:[%s202_s30 + $0x40] sm:$0xff]  ;;  %620 = vmatprep.mubr.msk.f32.mxu0 %vm240_vm0, %v215_v3  ;;  %v224_v6 = vld [vmem:[%s202_s30 + $0x48] sm:$0xff]  ;;  %v225_v8 = vld [vmem:[%s202_s30 + $0x50] sm:$0xff] }
  0x17   : > { %632 = vmatprep.mubr.msk.f32.mxu1 %vm240_vm0, %v223_v4  ;;  %621 = vmatmul.mubr.msk.f32.vlgmr.msra.gmra.mrb[0].mxu0 %vm240_vm0, %v216_v5  ;;  %v218_v9 = vld [vmem:[%s202_s30 + $0x18] sm:$0xff]  ;;  %v219_v11 = vld [vmem:[%s202_s30 + $0x20] sm:$0xff]  ;;  %v220_v13 = vld [vmem:[%s202_s30 + $0x28] sm:$0xff] }
  0x18   : > { %633 = vmatmul.mubr.msk.f32.vlgmr.msra.gmra.mrb[0].mxu1 %vm240_vm0, %v224_v6  ;;  %623 = vmatprep.mubr.msk.f32.mxu0 %vm240_vm0, %v217_v7  ;;  %v226_v10 = vld [vmem:[%s202_s30 + $0x58] sm:$0xff]  ;;  %v227_v12 = vld [vmem:[%s202_s30 + $0x60] sm:$0xff]  ;;  %v228_v14 = vld [vmem:[%s202_s30 + $0x68] sm:$0xff] }
  0x19   : > { %635 = vmatprep.mubr.msk.f32.mxu1 %vm240_vm0, %v225_v8  ;;  %v221_v15 = vld [vmem:[%s202_s30 + $0x30] sm:$0xff]  ;;  %v222_v17 = vld [vmem:[%s202_s30 + $0x38] sm:$0xff] }
  0x1a   : > { %v229_v16 = vld [vmem:[%s202_s30 + $0x70] sm:$0xff]  ;;  %v230_v18 = vld [vmem:[%s202_s30 + $0x78] sm:$0xff] }
  0x1b   : > { %624 = vmatmul.mubr.msk.f32.gmra.mrb[2].mxu0 %vm240_vm0, %v218_v9 }
  0x1c   : > { %636 = vmatmul.mubr.msk.f32.gmra.mrb[2].mxu1 %vm240_vm0, %v226_v10  ;;  %626 = vmatprep.mubr.msk.f32.mxu0 %vm240_vm0, %v219_v11 }
  0x1d   : > { %638 = vmatprep.mubr.msk.f32.mxu1 %vm240_vm0, %v227_v12 }
  0x1f   : > { %627 = vmatmul.mubr.msk.f32.gmra.mrb[4].mxu0 %vm240_vm0, %v220_v13 }
  0x20   : > { %639 = vmatmul.mubr.msk.f32.gmra.mrb[4].mxu1 %vm240_vm0, %v228_v14  ;;  %629 = vmatprep.mubr.msk.f32.mxu0 %vm240_vm0, %v221_v15 }
  0x21   : > { %641 = vmatprep.mubr.msk.f32.mxu1 %vm240_vm0, %v229_v16 }
  0x23   : > { %630 = vmatmul.mubr.msk.f32.gmra.mrb[6].mxu0 %vm240_vm0, %v222_v17 }
  0x24   : > { %642 = vmatmul.mubr.msk.f32.gmra.mrb[6].mxu1 %vm240_vm0, %v230_v18 }
  0xea   : > { %v622_v20 = vpop.f32.mrb[0].mxu0 }
  0xeb   : > { %v634_v21 = vpop.f32.mrb[0].mxu1  ;;  %v361_v22 = vadd.f32 %v622_v20, %v579_v19  ;;  %v355_v24 = vpop.f32.mrb[1].mxu0 }
  0xec   : > { %v401_v23 = vadd.f32 %v634_v21, %v579_v19  ;;  %v395_v25 = vpop.f32.mrb[1].mxu1  ;;  %v356_v26 = vadd.f32 %v579_v19, %v355_v24 }
  0xed   : > { %v396_v27 = vadd.f32 %v579_v19, %v395_v25  ;;  %v435_v28 = vmax.f32 %v361_v22, 0.0 }
  0xee   : > { %v443_v29 = vmax.f32 %v401_v23, 0.0  ;;  %v434_v30 = vmax.f32 %v356_v26, 0.0  ;;  %v625_v32 = vpop.f32.mrb[2].mxu0 }
  0xef   : > { %v442_v31 = vmax.f32 %v396_v27, 0.0  ;;  %v637_v33 = vpop.f32.mrb[2].mxu1  ;;  %452 = vst.msk [vmem:[%s818_s8 + $0x8] sm:$0xff] %vm450_vm1, %v435_v28  ;;  %v371_v34 = vadd.f32 %v625_v32, %v579_v19  ;;  %v365_v36 = vpop.f32.mrb[3].mxu0 }
  0xf0   : > { %460 = vst.msk [vmem:[%s818_s8 + $0x48] sm:$0xff] %vm450_vm1, %v443_v29  ;;  %v411_v35 = vadd.f32 %v637_v33, %v579_v19  ;;  %v405_v37 = vpop.f32.mrb[3].mxu1  ;;  %451 = vst.msk [vmem:[%s818_s8] sm:$0xff] %vm450_vm1, %v434_v30  ;;  %v366_v38 = vadd.f32 %v579_v19, %v365_v36 }
  0xf1   : > { %459 = vst.msk [vmem:[%s818_s8 + $0x40] sm:$0xff] %vm450_vm1, %v442_v31  ;;  %v406_v39 = vadd.f32 %v579_v19, %v405_v37  ;;  %v437_v40 = vmax.f32 %v371_v34, 0.0 }
  0xf2   : > { %v445_v41 = vmax.f32 %v411_v35, 0.0  ;;  %v436_v42 = vmax.f32 %v366_v38, 0.0  ;;  %v628_v44 = vpop.f32.mrb[4].mxu0 }
  0xf3   : > { %v444_v43 = vmax.f32 %v406_v39, 0.0  ;;  %v640_v45 = vpop.f32.mrb[4].mxu1  ;;  %454 = vst.msk [vmem:[%s818_s8 + $0x18] sm:$0xff] %vm450_vm1, %v437_v40  ;;  %v381_v46 = vadd.f32 %v628_v44, %v579_v19  ;;  %v375_v48 = vpop.f32.mrb[5].mxu0 }
  0xf4   : > { %462 = vst.msk [vmem:[%s818_s8 + $0x58] sm:$0xff] %vm450_vm1, %v445_v41  ;;  %v421_v47 = vadd.f32 %v640_v45, %v579_v19  ;;  %v415_v49 = vpop.f32.mrb[5].mxu1  ;;  %453 = vst.msk [vmem:[%s818_s8 + $0x10] sm:$0xff] %vm450_vm1, %v436_v42  ;;  %v376_v50 = vadd.f32 %v579_v19, %v375_v48 }
  0xf5   : > { %461 = vst.msk [vmem:[%s818_s8 + $0x50] sm:$0xff] %vm450_vm1, %v444_v43  ;;  %v416_v51 = vadd.f32 %v579_v19, %v415_v49  ;;  %v439_v52 = vmax.f32 %v381_v46, 0.0 }
  0xf6   : > { %v447_v53 = vmax.f32 %v421_v47, 0.0  ;;  %v438_v54 = vmax.f32 %v376_v50, 0.0  ;;  %v631_v56 = vpop.f32.mrb[6].mxu0 }
  0xf7   : > { %v446_v55 = vmax.f32 %v416_v51, 0.0  ;;  %v643_v57 = vpop.f32.mrb[6].mxu1  ;;  %456 = vst.msk [vmem:[%s818_s8 + $0x28] sm:$0xff] %vm450_vm1, %v439_v52  ;;  %v391_v58 = vadd.f32 %v631_v56, %v579_v19  ;;  %v385_v60 = vpop.f32.mrb[7].mxu0 }
  0xf8   : > { %464 = vst.msk [vmem:[%s818_s8 + $0x68] sm:$0xff] %vm450_vm1, %v447_v53  ;;  %v431_v59 = vadd.f32 %v643_v57, %v579_v19  ;;  %v425_v61 = vpop.f32.mrb[7].mxu1  ;;  %455 = vst.msk [vmem:[%s818_s8 + $0x20] sm:$0xff] %vm450_vm1, %v438_v54  ;;  %v386_v62 = vadd.f32 %v579_v19, %v385_v60 }
  0xf9   : > { %463 = vst.msk [vmem:[%s818_s8 + $0x60] sm:$0xff] %vm450_vm1, %v446_v55  ;;  %v426_v63 = vadd.f32 %v579_v19, %v425_v61  ;;  %v441_v0 = vmax.f32 %v391_v58, 0.0 }
  0xfa   : > { %v449_v1 = vmax.f32 %v431_v59, 0.0  ;;  %v440_v2 = vmax.f32 %v386_v62, 0.0 }
  0xfb   : > { %v448_v3 = vmax.f32 %v426_v63, 0.0  ;;  %458 = vst.msk [vmem:[%s818_s8 + $0x38] sm:$0xff] %vm450_vm1, %v441_v0 }
  0xfc   : > { %466 = vst.msk [vmem:[%s818_s8 + $0x78] sm:$0xff] %vm450_vm1, %v449_v1  ;;  %457 = vst.msk [vmem:[%s818_s8 + $0x30] sm:$0xff] %vm450_vm1, %v440_v2 }
  0xfd   : > { %465 = vst.msk [vmem:[%s818_s8 + $0x70] sm:$0xff] %vm450_vm1, %v448_v3 }
  0xfe PF: > { %s13_s16 = sadd.s32 1, %s728_s16   ;;  %s871_s12 = smov %s720_s14 }
  0xff   : > { %p10_p7 = scmp.ge.s32.totalorder %s13_s16, 6   ;;  %s872_s13 = smov %s724_s15 }
 0x100   : > { %s873_s14 = smov %s876_s17  ;;  %s874_s15 = smov %s880_s18 }
 0x101   :  { %12 = sbr.rel (!%p10_p7) target bundleno = 3 (0x3), region = 62 }

// kernel: inception_forward.9
= control target key start
LH: loop header
LB: loop body
LE: loop exit
PB: predicated region body
PF: predicated region fallthrough
CT: control target
= control target key end

     0   :  { %s1564_s12 = smov 0   ;;  %s1908_s0 = inlined_call_operand.vmem [shape: f32[2,18,18,16], index: 0, kind: input, shape index: {}]   ;;  %s1909_s1 = inlined_call_operand.vmem [shape: f32[16,16], index: 1, kind: input, shape index: {}]   ;;  %s1910_s2 = inlined_call_operand.vmem [shape: f32[1,16], index: 2, kind: input, shape index: {}]   ;;  %s1911_s3 = inlined_call_operand.vmem [shape: f32[2,16,16,16], index: 3, kind: output, shape index: {}]  }
   0x1 LB: > { %s1199_s13 = sadd.s32 4294967295, %s1542_s12   ;;  %p1203_p0 = scmp.ge.s32.totalorder %s1542_s12, 1  ;;  %s1542_s12 = sphi %s1564_s12, %s13_s12  }
   0x2   : > { %p137_p1 = scmp.lt.s32.totalorder %s1542_s12, 3 }
   0x4   : > { %p138_p2 = pnand %p1203_p0, %p137_p1 }
   0x5   : > { %v749_v0 = vld [vmem:[%s1909_s1] sm:$0xff] (!%p138_p2)  ;;  %v750_v1 = vld [vmem:[%s1909_s1 + $0x8] sm:$0xff] (!%p138_p2)  ;;  %p161_p3 = scmp.lt.s32.totalorder (!%p138_p2), %s1199_s13, 1  ;;  %vm758_vm0 = vcmask (!%p138_p2), 130048  }
   0x6   : > { %141 = sbr.rel (%p138_p2) target bundleno = 321 (0x141), region = 32  ;;  %v1521_v2 = vpack.c.bf16 (!%p138_p2), %v750_v1, %v749_v0 }
   0x8   : > { %1522 = vmatprep.subr.bf16.mxu0 (!%p138_p2), %v1521_v2  ;;  %1525 = vmatprep.subr.bf16.mxu1 (!%p138_p2), %v1521_v2 }
   0x9   : > { %1524 = vmatpush3.bf16.msra.mxu0 (!%p138_p2), %v1521_v2  ;;  %1526 = vmatpush3.bf16.msra.mxu1 (!%p138_p2), %v1521_v2 }
   0xd   : > { %s1913_s13 = smov (!%p161_p3, %s1199_s13), 1 }
   0xe   : > { %s1527_s18 = smul.u32 432, %s1913_s13  ;;  %s1434_s24 = sshll.u32 %s1913_s13, 8 }
   0xf   : > { %s1808_s27 = scalar_lea.vmem %s1911_s3, %s1434_s24 }
  0x10   : > { %s1584_s21 = scalar_lea.vmem %s1908_s0, %s1527_s18 }
  0x11   : > { %v171_v3 = vld [vmem:[%s1584_s21] sm:$0xff]  ;;  %v1207_v7 = vld [vmem:[%s1584_s21 + $0x18] sm:$0xff]  ;;  %v1303_v10 = vld [vmem:[%s1584_s21 + $0x30] sm:$0xff] }
  0x12   : > { %v203_v4 = vld [vmem:[%s1584_s21 + $0x1] sm:$0xff]  ;;  %v1239_v8 = vld [vmem:[%s1584_s21 + $0x19] sm:$0xff]  ;;  %v1335_v11 = vld [vmem:[%s1584_s21 + $0x31] sm:$0xff] }
  0x13   : > { %v267_v5 = vld [vmem:[%s1584_s21 + $0x2] sm:$0xff]  ;;  %v235_v6 = vadd.f32 %v203_v4, %v171_v3  ;;  %v1271_v9 = vld [vmem:[%s1584_s21 + $0x1a] sm:$0xff]  ;;  %v1595_v12 = vld [vmem:[%s1584_s21 + $0x32] sm:$0xff]  ;;  %v237_v13 = vadd.f32 %v1239_v8, %v1207_v7  ;;  %v239_v18 = vadd.f32 %v1335_v11, %v1303_v10 }
  0x14   : > { %v1598_v15 = vld [vmem:[%s1584_s21 + $0xc0] sm:$0xff]  ;;  %v1223_v20 = vld [vmem:[%s1584_s21 + $0xd8] sm:$0xff]  ;;  %v1319_v25 = vld [vmem:[%s1584_s21 + $0xf0] sm:$0xff] }
  0x15   : > { %v299_v14 = vadd.f32 %v267_v5, %v235_v6  ;;  %v1601_v16 = vld [vmem:[%s1584_s21 + $0xc1] sm:$0xff]  ;;  %v1255_v21 = vld [vmem:[%s1584_s21 + $0xd9] sm:$0xff]  ;;  %v301_v23 = vadd.f32 %v1271_v9, %v237_v13  ;;  %v1351_v26 = vld [vmem:[%s1584_s21 + $0xf1] sm:$0xff]  ;;  %v1624_v41 = vadd.f32 %v1595_v12, %v239_v18 }
  0x16   : > { %v1604_v17 = vld [vmem:[%s1584_s21 + $0xc2] sm:$0xff]  ;;  %v251_v19 = vadd.f32 %v1601_v16, %v1598_v15  ;;  %v1287_v22 = vld [vmem:[%s1584_s21 + $0xda] sm:$0xff]  ;;  %v1614_v27 = vld [vmem:[%s1584_s21 + $0xf2] sm:$0xff]  ;;  %v253_v28 = vadd.f32 %v1255_v21, %v1223_v20  ;;  %v255_v34 = vadd.f32 %v1351_v26, %v1319_v25 }
  0x17   : > { %v364_v24 = vadd.f32 %v1207_v7, %v299_v14  ;;  %v172_v30 = vld [vmem:[%s1584_s21 + $0x8] sm:$0xff]  ;;  %v366_v33 = vadd.f32 %v1303_v10, %v301_v23  ;;  %v1208_v37 = vld [vmem:[%s1584_s21 + $0x20] sm:$0xff]  ;;  %v1304_v43 = vld [vmem:[%s1584_s21 + $0x38] sm:$0xff] }
  0x18   : > { %v315_v29 = vadd.f32 %v1604_v17, %v251_v19  ;;  %v204_v31 = vld [vmem:[%s1584_s21 + $0x9] sm:$0xff]  ;;  %v1240_v38 = vld [vmem:[%s1584_s21 + $0x21] sm:$0xff]  ;;  %v317_v40 = vadd.f32 %v1287_v22, %v253_v28  ;;  %v1336_v44 = vld [vmem:[%s1584_s21 + $0x39] sm:$0xff]  ;;  %v1632_v48 = vadd.f32 %v1614_v27, %v255_v34 }
  0x19   : > { %v268_v32 = vld [vmem:[%s1584_s21 + $0xa] sm:$0xff]  ;;  %v428_v35 = vadd.f32 %v1239_v8, %v364_v24  ;;  %v236_v36 = vadd.f32 %v204_v31, %v172_v30  ;;  %v1272_v39 = vld [vmem:[%s1584_s21 + $0x22] sm:$0xff]  ;;  %v1629_v45 = vld [vmem:[%s1584_s21 + $0x3a] sm:$0xff]  ;;  %v430_v46 = vadd.f32 %v1335_v11, %v366_v33  ;;  %v238_v47 = vadd.f32 %v1240_v38, %v1208_v37 }
  0x1a   : > { %v380_v42 = vadd.f32 %v1223_v20, %v315_v29  ;;  %v1635_v51 = vld [vmem:[%s1584_s21 + $0xc8] sm:$0xff]  ;;  %v382_v54 = vadd.f32 %v1319_v25, %v317_v40  ;;  %v240_v55 = vadd.f32 %v1336_v44, %v1304_v43  ;;  %v1224_v58 = vld [vmem:[%s1584_s21 + $0xe0] sm:$0xff]  ;;  %v1320_v13 = vld [vmem:[%s1584_s21 + $0xf8] sm:$0xff] }
  0x1b   : > { %v492_v49 = vadd.f32 %v1271_v9, %v428_v35  ;;  %v300_v50 = vadd.f32 %v268_v32, %v236_v36  ;;  %v1638_v52 = vld [vmem:[%s1584_s21 + $0xc9] sm:$0xff]  ;;  %v1256_v59 = vld [vmem:[%s1584_s21 + $0xe1] sm:$0xff]  ;;  %v494_v60 = vadd.f32 %v1595_v12, %v430_v46  ;;  %v302_v61 = vadd.f32 %v1272_v39, %v238_v47 }
  0x1c   : > { %v1641_v53 = vld [vmem:[%s1584_s21 + $0xca] sm:$0xff]  ;;  %v444_v56 = vadd.f32 %v1255_v21, %v380_v42  ;;  %v252_v57 = vadd.f32 %v1638_v52, %v1635_v51  ;;  %v1288_v0 = vld [vmem:[%s1584_s21 + $0xe2] sm:$0xff]  ;;  %v446_v1 = vadd.f32 %v1351_v26, %v382_v54  ;;  %v254_v2 = vadd.f32 %v1256_v59, %v1224_v58 }
  0x1d   : > { %v557_v62 = vadd.f32 %v1303_v10, %v492_v49  ;;  %v365_v63 = vadd.f32 %v1208_v37, %v300_v50  ;;  %v1651_v5 = vld [vmem:[%s1584_s21 + $0x48] sm:$0xff]  ;;  %v367_v6 = vadd.f32 %v1304_v43, %v302_v61  ;;  %v304_v7 = vadd.f32 %v1629_v45, %v240_v55  ;;  %v1352_v37 = vld [vmem:[%s1584_s21 + $0xf9] sm:$0xff] }
  0x1e   : > { %v508_v3 = vadd.f32 %v1287_v22, %v444_v56  ;;  %v316_v4 = vadd.f32 %v1641_v53, %v252_v57  ;;  %v559_v10 = vadd.f32 %v1651_v5, %v494_v60  ;;  %v510_v14 = vadd.f32 %v1614_v27, %v446_v1  ;;  %v1337_v20 = vld [vmem:[%s1584_s21 + $0x49] sm:$0xff]  ;;  %v1384_v50 = vld [vmem:[%s1584_s21 + $0xfa] sm:$0xff] }
  0x1f   : > { %v621_v8 = vadd.f32 %v1335_v11, %v557_v62  ;;  %v429_v9 = vadd.f32 %v1240_v38, %v365_v63  ;;  %v1659_v21 = vld [vmem:[%s1584_s21 + $0x108] sm:$0xff]  ;;  %v431_v22 = vadd.f32 %v1336_v44, %v367_v6  ;;  %v318_v23 = vadd.f32 %v1288_v0, %v254_v2  ;;  %v1370_v62 = vld [vmem:[%s1584_s21 + $0x52] sm:$0xff] }
  0x20   : > { %v573_v18 = vadd.f32 %v1319_v25, %v508_v3  ;;  %v381_v19 = vadd.f32 %v1224_v58, %v316_v4  ;;  %v623_v28 = vadd.f32 %v1337_v20, %v559_v10  ;;  %v575_v29 = vadd.f32 %v1659_v21, %v510_v14  ;;  %v1664_v32 = vld [vmem:[%s1584_s21 + $0x4a] sm:$0xff] }
  0x21   : > { %v685_v24 = vadd.f32 %v1595_v12, %v621_v8  ;;  %v493_v11 = vadd.f32 %v1272_v39, %v429_v9  ;;  %v1353_v25 = vld [vmem:[%s1584_s21 + $0x109] sm:$0xff]  ;;  %v495_v33 = vadd.f32 %v1629_v45, %v431_v22  ;;  %v383_v34 = vadd.f32 %v1320_v13, %v318_v23  ;;  %v1354_v6 = vld [vmem:[%s1584_s21 + $0x111] sm:$0xff] }
  0x22   : > { %v637_v30 = vadd.f32 %v1351_v26, %v573_v18  ;;  %v445_v31 = vadd.f32 %v1256_v59, %v381_v19  ;;  %v687_v12 = vadd.f32 %v1664_v32, %v623_v28  ;;  %v639_v38 = vadd.f32 %v1353_v25, %v575_v29  ;;  %v1306_v39 = vld [vmem:[%s1584_s21 + $0x50] sm:$0xff]  ;;  %v1307_v19 = vld [vmem:[%s1584_s21 + $0x60] sm:$0xff] }
  0x23   : > { %v717_v35 = vmul.f32 0.11111111, %v685_v24  ;;  %v558_v36 = vadd.f32 %v1304_v43, %v493_v11  ;;  %v1385_v26 = vld [vmem:[%s1584_s21 + $0x10a] sm:$0xff]  ;;  %v560_v46 = vadd.f32 %v1306_v39, %v495_v33  ;;  %v447_v47 = vadd.f32 %v1352_v37, %v383_v34  ;;  %v1386_v22 = vld [vmem:[%s1584_s21 + $0x112] sm:$0xff]  ;;  %v1339_v29 = vld [vmem:[%s1584_s21 + $0x61] sm:$0xff] }
  0x24   : > { %v701_v40 = vadd.f32 %v1614_v27, %v637_v30  ;;  %v509_v42 = vadd.f32 %v1288_v0, %v445_v31  ;;  %v719_v54 = vmul.f32 0.11111111, %v687_v12  ;;  %v703_v55 = vadd.f32 %v1385_v26, %v639_v38  ;;  %v1338_v43 = vld [vmem:[%s1584_s21 + $0x51] sm:$0xff]  ;;  %v1323_v30 = vld [vmem:[%s1584_s21 + $0x120] sm:$0xff] }
  0x25   : > { %1473 = vmatprep.mubr.msk.f32.mxu0 %vm758_vm0, %v717_v35  ;;  %v622_v49 = vadd.f32 %v1336_v44, %v558_v36  ;;  %v368_v56 = vadd.f32 %v1651_v5, %v1624_v41  ;;  %v624_v27 = vadd.f32 %v1338_v43, %v560_v46  ;;  %v511_v59 = vadd.f32 %v1384_v50, %v447_v47  ;;  %v1322_v63 = vld [vmem:[%s1584_s21 + $0x110] sm:$0xff]  ;;  %v1308_v36 = vld [vmem:[%s1584_s21 + $0x68] sm:$0xff] }
  0x26   : > { %v733_v57 = vmul.f32 0.11111111, %v701_v40  ;;  %v574_v58 = vadd.f32 %v1320_v13, %v509_v42  ;;  %v735_v61 = vmul.f32 0.11111111, %v703_v55  ;;  %v384_v44 = vadd.f32 %v1659_v21, %v1632_v48  ;;  %v1355_v38 = vld [vmem:[%s1584_s21 + $0x121] sm:$0xff]  ;;  %v1340_v47 = vld [vmem:[%s1584_s21 + $0x69] sm:$0xff] }
  0x27   : > { %v686_v60 = vadd.f32 %v1629_v45, %v622_v49  ;;  %v432_v0 = vadd.f32 %v1337_v20, %v368_v56  ;;  %v688_v41 = vadd.f32 %v1370_v62, %v624_v27  ;;  %v576_v2 = vadd.f32 %v1322_v63, %v511_v59  ;;  %v1372_v27 = vld [vmem:[%s1584_s21 + $0x6a] sm:$0xff] }
  0x28   : > { %1497 = vmatprep.mubr.msk.f32.mxu1 %vm758_vm0, %v733_v57  ;;  %v638_v1 = vadd.f32 %v1352_v37, %v574_v58  ;;  %v369_v3 = vadd.f32 %v1306_v39, %v304_v7  ;;  %v448_v45 = vadd.f32 %v1353_v25, %v384_v44  ;;  %v256_v9 = vadd.f32 %v1352_v37, %v1320_v13  ;;  %v1324_v59 = vld [vmem:[%s1584_s21 + $0x128] sm:$0xff] }
  0x29   : > { %v718_v4 = vmul.f32 0.11111111, %v686_v60  ;;  %v496_v8 = vadd.f32 %v1664_v32, %v432_v0  ;;  %v720_v14 = vmul.f32 0.11111111, %v688_v41  ;;  %v640_v18 = vadd.f32 %v1354_v6, %v576_v2 }
  0x2a   : > { %v702_v10 = vadd.f32 %v1384_v50, %v638_v1  ;;  %v433_v48 = vadd.f32 %v1338_v43, %v369_v3  ;;  %v512_v24 = vadd.f32 %v1385_v26, %v448_v45  ;;  %v320_v7 = vadd.f32 %v1384_v50, %v256_v9  ;;  %v1387_v50 = vld [vmem:[%s1584_s21 + $0x122] sm:$0xff]  ;;  %v1325_v9 = vld [vmem:[%s1584_s21 + $0x138] sm:$0xff] }
  0x2b   : > { %1474 = vmatmul.mubr.msk.f32.vlgmr.msra.gmra.mrb[0].mxu0 %vm758_vm0, %v718_v4  ;;  %v561_v23 = vadd.f32 %v1307_v19, %v496_v8  ;;  %v241_v11 = vadd.f32 %v1337_v20, %v1651_v5  ;;  %v704_v13 = vadd.f32 %v1386_v22, %v640_v18  ;;  %v257_v33 = vadd.f32 %v1353_v25, %v1659_v21  ;;  %v1371_v20 = vld [vmem:[%s1584_s21 + $0x62] sm:$0xff]  ;;  %v1309_v8 = vld [vmem:[%s1584_s21 + $0x78] sm:$0xff] }
  0x2c   : > { %v734_v28 = vmul.f32 0.11111111, %v702_v10  ;;  %1476 = vmatprep.mubr.msk.f32.mxu0 %vm758_vm0, %v719_v54  ;;  %v497_v31 = vadd.f32 %v1370_v62, %v433_v48  ;;  %v577_v35 = vadd.f32 %v1323_v30, %v512_v24  ;;  %v385_v37 = vadd.f32 %v1322_v63, %v320_v7  ;;  %v1356_v3 = vld [vmem:[%s1584_s21 + $0x129] sm:$0xff] }
  0x2d   : > { %v625_v34 = vadd.f32 %v1339_v29, %v561_v23  ;;  %v305_v12 = vadd.f32 %v1664_v32, %v241_v11  ;;  %v736_v5 = vmul.f32 0.11111111, %v704_v13  ;;  %v321_v42 = vadd.f32 %v1385_v26, %v257_v33  ;;  %v1388_v48 = vld [vmem:[%s1584_s21 + $0x12a] sm:$0xff]  ;;  %v1341_v11 = vld [vmem:[%s1584_s21 + $0x79] sm:$0xff] }
  0x2e   : > { %1498 = vmatmul.mubr.msk.f32.vlgmr.msra.gmra.mrb[0].mxu1 %vm758_vm0, %v734_v28  ;;  %v562_v40 = vadd.f32 %v1308_v36, %v497_v31  ;;  %v242_v46 = vadd.f32 %v1338_v43, %v1306_v39  ;;  %v641_v25 = vadd.f32 %v1355_v38, %v577_v35  ;;  %v449_v49 = vadd.f32 %v1354_v6, %v385_v37  ;;  %v1357_v28 = vld [vmem:[%s1584_s21 + $0x139] sm:$0xff] }
  0x2f   : > { %1500 = vmatprep.mubr.msk.f32.mxu1 %vm758_vm0, %v735_v61  ;;  %1477 = vmatmul.mubr.msk.f32.gmra.mrb[2].mxu0 %vm758_vm0, %v720_v14  ;;  %v689_v21 = vadd.f32 %v1371_v20, %v625_v34  ;;  %v370_v54 = vadd.f32 %v1307_v19, %v305_v12  ;;  %v386_v55 = vadd.f32 %v1323_v30, %v321_v42  ;;  %v1310_v13 = vld [vmem:[%s1584_s21 + $0x80] sm:$0xff] }
  0x30   : > { %v626_v32 = vadd.f32 %v1340_v47, %v562_v40  ;;  %v306_v56 = vadd.f32 %v1370_v62, %v242_v46  ;;  %v705_v58 = vadd.f32 %v1387_v50, %v641_v25  ;;  %v513_v26 = vadd.f32 %v1386_v22, %v449_v49 }
  0x31   : > { %v721_v57 = vmul.f32 0.11111111, %v689_v21  ;;  %v258_v39 = vadd.f32 %v1354_v6, %v1322_v63  ;;  %v434_v60 = vadd.f32 %v1339_v29, %v370_v54  ;;  %v450_v61 = vadd.f32 %v1355_v38, %v386_v55 }
  0x32   : > { %1501 = vmatmul.mubr.msk.f32.gmra.mrb[2].mxu1 %vm758_vm0, %v736_v5  ;;  %v690_v43 = vadd.f32 %v1372_v27, %v626_v32  ;;  %v371_v0 = vadd.f32 %v1308_v36, %v306_v56  ;;  %v737_v44 = vmul.f32 0.11111111, %v705_v58  ;;  %v578_v1 = vadd.f32 %v1324_v59, %v513_v26  ;;  %v1373_v5 = vld [vmem:[%s1584_s21 + $0x7a] sm:$0xff] }
  0x33   : > { %1479 = vmatprep.mubr.msk.f32.mxu0 %vm758_vm0, %v721_v57  ;;  %v322_v62 = vadd.f32 %v1386_v22, %v258_v39  ;;  %v243_v41 = vadd.f32 %v1339_v29, %v1307_v19  ;;  %v498_v4 = vadd.f32 %v1371_v20, %v434_v60  ;;  %v514_v63 = vadd.f32 %v1387_v50, %v450_v61  ;;  %v1358_v26 = vld [vmem:[%s1584_s21 + $0x141] sm:$0xff]  ;;  %v1311_v39 = vld [vmem:[%s1584_s21 + $0x90] sm:$0xff] }
  0x34   : > { %v722_v2 = vmul.f32 0.11111111, %v690_v43  ;;  %v435_v6 = vadd.f32 %v1340_v47, %v371_v0  ;;  %1503 = vmatprep.mubr.msk.f32.mxu1 %vm758_vm0, %v737_v44  ;;  %v642_v45 = vadd.f32 %v1356_v3, %v578_v1  ;;  %v259_v18 = vadd.f32 %v1355_v38, %v1323_v30  ;;  %v1342_v38 = vld [vmem:[%s1584_s21 + $0x81] sm:$0xff] }
  0x35   : > { %v387_v10 = vadd.f32 %v1324_v59, %v322_v62  ;;  %v307_v14 = vadd.f32 %v1371_v20, %v243_v41  ;;  %v563_v19 = vadd.f32 %v1309_v8, %v498_v4  ;;  %v579_v22 = vadd.f32 %v1325_v9, %v514_v63  ;;  %v1389_v20 = vld [vmem:[%s1584_s21 + $0x13a] sm:$0xff]  ;;  %v1343_v62 = vld [vmem:[%s1584_s21 + $0x91] sm:$0xff] }
  0x36   : > { %1480 = vmatmul.mubr.msk.f32.gmra.mrb[4].mxu0 %vm758_vm0, %v722_v2  ;;  %v499_v23 = vadd.f32 %v1372_v27, %v435_v6  ;;  %v244_v24 = vadd.f32 %v1340_v47, %v1308_v36  ;;  %v706_v7 = vadd.f32 %v1388_v48, %v642_v45  ;;  %v323_v33 = vadd.f32 %v1387_v50, %v259_v18  ;;  %v1326_v47 = vld [vmem:[%s1584_s21 + $0x140] sm:$0xff]  ;;  %v1327_v41 = vld [vmem:[%s1584_s21 + $0x150] sm:$0xff] }
  0x37   : > { %v451_v29 = vadd.f32 %v1356_v3, %v387_v10  ;;  %v372_v31 = vadd.f32 %v1309_v8, %v307_v14  ;;  %v627_v34 = vadd.f32 %v1341_v11, %v563_v19  ;;  %v643_v30 = vadd.f32 %v1357_v28, %v579_v22  ;;  %v1374_v50 = vld [vmem:[%s1584_s21 + $0x82] sm:$0xff]  ;;  %v1312_v10 = vld [vmem:[%s1584_s21 + $0x98] sm:$0xff] }
  0x38   : > { %v564_v35 = vadd.f32 %v1310_v13, %v499_v23  ;;  %v308_v37 = vadd.f32 %v1372_v27, %v244_v24  ;;  %v738_v12 = vmul.f32 0.11111111, %v706_v7  ;;  %v388_v36 = vadd.f32 %v1325_v9, %v323_v33  ;;  %v1375_v18 = vld [vmem:[%s1584_s21 + $0x92] sm:$0xff] }
  0x39   : > { %v515_v40 = vadd.f32 %v1388_v48, %v451_v29  ;;  %v436_v42 = vadd.f32 %v1341_v11, %v372_v31  ;;  %v691_v46 = vadd.f32 %v1373_v5, %v627_v34  ;;  %v707_v21 = vadd.f32 %v1389_v20, %v643_v30 }
  0x3a   : > { %v628_v25 = vadd.f32 %v1342_v38, %v564_v35  ;;  %v373_v49 = vadd.f32 %v1310_v13, %v308_v37  ;;  %1504 = vmatmul.mubr.msk.f32.gmra.mrb[4].mxu1 %vm758_vm0, %v738_v12  ;;  %v452_v55 = vadd.f32 %v1357_v28, %v388_v36  ;;  %v260_v56 = vadd.f32 %v1356_v3, %v1324_v59  ;;  %v1390_v59 = vld [vmem:[%s1584_s21 + $0x142] sm:$0xff]  ;;  %v1376_v12 = vld [vmem:[%s1584_s21 + $0x9a] sm:$0xff] }
  0x3b   : > { %v580_v32 = vadd.f32 %v1326_v47, %v515_v40  ;;  %v500_v54 = vadd.f32 %v1373_v5, %v436_v42  ;;  %v723_v57 = vmul.f32 0.11111111, %v691_v46  ;;  %v739_v58 = vmul.f32 0.11111111, %v707_v21 }
  0x3c   : > { %v692_v27 = vadd.f32 %v1374_v50, %v628_v25  ;;  %v437_v43 = vadd.f32 %v1342_v38, %v373_v49  ;;  %v516_v0 = vadd.f32 %v1389_v20, %v452_v55  ;;  %v324_v44 = vadd.f32 %v1388_v48, %v260_v56  ;;  %v1359_v48 = vld [vmem:[%s1584_s21 + $0x151] sm:$0xff]  ;;  %v1313_v55 = vld [vmem:[%s1584_s21 + $0xa8] sm:$0xff] }
  0x3d   : > { %v644_v60 = vadd.f32 %v1358_v26, %v580_v32  ;;  %v565_v61 = vadd.f32 %v1311_v39, %v500_v54  ;;  %1482 = vmatprep.mubr.msk.f32.mxu0 %vm758_vm0, %v723_v57  ;;  %1506 = vmatprep.mubr.msk.f32.mxu1 %vm758_vm0, %v739_v58  ;;  %v245_v3 = vadd.f32 %v1341_v11, %v1309_v8  ;;  %v1360_v32 = vld [vmem:[%s1584_s21 + $0x159] sm:$0xff]  ;;  %v1329_v58 = vld [vmem:[%s1584_s21 + $0x168] sm:$0xff] }
  0x3e   : > { %v724_v1 = vmul.f32 0.11111111, %v692_v27  ;;  %v501_v2 = vadd.f32 %v1374_v50, %v437_v43  ;;  %v261_v4 = vadd.f32 %v1357_v28, %v1325_v9  ;;  %v581_v45 = vadd.f32 %v1327_v41, %v516_v0  ;;  %v1344_v9 = vld [vmem:[%s1584_s21 + $0x99] sm:$0xff] }
  0x3f   : > { %v708_v63 = vadd.f32 %v1390_v59, %v644_v60  ;;  %v629_v6 = vadd.f32 %v1343_v62, %v565_v61  ;;  %v389_v14 = vadd.f32 %v1326_v47, %v324_v44  ;;  %v309_v22 = vadd.f32 %v1373_v5, %v245_v3  ;;  %v1391_v28 = vld [vmem:[%s1584_s21 + $0x152] sm:$0xff]  ;;  %v1392_v60 = vld [vmem:[%s1584_s21 + $0x15a] sm:$0xff] }
  0x40   : > { %1483 = vmatmul.mubr.msk.f32.gmra.mrb[6].mxu0 %vm758_vm0, %v724_v1  ;;  %v566_v19 = vadd.f32 %v1312_v10, %v501_v2  ;;  %v325_v23 = vadd.f32 %v1389_v20, %v261_v4  ;;  %v246_v24 = vadd.f32 %v1342_v38, %v1310_v13  ;;  %v645_v8 = vadd.f32 %v1359_v48, %v581_v45  ;;  %v1328_v38 = vld [vmem:[%s1584_s21 + $0x158] sm:$0xff]  ;;  %v1314_v2 = vld [vmem:[%s1584_s21 + $0xb0] sm:$0xff] }
  0x41   : > { %v740_v7 = vmul.f32 0.11111111, %v708_v63  ;;  %v693_v29 = vadd.f32 %v1375_v18, %v629_v6  ;;  %v453_v11 = vadd.f32 %v1358_v26, %v389_v14  ;;  %v374_v33 = vadd.f32 %v1311_v39, %v309_v22  ;;  %v1346_v22 = vld [vmem:[%s1584_s21 + $0xb1] sm:$0xff] }
  0x42   : > { %v630_v31 = vadd.f32 %v1344_v9, %v566_v19  ;;  %v390_v34 = vadd.f32 %v1327_v41, %v325_v23  ;;  %v310_v30 = vadd.f32 %v1374_v50, %v246_v24  ;;  %v709_v37 = vadd.f32 %v1391_v28, %v645_v8  ;;  %v1393_v19 = vld [vmem:[%s1584_s21 + $0x16a] sm:$0xff] }
  0x43   : > { %1507 = vmatmul.mubr.msk.f32.gmra.mrb[6].mxu1 %vm758_vm0, %v740_v7  ;;  %v725_v35 = vmul.f32 0.11111111, %v693_v29  ;;  %v517_v5 = vadd.f32 %v1390_v59, %v453_v11  ;;  %v262_v13 = vadd.f32 %v1358_v26, %v1326_v47  ;;  %v438_v40 = vadd.f32 %v1343_v62, %v374_v33 }
  0x44   : > { %v694_v20 = vadd.f32 %v1376_v12, %v630_v31  ;;  %v454_v42 = vadd.f32 %v1359_v48, %v390_v34  ;;  %v375_v36 = vadd.f32 %v1312_v10, %v310_v30  ;;  %v741_v46 = vmul.f32 0.11111111, %v709_v37 }
  0x45   : > { %1485 = vmatprep.mubr.msk.f32.mxu0 %vm758_vm0, %v725_v35  ;;  %v582_v21 = vadd.f32 %v1328_v38, %v517_v5  ;;  %v326_v25 = vadd.f32 %v1390_v59, %v262_v13  ;;  %v247_v49 = vadd.f32 %v1343_v62, %v1311_v39  ;;  %v502_v54 = vadd.f32 %v1375_v18, %v438_v40  ;;  %v1345_v59 = vld [vmem:[%s1584_s21 + $0xa9] sm:$0xff]  ;;  %v1362_v5 = vld [vmem:[%s1584_s21 + $0x171] sm:$0xff] }
  0x46   : > { %v726_v50 = vmul.f32 0.11111111, %v694_v20  ;;  %v518_v56 = vadd.f32 %v1391_v28, %v454_v42  ;;  %v439_v47 = vadd.f32 %v1344_v9, %v375_v36  ;;  %1509 = vmatprep.mubr.msk.f32.mxu1 %vm758_vm0, %v741_v46  ;;  %v263_v43 = vadd.f32 %v1359_v48, %v1327_v41  ;;  %v1361_v62 = vld [vmem:[%s1584_s21 + $0x169] sm:$0xff] }
  0x47   : > { %v646_v57 = vadd.f32 %v1360_v32, %v582_v21  ;;  %v391_v27 = vadd.f32 %v1328_v38, %v326_v25  ;;  %v311_v26 = vadd.f32 %v1375_v18, %v247_v49  ;;  %v567_v39 = vadd.f32 %v1313_v55, %v502_v54  ;;  %v1377_v48 = vld [vmem:[%s1584_s21 + $0xaa] sm:$0xff]  ;;  %v1394_v21 = vld [vmem:[%s1584_s21 + $0x172] sm:$0xff]  ;;  %v1331_v25 = vld [vmem:[%s1584_s21 + $0x180] sm:$0xff] }
  0x48   : > { %1486 = vmatmul.mubr.msk.f32.gmra.mrb[8].mxu0 %vm758_vm0, %v726_v50  ;;  %v583_v61 = vadd.f32 %v1329_v58, %v518_v56  ;;  %v503_v0 = vadd.f32 %v1376_v12, %v439_v47  ;;  %v248_v44 = vadd.f32 %v1344_v9, %v1312_v10  ;;  %v327_v63 = vadd.f32 %v1391_v28, %v263_v43  ;;  %v1330_v9 = vld [vmem:[%s1584_s21 + $0x170] sm:$0xff]  ;;  %v1221_v47 = vld [vmem:[%s1584_s21 + $0xc0] sm:$0xff] }
  0x49   : > { %v710_v1 = vadd.f32 %v1392_v60, %v646_v57  ;;  %v455_v3 = vadd.f32 %v1360_v32, %v391_v27  ;;  %v376_v4 = vadd.f32 %v1313_v55, %v311_v26  ;;  %v631_v6 = vadd.f32 %v1345_v59, %v567_v39  ;;  %v1378_v28 = vld [vmem:[%s1584_s21 + $0xb2] sm:$0xff]  ;;  %v1363_v57 = vld [vmem:[%s1584_s21 + $0x181] sm:$0xff] }
  0x4a   : > { %v647_v41 = vadd.f32 %v1361_v62, %v583_v61  ;;  %v568_v45 = vadd.f32 %v1314_v2, %v503_v0  ;;  %v312_v14 = vadd.f32 %v1376_v12, %v248_v44  ;;  %v392_v10 = vadd.f32 %v1329_v58, %v327_v63  ;;  %v1222_v0 = vld [vmem:[%s1584_s21 + $0xc8] sm:$0xff] }
  0x4b   : > { %v742_v18 = vmul.f32 0.11111111, %v710_v1  ;;  %v519_v23 = vadd.f32 %v1392_v60, %v455_v3  ;;  %v440_v24 = vadd.f32 %v1345_v59, %v376_v4  ;;  %v695_v7 = vadd.f32 %v1377_v48, %v631_v6  ;;  %v1395_v44 = vld [vmem:[%s1584_s21 + $0x182] sm:$0xff] }
  0x4c   : > { %v711_v29 = vadd.f32 %v1393_v19, %v647_v41  ;;  %v632_v8 = vadd.f32 %v1346_v22, %v568_v45  ;;  %v377_v11 = vadd.f32 %v1314_v2, %v312_v14  ;;  %v456_v34 = vadd.f32 %v1361_v62, %v392_v10  ;;  %v1254_v63 = vld [vmem:[%s1584_s21 + $0xc9] sm:$0xff] }
  0x4d   : > { %1510 = vmatmul.mubr.msk.f32.gmra.mrb[8].mxu1 %vm758_vm0, %v742_v18  ;;  %v584_v31 = vadd.f32 %v1330_v9, %v519_v23  ;;  %v504_v33 = vadd.f32 %v1377_v48, %v440_v24  ;;  %v264_v30 = vadd.f32 %v1360_v32, %v1328_v38  ;;  %v727_v35 = vmul.f32 0.11111111, %v695_v7  ;;  %v1332_v45 = vld [vmem:[%s1584_s21 + $0x188] sm:$0xff]  ;;  %v1333_v23 = vld [vmem:[%s1584_s21 + $0x198] sm:$0xff] }
  0x4e   : > { %v743_v37 = vmul.f32 0.11111111, %v711_v29  ;;  %v696_v12 = vadd.f32 %v1378_v28, %v632_v8  ;;  %v441_v13 = vadd.f32 %v1346_v22, %v377_v11  ;;  %v520_v42 = vadd.f32 %v1393_v19, %v456_v34  ;;  %v1286_v24 = vld [vmem:[%s1584_s21 + $0xca] sm:$0xff] }
  0x4f   : > { %v648_v20 = vadd.f32 %v1362_v5, %v584_v31  ;;  %v569_v40 = vadd.f32 %v504_v33, %v1598_v15  ;;  %v328_v36 = vadd.f32 %v1392_v60, %v264_v30  ;;  %1488 = vmatprep.mubr.msk.f32.mxu0 %vm758_vm0, %v727_v35  ;;  %v249_v49 = vadd.f32 %v1345_v59, %v1313_v55  ;;  %v1364_v29 = vld [vmem:[%s1584_s21 + $0x189] sm:$0xff]  ;;  %v1365_v31 = vld [vmem:[%s1584_s21 + $0x199] sm:$0xff] }
  0x50   : > { %1512 = vmatprep.mubr.msk.f32.mxu1 %vm758_vm0, %v743_v37  ;;  %v728_v46 = vmul.f32 0.11111111, %v696_v12  ;;  %v505_v38 = vadd.f32 %v1378_v28, %v441_v13  ;;  %v265_v50 = vadd.f32 %v1361_v62, %v1329_v58  ;;  %v585_v15 = vadd.f32 %v1331_v25, %v520_v42  ;;  %v1318_v33 = vld [vmem:[%s1584_s21 + $0xe0] sm:$0xff]  ;;  %v1396_v30 = vld [vmem:[%s1584_s21 + $0x18a] sm:$0xff] }
  0x51   : > { %v712_v32 = vadd.f32 %v1394_v21, %v648_v20  ;;  %v633_v54 = vadd.f32 %v569_v40, %v1601_v16  ;;  %v393_v56 = vadd.f32 %v1330_v9, %v328_v36  ;;  %v313_v26 = vadd.f32 %v1377_v48, %v249_v49  ;;  %v1253_v16 = vld [vmem:[%s1584_s21 + $0xc1] sm:$0xff] }
  0x52   : > { %1489 = vmatmul.mubr.msk.f32.gmra.mrb[10].mxu0 %vm758_vm0, %v728_v46  ;;  %v570_v27 = vadd.f32 %v505_v38, %v1635_v51  ;;  %v329_v43 = vadd.f32 %v1393_v19, %v265_v50  ;;  %v250_v60 = vadd.f32 %v1346_v22, %v1314_v2  ;;  %v649_v39 = vadd.f32 %v1363_v57, %v585_v15  ;;  %v1317_v22 = vld [vmem:[%s1584_s21 + $0xd8] sm:$0xff]  ;;  %v1350_v40 = vld [vmem:[%s1584_s21 + $0xe1] sm:$0xff] }
  0x53   : > { %v744_v55 = vmul.f32 0.11111111, %v712_v32  ;;  %v697_v58 = vadd.f32 %v633_v54, %v1604_v17  ;;  %v457_v61 = vadd.f32 %v1362_v5, %v393_v56  ;;  %v378_v59 = vadd.f32 %v1221_v47, %v313_v26  ;;  %v1285_v17 = vld [vmem:[%s1584_s21 + $0xc2] sm:$0xff]  ;;  %v1381_v13 = vld [vmem:[%s1584_s21 + $0xda] sm:$0xff] }
  0x54   : > { %v634_v1 = vadd.f32 %v570_v27, %v1638_v52  ;;  %v394_v62 = vadd.f32 %v1331_v25, %v329_v43  ;;  %v314_v3 = vadd.f32 %v1378_v28, %v250_v60  ;;  %v713_v2 = vadd.f32 %v1395_v44, %v649_v39  ;;  %v1349_v28 = vld [vmem:[%s1584_s21 + $0xd9] sm:$0xff]  ;;  %v1382_v49 = vld [vmem:[%s1584_s21 + $0xe2] sm:$0xff] }
  0x55   : > { %1513 = vmatmul.mubr.msk.f32.gmra.mrb[10].mxu1 %vm758_vm0, %v744_v55  ;;  %v729_v51 = vmul.f32 0.11111111, %v697_v58  ;;  %v521_v4 = vadd.f32 %v1394_v21, %v457_v61  ;;  %v266_v6 = vadd.f32 %v1362_v5, %v1330_v9  ;;  %v442_v14 = vadd.f32 %v1253_v16, %v378_v59  ;;  %v1397_v20 = vld [vmem:[%s1584_s21 + $0x19a] sm:$0xff]  ;;  %v1398_v43 = vld [vmem:[%s1584_s21 + $0x1a2] sm:$0xff] }
  0x56   : > { %v698_v41 = vadd.f32 %v634_v1, %v1641_v53  ;;  %v458_v52 = vadd.f32 %v1363_v57, %v394_v62  ;;  %v379_v18 = vadd.f32 %v1222_v0, %v314_v3  ;;  %v745_v48 = vmul.f32 0.11111111, %v713_v2  ;;  %v1334_v25 = vld [vmem:[%s1584_s21 + $0x1a0] sm:$0xff] }
  0x57   : > { %1491 = vmatprep.mubr.msk.f32.mxu0 %vm758_vm0, %v729_v51  ;;  %v586_v19 = vadd.f32 %v1332_v45, %v521_v4  ;;  %v330_v10 = vadd.f32 %v1394_v21, %v266_v6  ;;  %v506_v53 = vadd.f32 %v1285_v17, %v442_v14  ;;  %v1366_v56 = vld [vmem:[%s1584_s21 + $0x1a1] sm:$0xff]  ;;  %v1801_v61 = vld [vmem:[%s1910_s2] ss:$0 sm:$0xff] }
  0x58   : > { %v730_v7 = vmul.f32 0.11111111, %v698_v41  ;;  %v522_v8 = vadd.f32 %v1395_v44, %v458_v52  ;;  %v443_v9 = vadd.f32 %v1254_v63, %v379_v18  ;;  %1515 = vmatprep.mubr.msk.f32.mxu1 %vm758_vm0, %v745_v48 }
  0x59   : > { %v650_v11 = vadd.f32 %v1364_v29, %v586_v19  ;;  %v395_v34 = vadd.f32 %v1332_v45, %v330_v10  ;;  %v571_v35 = vadd.f32 %v1317_v22, %v506_v53 }
  0x5a   : > { %1492 = vmatmul.mubr.msk.f32.gmra.mrb[12].mxu0 %vm758_vm0, %v730_v7  ;;  %v587_v37 = vadd.f32 %v1333_v23, %v522_v8  ;;  %v507_v12 = vadd.f32 %v1286_v24, %v443_v9 }
  0x5b   : > { %v714_v5 = vadd.f32 %v1396_v30, %v650_v11  ;;  %v459_v42 = vadd.f32 %v1364_v29, %v395_v34  ;;  %v635_v36 = vadd.f32 %v1349_v28, %v571_v35 }
  0x5c   : > { %v651_v46 = vadd.f32 %v1365_v31, %v587_v37  ;;  %v572_v21 = vadd.f32 %v1318_v33, %v507_v12 }
  0x5d   : > { %v746_v38 = vmul.f32 0.11111111, %v714_v5  ;;  %v523_v50 = vadd.f32 %v1396_v30, %v459_v42  ;;  %v699_v32 = vadd.f32 %v1381_v13, %v635_v36 }
  0x5e   : > { %v715_v54 = vadd.f32 %v1397_v20, %v651_v46  ;;  %v636_v15 = vadd.f32 %v1350_v40, %v572_v21 }
  0x5f   : > { %1516 = vmatmul.mubr.msk.f32.gmra.mrb[12].mxu1 %vm758_vm0, %v746_v38  ;;  %v588_v47 = vadd.f32 %v1334_v25, %v523_v50  ;;  %v731_v57 = vmul.f32 0.11111111, %v699_v32 }
  0x60   : > { %v747_v27 = vmul.f32 0.11111111, %v715_v54  ;;  %v700_v26 = vadd.f32 %v1382_v49, %v636_v15 }
  0x61   : > { %v652_v60 = vadd.f32 %v1366_v56, %v588_v47  ;;  %1494 = vmatprep.mubr.msk.f32.mxu0 %vm758_vm0, %v731_v57 }
  0x62   : > { %1518 = vmatprep.mubr.msk.f32.mxu1 %vm758_vm0, %v747_v27  ;;  %v732_v55 = vmul.f32 0.11111111, %v700_v26 }
  0x63   : > { %v716_v58 = vadd.f32 %v1398_v43, %v652_v60 }
  0x64   : > { %1495 = vmatmul.mubr.msk.f32.gmra.mrb[14].mxu0 %vm758_vm0, %v732_v55 }
  0x65   : > { %v748_v39 = vmul.f32 0.11111111, %v716_v58 }
  0x67   : > { %1519 = vmatmul.mubr.msk.f32.gmra.mrb[14].mxu1 %vm758_vm0, %v748_v39 }
  0xfe   : > { %v1475_v16 = vpop.f32.mrb[0].mxu0 }
  0xff   : > { %v927_v0 = vadd.f32 %v1475_v16, %v1801_v61  ;;  %v921_v44 = vpop.f32.mrb[1].mxu0 }
 0x100   : > { %v922_v1 = vadd.f32 %v1801_v61, %v921_v44 }
 0x101   : > { %v1081_v59 = vmax.f32 %v927_v0, 0.0  ;;  %v1499_v62 = vpop.f32.mrb[0].mxu1 }
 0x102   : > { %v1007_v3 = vadd.f32 %v1499_v62, %v1801_v61  ;;  %v1080_v51 = vmax.f32 %v922_v1, 0.0  ;;  %v1001_v2 = vpop.f32.mrb[1].mxu1  ;;  %v1478_v4 = vpop.f32.mrb[2].mxu0 }
 0x103   : > { %1113 = vst.msk [vmem:[%s1808_s27 + $0x8] sm:$0xff] %vm758_vm0, %v1081_v59  ;;  %v1002_v17 = vadd.f32 %v1801_v61, %v1001_v2  ;;  %v937_v63 = vadd.f32 %v1478_v4, %v1801_v61  ;;  %v931_v6 = vpop.f32.mrb[3].mxu0 }
 0x104   : > { %v1097_v41 = vmax.f32 %v1007_v3, 0.0  ;;  %1112 = vst.msk [vmem:[%s1808_s27] sm:$0xff] %vm758_vm0, %v1080_v51  ;;  %v932_v45 = vadd.f32 %v1801_v61, %v931_v6 }
 0x105   : > { %v1096_v14 = vmax.f32 %v1002_v17, 0.0  ;;  %v1083_v52 = vmax.f32 %v937_v63, 0.0  ;;  %v1502_v18 = vpop.f32.mrb[2].mxu1 }
 0x106   : > { %1129 = vst.msk [vmem:[%s1808_s27 + $0x88] sm:$0xff] %vm758_vm0, %v1097_v41  ;;  %v1017_v48 = vadd.f32 %v1502_v18, %v1801_v61  ;;  %v1082_v19 = vmax.f32 %v932_v45, 0.0  ;;  %v1011_v22 = vpop.f32.mrb[3].mxu1 }
 0x107   : > { %1128 = vst.msk [vmem:[%s1808_s27 + $0x80] sm:$0xff] %vm758_vm0, %v1096_v14  ;;  %1115 = vst.msk [vmem:[%s1808_s27 + $0x18] sm:$0xff] %vm758_vm0, %v1083_v52  ;;  %v1012_v23 = vadd.f32 %v1801_v61, %v1011_v22 }
 0x108   : > { %v1099_v24 = vmax.f32 %v1017_v48, 0.0  ;;  %1114 = vst.msk [vmem:[%s1808_s27 + $0x10] sm:$0xff] %vm758_vm0, %v1082_v19 }
 0x109   : > { %v1098_v10 = vmax.f32 %v1012_v23, 0.0  ;;  %v1481_v7 = vpop.f32.mrb[4].mxu0 }
 0x10a   : > { %1131 = vst.msk [vmem:[%s1808_s27 + $0x98] sm:$0xff] %vm758_vm0, %v1099_v24  ;;  %v947_v29 = vadd.f32 %v1481_v7, %v1801_v61  ;;  %v941_v53 = vpop.f32.mrb[5].mxu0 }
 0x10b   : > { %1130 = vst.msk [vmem:[%s1808_s27 + $0x90] sm:$0xff] %vm758_vm0, %v1098_v10  ;;  %v942_v8 = vadd.f32 %v1801_v61, %v941_v53 }
 0x10c   : > { %v1085_v9 = vmax.f32 %v947_v29, 0.0 }
 0x10d   : > { %v1084_v11 = vmax.f32 %v942_v8, 0.0  ;;  %v1505_v28 = vpop.f32.mrb[4].mxu1 }
 0x10e   : > { %1117 = vst.msk [vmem:[%s1808_s27 + $0x28] sm:$0xff] %vm758_vm0, %v1085_v9  ;;  %v1027_v31 = vadd.f32 %v1505_v28, %v1801_v61  ;;  %v1021_v33 = vpop.f32.mrb[5].mxu1 }
 0x10f   : > { %1116 = vst.msk [vmem:[%s1808_s27 + $0x20] sm:$0xff] %vm758_vm0, %v1084_v11  ;;  %v1022_v34 = vadd.f32 %v1801_v61, %v1021_v33 }
 0x110   : > { %v1101_v30 = vmax.f32 %v1027_v31, 0.0 }
 0x111   : > { %v1100_v35 = vmax.f32 %v1022_v34, 0.0 }
 0x112   : > { %1133 = vst.msk [vmem:[%s1808_s27 + $0xa8] sm:$0xff] %vm758_vm0, %v1101_v30 }
 0x113   : > { %v1484_v37 = vpop.f32.mrb[6].mxu0  ;;  %1132 = vst.msk [vmem:[%s1808_s27 + $0xa0] sm:$0xff] %vm758_vm0, %v1100_v35 }
 0x114   : > { %v957_v12 = vadd.f32 %v1484_v37, %v1801_v61  ;;  %v951_v5 = vpop.f32.mrb[7].mxu0 }
 0x115   : > { %v952_v13 = vadd.f32 %v1801_v61, %v951_v5 }
 0x116   : > { %v1087_v20 = vmax.f32 %v957_v12, 0.0  ;;  %v1508_v40 = vpop.f32.mrb[6].mxu1 }
 0x117   : > { %v1037_v42 = vadd.f32 %v1508_v40, %v1801_v61  ;;  %v1086_v36 = vmax.f32 %v952_v13, 0.0  ;;  %v1031_v46 = vpop.f32.mrb[7].mxu1 }
 0x118   : > { %1119 = vst.msk [vmem:[%s1808_s27 + $0x38] sm:$0xff] %vm758_vm0, %v1087_v20  ;;  %v1032_v21 = vadd.f32 %v1801_v61, %v1031_v46 }
 0x119   : > { %v1103_v25 = vmax.f32 %v1037_v42, 0.0  ;;  %1118 = vst.msk [vmem:[%s1808_s27 + $0x30] sm:$0xff] %vm758_vm0, %v1086_v36 }
 0x11a   : > { %v1102_v38 = vmax.f32 %v1032_v21, 0.0 }
 0x11b   : > { %1135 = vst.msk [vmem:[%s1808_s27 + $0xb8] sm:$0xff] %vm758_vm0, %v1103_v25  ;;  %v1487_v49 = vpop.f32.mrb[8].mxu0 }
 0x11c   : > { %1134 = vst.msk [vmem:[%s1808_s27 + $0xb0] sm:$0xff] %vm758_vm0, %v1102_v38  ;;  %v967_v50 = vadd.f32 %v1487_v49, %v1801_v61  ;;  %v961_v32 = vpop.f32.mrb[9].mxu0 }
 0x11d   : > { %v962_v54 = vadd.f32 %v1801_v61, %v961_v32 }
 0x11e   : > { %v1089_v15 = vmax.f32 %v967_v50, 0.0 }
 0x11f   : > { %v1088_v56 = vmax.f32 %v962_v54, 0.0 }
 0x120   : > { %1121 = vst.msk [vmem:[%s1808_s27 + $0x48] sm:$0xff] %vm758_vm0, %v1089_v15  ;;  %v1511_v47 = vpop.f32.mrb[8].mxu1 }
 0x121   : > { %v1047_v57 = vadd.f32 %v1511_v47, %v1801_v61  ;;  %1120 = vst.msk [vmem:[%s1808_s27 + $0x40] sm:$0xff] %vm758_vm0, %v1088_v56  ;;  %v1041_v27 = vpop.f32.mrb[9].mxu1 }
 0x122   : > { %v1042_v26 = vadd.f32 %v1801_v61, %v1041_v27 }
 0x123   : > { %v1105_v43 = vmax.f32 %v1047_v57, 0.0 }
 0x124   : > { %v1104_v60 = vmax.f32 %v1042_v26, 0.0 }
 0x125   : > { %1137 = vst.msk [vmem:[%s1808_s27 + $0xc8] sm:$0xff] %vm758_vm0, %v1105_v43  ;;  %v1490_v55 = vpop.f32.mrb[10].mxu0 }
 0x126   : > { %1136 = vst.msk [vmem:[%s1808_s27 + $0xc0] sm:$0xff] %vm758_vm0, %v1104_v60  ;;  %v977_v58 = vadd.f32 %v1490_v55, %v1801_v61  ;;  %v971_v39 = vpop.f32.mrb[11].mxu0 }
 0x127   : > { %v972_v16 = vadd.f32 %v1801_v61, %v971_v39 }
 0x128   : > { %v1091_v0 = vmax.f32 %v977_v58, 0.0  ;;  %v1514_v44 = vpop.f32.mrb[10].mxu1 }
 0x129   : > { %v1057_v1 = vadd.f32 %v1514_v44, %v1801_v61  ;;  %v1090_v59 = vmax.f32 %v972_v16, 0.0  ;;  %v1051_v62 = vpop.f32.mrb[11].mxu1 }
 0x12a   : > { %1123 = vst.msk [vmem:[%s1808_s27 + $0x58] sm:$0xff] %vm758_vm0, %v1091_v0  ;;  %v1052_v3 = vadd.f32 %v1801_v61, %v1051_v62 }
 0x12b   : > { %v1107_v51 = vmax.f32 %v1057_v1, 0.0  ;;  %1122 = vst.msk [vmem:[%s1808_s27 + $0x50] sm:$0xff] %vm758_vm0, %v1090_v59 }
 0x12c   : > { %v1106_v2 = vmax.f32 %v1052_v3, 0.0 }
 0x12d   : > { %1139 = vst.msk [vmem:[%s1808_s27 + $0xd8] sm:$0xff] %vm758_vm0, %v1107_v51  ;;  %v1493_v4 = vpop.f32.mrb[12].mxu0 }
 0x12e   : > { %1138 = vst.msk [vmem:[%s1808_s27 + $0xd0] sm:$0xff] %vm758_vm0, %v1106_v2  ;;  %v987_v17 = vadd.f32 %v1493_v4, %v1801_v61  ;;  %v981_v63 = vpop.f32.mrb[13].mxu0 }
 0x12f   : > { %v982_v6 = vadd.f32 %v1801_v61, %v981_v63 }
 0x130   : > { %v1093_v41 = vmax.f32 %v987_v17, 0.0 }
 0x131   : > { %v1092_v45 = vmax.f32 %v982_v6, 0.0 }
 0x132   : > { %1125 = vst.msk [vmem:[%s1808_s27 + $0x68] sm:$0xff] %vm758_vm0, %v1093_v41  ;;  %v1517_v14 = vpop.f32.mrb[12].mxu1 }
 0x133   : > { %v1067_v52 = vadd.f32 %v1517_v14, %v1801_v61  ;;  %1124 = vst.msk [vmem:[%s1808_s27 + $0x60] sm:$0xff] %vm758_vm0, %v1092_v45  ;;  %v1061_v18 = vpop.f32.mrb[13].mxu1 }
 0x134   : > { %v1062_v48 = vadd.f32 %v1801_v61, %v1061_v18 }
 0x135   : > { %v1109_v19 = vmax.f32 %v1067_v52, 0.0 }
 0x136   : > { %v1108_v22 = vmax.f32 %v1062_v48, 0.0 }
 0x137   : > { %1141 = vst.msk [vmem:[%s1808_s27 + $0xe8] sm:$0xff] %vm758_vm0, %v1109_v19  ;;  %v1496_v23 = vpop.f32.mrb[14].mxu0 }
 0x138   : > { %1140 = vst.msk [vmem:[%s1808_s27 + $0xe0] sm:$0xff] %vm758_vm0, %v1108_v22  ;;  %v997_v24 = vadd.f32 %v1496_v23, %v1801_v61  ;;  %v991_v10 = vpop.f32.mrb[15].mxu0 }
 0x139   : > { %v992_v7 = vadd.f32 %v1801_v61, %v991_v10 }
 0x13a   : > { %v1095_v29 = vmax.f32 %v997_v24, 0.0  ;;  %v1520_v53 = vpop.f32.mrb[14].mxu1 }
 0x13b   : > { %v1077_v8 = vadd.f32 %v1520_v53, %v1801_v61  ;;  %v1094_v9 = vmax.f32 %v992_v7, 0.0  ;;  %v1071_v11 = vpop.f32.mrb[15].mxu1 }
 0x13c   : > { %1127 = vst.msk [vmem:[%s1808_s27 + $0x78] sm:$0xff] %vm758_vm0, %v1095_v29  ;;  %v1072_v28 = vadd.f32 %v1801_v61, %v1071_v11 }
 0x13d   : > { %v1111_v31 = vmax.f32 %v1077_v8, 0.0  ;;  %1126 = vst.msk [vmem:[%s1808_s27 + $0x70] sm:$0xff] %vm758_vm0, %v1094_v9 }
 0x13e   : > { %v1110_v33 = vmax.f32 %v1072_v28, 0.0 }
 0x13f   : > { %1143 = vst.msk [vmem:[%s1808_s27 + $0xf8] sm:$0xff] %vm758_vm0, %v1111_v31 }
 0x140   : > { %1142 = vst.msk [vmem:[%s1808_s27 + $0xf0] sm:$0xff] %vm758_vm0, %v1110_v33 }
 0x141 PF: > { %s13_s12 = sadd.s32 1, %s1542_s12  }
 0x142   : > { %p10_p4 = scmp.ge.s32.totalorder %s13_s12, 4  }
 0x144   :  { %12 = sbr.rel (!%p10_p4) target bundleno = 1 (0x1), region = 64 }

// kernel: inception_forward.7
= control target key start
LH: loop header
LB: loop body
LE: loop exit
PB: predicated region body
PF: predicated region fallthrough
CT: control target
= control target key end

     0   :  { %s3730_s18 = smov 0   ;;  %s4401_s0 = inlined_call_operand.vmem [shape: f32[2,18,16,16], index: 0, kind: input, shape index: {}]   ;;  %s4402_s1 = inlined_call_operand.vmem [shape: f32[3,16,16], index: 1, kind: input, shape index: {}]   ;;  %s4403_s2 = inlined_call_operand.vmem [shape: f32[1,16], index: 2, kind: input, shape index: {}]   ;;  %s4404_s3 = inlined_call_operand.vmem [shape: f32[3,16,16], index: 3, kind: input, shape index: {}]   ;;  %s4405_s4 = inlined_call_operand.vmem [shape: f32[1,16], index: 4, kind: input, shape index: {}]   ;;  %s4406_s5 = inlined_call_operand.vmem [shape: f32[2,16,16,16], index: 5, kind: output, shape index: {}]  }
   0x1 LB: > { %s2736_s19 = sadd.s32 4294967295, %s3697_s18   ;;  %p2740_p0 = scmp.ge.s32.totalorder %s3697_s18, 1  ;;  %s3697_s18 = sphi %s3730_s18, %s15_s18  }
   0x2   : > { %p187_p1 = scmp.lt.s32.totalorder %s3697_s18, 3 }
   0x4   : > { %p188_p2 = pnand %p2740_p0, %p187_p1 }
   0x5   : > { %v2776_v0 = vld [vmem:[%s4402_s1 + $0x10] sm:$0xff] (!%p188_p2)  ;;  %v2777_v1 = vld [vmem:[%s4402_s1 + $0x18] sm:$0xff] (!%p188_p2)  ;;  %p215_p3 = scmp.lt.s32.totalorder (!%p188_p2), %s2736_s19, 1  ;;  %v257_v2 = vld [vmem:[%s4402_s1] sm:$0xff] (!%p188_p2)  ;;  %vm295_vm0 = vcmask (!%p188_p2), 130048   ;;  %vm1400_vm1 = vcmask (!%p188_p2), 123904  }
   0x6   : > { %191 = sbr.rel (%p188_p2) target bundleno = 779 (0x30b), region = 40  ;;  %v3529_v3 = vpack.c.bf16 (!%p188_p2), %v2777_v1, %v2776_v0  ;;  %v258_v4 = vld [vmem:[%s4402_s1 + $0x8] sm:$0xff] (!%p188_p2)  ;;  %v2874_v6 = vld [vmem:[%s4402_s1 + $0x20] sm:$0xff] (!%p188_p2)  ;;  %v3699_v45 = vmov (!%p188_p2), 0.0   ;;  %v2909_v46 = vld [vmem:[%s4404_s3 + $0x10] sm:$0xff] (!%p188_p2) }
   0x7   : > { %v3533_v5 = vpack.c.bf16 (!%p188_p2), %v258_v4, %v257_v2  ;;  %v2875_v7 = vld [vmem:[%s4402_s1 + $0x28] sm:$0xff] (!%p188_p2)  ;;  %1399 = vst.msk [vmem:[#allocation2 + $0x8] sm:$0xff] (!%p188_p2), %vm295_vm0, %v3699_v45  ;;  %1398 = vst.msk [vmem:[#allocation2] sm:$0xff] (!%p188_p2), %vm295_vm0, %v3699_v45  ;;  %v2910_v47 = vld [vmem:[%s4404_s3 + $0x18] sm:$0xff] (!%p188_p2) }
   0x8   : > { %3530 = vmatprep.subr.bf16.mxu0 (!%p188_p2), %v3529_v3  ;;  %v3773_v11 = vpack.c.bf16 (!%p188_p2), %v2875_v7, %v2874_v6  ;;  %1401 = vst.msk [vmem:[#allocation2 + $0x10] sm:$0x3] (!%p188_p2), %vm1400_vm1, %v3699_v45  ;;  %1404 = vst.msk [vmem:[#allocation2 + $0x28] sm:$0x3] (!%p188_p2), %vm1400_vm1, %v3699_v45  ;;  %v3541_v48 = vpack.c.bf16 (!%p188_p2), %v2910_v47, %v2909_v46  ;;  %v1511_v49 = vld [vmem:[%s4404_s3] sm:$0xff] (!%p188_p2)  ;;  %v1512_v50 = vld [vmem:[%s4404_s3 + $0x8] sm:$0xff] (!%p188_p2) }
   0x9   : > { %3532 = vmatpush3.bf16.msra.mxu0 (!%p188_p2), %v3529_v3  ;;  %1402 = vst.msk [vmem:[#allocation2 + $0x18] sm:$0xff] (!%p188_p2), %vm295_vm0, %v3699_v45  ;;  %1403 = vst.msk [vmem:[#allocation2 + $0x20] sm:$0xff] (!%p188_p2), %vm295_vm0, %v3699_v45  ;;  %v3545_v51 = vpack.c.bf16 (!%p188_p2), %v1512_v50, %v1511_v49  ;;  %v4119_v52 = vld [vmem:[%s4403_s2] ss:$0 sm:$0xff] (!%p188_p2)  ;;  %v2976_v6 = vld [vmem:[%s4404_s3 + $0x28] sm:$0xff] (!%p188_p2) }
   0xa   : > { %3534 = vmatprep.subr.bf16.mxu0 (!%p188_p2), %v3533_v5  ;;  %1405 = vst.msk [vmem:[#allocation2 + $0x30] sm:$0xff] (!%p188_p2), %vm295_vm0, %v3699_v45  ;;  %1406 = vst.msk [vmem:[#allocation2 + $0x38] sm:$0xff] (!%p188_p2), %vm295_vm0, %v3699_v45  ;;  %3542 = vmatprep.subr.bf16.mxu1 (!%p188_p2), %v3541_v48 }
   0xb   : > { %1407 = vst.msk [vmem:[#allocation2 + $0x40] sm:$0x3] (!%p188_p2), %vm1400_vm1, %v3699_v45  ;;  %1410 = vst.msk [vmem:[#allocation2 + $0x58] sm:$0x3] (!%p188_p2), %vm1400_vm1, %v3699_v45  ;;  %3544 = vmatpush3.bf16.msra.mxu1 (!%p188_p2), %v3541_v48 }
   0xc   : > { %1408 = vst.msk [vmem:[#allocation2 + $0x48] sm:$0xff] (!%p188_p2), %vm295_vm0, %v3699_v45  ;;  %1409 = vst.msk [vmem:[#allocation2 + $0x50] sm:$0xff] (!%p188_p2), %vm295_vm0, %v3699_v45  ;;  %3546 = vmatprep.subr.bf16.mxu1 (!%p188_p2), %v3545_v51 }
   0xd   : > { %s4408_s19 = smov (!%p215_p3, %s2736_s19), 1  ;;  %1411 = vst.msk [vmem:[#allocation2 + $0x60] sm:$0xff] %vm295_vm0, %v3699_v45  ;;  %1412 = vst.msk [vmem:[#allocation2 + $0x68] sm:$0xff] %vm295_vm0, %v3699_v45 }
   0xe   : > { %s3681_s28 = smul.u32 288, %s4408_s19  ;;  %1413 = vst.msk [vmem:[#allocation2 + $0x70] sm:$0x3] %vm1400_vm1, %v3699_v45  ;;  %1416 = vst.msk [vmem:[#allocation2 + $0x88] sm:$0x3] %vm1400_vm1, %v3699_v45  ;;  %s3012_s29 = sshll.u32 %s4408_s19, 8 }
   0xf   : > { %1414 = vst.msk [vmem:[#allocation2 + $0x78] sm:$0xff] %vm295_vm0, %v3699_v45  ;;  %1415 = vst.msk [vmem:[#allocation2 + $0x80] sm:$0xff] %vm295_vm0, %v3699_v45  ;;  %s4301_s7 = scalar_lea.vmem %s4406_s5, %s3012_s29 }
  0x10   : > { %s3762_s10 = scalar_lea.vmem %s4401_s0, %s3681_s28  ;;  %1417 = vst.msk [vmem:[#allocation2 + $0x90] sm:$0xff] %vm295_vm0, %v3699_v45  ;;  %1418 = vst.msk [vmem:[#allocation2 + $0x98] sm:$0xff] %vm295_vm0, %v3699_v45 }
  0x11   : > { %v3765_v8 = vld [vmem:[%s3762_s10 + $0x10] sm:$0xff]  ;;  %v3768_v9 = vld [vmem:[%s3762_s10 + $0x18] sm:$0xff]  ;;  %v3771_v10 = vld [vmem:[%s3762_s10 + $0x20] sm:$0xff]  ;;  %1419 = vst.msk [vmem:[#allocation2 + $0xa0] sm:$0x3] %vm1400_vm1, %v3699_v45 }
  0x12   : > { %3221 = vmatprep.mubr.msk.f32.mxu0 %vm295_vm0, %v3765_v8  ;;  %v3782_v12 = vld [vmem:[%s3762_s10 + $0x28] sm:$0xff]  ;;  %v3785_v13 = vld [vmem:[%s3762_s10 + $0x30] sm:$0xff]  ;;  %v3793_v14 = vld [vmem:[%s3762_s10 + $0x38] sm:$0xff]  ;;  %1420 = vst.msk [vmem:[#allocation2 + $0xa8] sm:$0xff] %vm295_vm0, %v3699_v45 }
  0x13   : > { %3222 = vmatmul.mubr.msk.f32.vlgmr.msra.gmra.mrb[0].mxu0 %vm295_vm0, %v3768_v9  ;;  %v3796_v15 = vld [vmem:[%s3762_s10 + $0x40] sm:$0xff]  ;;  %v3803_v16 = vld [vmem:[%s3762_s10 + $0x48] sm:$0xff]  ;;  %v3806_v17 = vld [vmem:[%s3762_s10 + $0x50] sm:$0xff]  ;;  %1421 = vst.msk [vmem:[#allocation2 + $0xb0] sm:$0xff] %vm295_vm0, %v3699_v45 }
  0x14   : > { %3536 = vmatpush3.bf16.msra.mxu0 %v3533_v5  ;;  %3224 = vmatprep.mubr.msk.f32.mxu0 %vm295_vm0, %v3771_v10  ;;  %v3813_v18 = vld [vmem:[%s3762_s10 + $0x58] sm:$0xff]  ;;  %v3816_v19 = vld [vmem:[%s3762_s10 + $0x60] sm:$0xff]  ;;  %v3823_v20 = vld [vmem:[%s3762_s10 + $0x68] sm:$0xff]  ;;  %1422 = vst.msk [vmem:[#allocation2 + $0xb8] sm:$0x3] %vm1400_vm1, %v3699_v45 }
  0x15   : > { %3538 = vmatprep.subr.bf16.mxu0 %v3773_v11  ;;  %v3826_v21 = vld [vmem:[%s3762_s10 + $0x70] sm:$0xff]  ;;  %v3833_v22 = vld [vmem:[%s3762_s10 + $0x78] sm:$0xff]  ;;  %v3836_v23 = vld [vmem:[%s3762_s10 + $0x80] sm:$0xff]  ;;  %1423 = vst.msk [vmem:[#allocation2 + $0xc0] sm:$0xff] %vm295_vm0, %v3699_v45 }
  0x16   : > { %v3843_v24 = vld [vmem:[%s3762_s10 + $0x88] sm:$0xff]  ;;  %v3846_v25 = vld [vmem:[%s3762_s10 + $0x90] sm:$0xff]  ;;  %v3853_v26 = vld [vmem:[%s3762_s10 + $0x98] sm:$0xff]  ;;  %1424 = vst.msk [vmem:[#allocation2 + $0xc8] sm:$0xff] %vm295_vm0, %v3699_v45 }
  0x17   : > { %3225 = vmatmul.mubr.msk.f32.gmra.mrb[2].mxu0 %vm295_vm0, %v3782_v12  ;;  %v3856_v27 = vld [vmem:[%s3762_s10 + $0xa0] sm:$0xff]  ;;  %v3863_v28 = vld [vmem:[%s3762_s10 + $0xa8] sm:$0xff]  ;;  %v3866_v29 = vld [vmem:[%s3762_s10 + $0xb0] sm:$0xff]  ;;  %1425 = vst.msk [vmem:[#allocation2 + $0xd0] sm:$0x3] %vm1400_vm1, %v3699_v45 }
  0x18   : > { %3227 = vmatprep.mubr.msk.f32.mxu0 %vm295_vm0, %v3785_v13  ;;  %v3873_v30 = vld [vmem:[%s3762_s10 + $0xb8] sm:$0xff]  ;;  %v3876_v31 = vld [vmem:[%s3762_s10 + $0xc0] sm:$0xff]  ;;  %v3883_v32 = vld [vmem:[%s3762_s10 + $0xc8] sm:$0xff]  ;;  %1426 = vst.msk [vmem:[#allocation2 + $0xd8] sm:$0xff] %vm295_vm0, %v3699_v45 }
  0x19   : > { %v3886_v33 = vld [vmem:[%s3762_s10 + $0xd0] sm:$0xff]  ;;  %v3893_v34 = vld [vmem:[%s3762_s10 + $0xd8] sm:$0xff]  ;;  %v3896_v35 = vld [vmem:[%s3762_s10 + $0xe0] sm:$0xff]  ;;  %1427 = vst.msk [vmem:[#allocation2 + $0xe0] sm:$0xff] %vm295_vm0, %v3699_v45 }
  0x1a   : > { %v3903_v36 = vld [vmem:[%s3762_s10 + $0xe8] sm:$0xff]  ;;  %v3906_v37 = vld [vmem:[%s3762_s10 + $0xf0] sm:$0xff]  ;;  %v3913_v38 = vld [vmem:[%s3762_s10 + $0xf8] sm:$0xff]  ;;  %1428 = vst.msk [vmem:[#allocation2 + $0xe8] sm:$0x3] %vm1400_vm1, %v3699_v45 }
  0x1b   : > { %3228 = vmatmul.mubr.msk.f32.gmra.mrb[4].mxu0 %vm295_vm0, %v3793_v14  ;;  %v3916_v39 = vld [vmem:[%s3762_s10 + $0x100] sm:$0xff]  ;;  %v3923_v40 = vld [vmem:[%s3762_s10 + $0x108] sm:$0xff]  ;;  %v2872_v43 = vld [vmem:[%s3762_s10 + $0x110] sm:$0xff]  ;;  %1429 = vst.msk [vmem:[#allocation2 + $0xf0] sm:$0xff] %vm295_vm0, %v3699_v45 }
  0x1c   : > { %3230 = vmatprep.mubr.msk.f32.mxu0 %vm295_vm0, %v3796_v15  ;;  %v225_v41 = vld [vmem:[%s3762_s10] sm:$0xff]  ;;  %v226_v42 = vld [vmem:[%s3762_s10 + $0x8] sm:$0xff]  ;;  %v2873_v44 = vld [vmem:[%s3762_s10 + $0x118] sm:$0xff]  ;;  %1430 = vst.msk [vmem:[#allocation2 + $0xf8] sm:$0xff] %vm295_vm0, %v3699_v45 }
  0x1d   : > { %1431 = vst.msk [vmem:[#allocation2 + $0x100] sm:$0x3] %vm1400_vm1, %v3699_v45  ;;  %1434 = vst.msk [vmem:[#allocation2 + $0x118] sm:$0x3] %vm1400_vm1, %v3699_v45  ;;  %v2975_v5 = vld [vmem:[%s4404_s3 + $0x20] sm:$0xff] }
  0x1e   : > { %1432 = vst.msk [vmem:[#allocation2 + $0x108] sm:$0xff] %vm295_vm0, %v3699_v45  ;;  %1433 = vst.msk [vmem:[#allocation2 + $0x110] sm:$0xff] %vm295_vm0, %v3699_v45 }
  0x1f   : > { %3231 = vmatmul.mubr.msk.f32.gmra.mrb[6].mxu0 %vm295_vm0, %v3803_v16  ;;  %1435 = vst.msk [vmem:[#allocation2 + $0x120] sm:$0xff] %vm295_vm0, %v3699_v45  ;;  %1436 = vst.msk [vmem:[#allocation2 + $0x128] sm:$0xff] %vm295_vm0, %v3699_v45 }
  0x20   : > { %3233 = vmatprep.mubr.msk.f32.mxu0 %vm295_vm0, %v3806_v17  ;;  %1437 = vst.msk [vmem:[#allocation2 + $0x130] sm:$0x3] %vm1400_vm1, %v3699_v45  ;;  %1440 = vst.msk [vmem:[#allocation2 + $0x148] sm:$0x3] %vm1400_vm1, %v3699_v45 }
  0x21   : > { %1438 = vst.msk [vmem:[#allocation2 + $0x138] sm:$0xff] %vm295_vm0, %v3699_v45  ;;  %1439 = vst.msk [vmem:[#allocation2 + $0x140] sm:$0xff] %vm295_vm0, %v3699_v45 }
  0x22   : > { %1441 = vst.msk [vmem:[#allocation2 + $0x150] sm:$0xff] %vm295_vm0, %v3699_v45  ;;  %1442 = vst.msk [vmem:[#allocation2 + $0x158] sm:$0xff] %vm295_vm0, %v3699_v45 }
  0x23   : > { %3234 = vmatmul.mubr.msk.f32.gmra.mrb[8].mxu0 %vm295_vm0, %v3813_v18  ;;  %1443 = vst.msk [vmem:[#allocation2 + $0x160] sm:$0x3] %vm1400_vm1, %v3699_v45  ;;  %1446 = vst.msk [vmem:[#allocation2 + $0x178] sm:$0x3] %vm1400_vm1, %v3699_v45 }
  0x24   : > { %3236 = vmatprep.mubr.msk.f32.mxu0 %vm295_vm0, %v3816_v19  ;;  %1444 = vst.msk [vmem:[#allocation2 + $0x168] sm:$0xff] %vm295_vm0, %v3699_v45  ;;  %1445 = vst.msk [vmem:[#allocation2 + $0x170] sm:$0xff] %vm295_vm0, %v3699_v45 }
  0x27   : > { %3237 = vmatmul.mubr.msk.f32.gmra.mrb[10].mxu0 %vm295_vm0, %v3823_v20 }
  0x28   : > { %3239 = vmatprep.mubr.msk.f32.mxu0 %vm295_vm0, %v3826_v21 }
  0x2b   : > { %3240 = vmatmul.mubr.msk.f32.gmra.mrb[12].mxu0 %vm295_vm0, %v3833_v22 }
  0x2c   : > { %3242 = vmatprep.mubr.msk.f32.mxu0 %vm295_vm0, %v3836_v23 }
  0x2f   : > { %3243 = vmatmul.mubr.msk.f32.gmra.mrb[14].mxu0 %vm295_vm0, %v3843_v24 }
  0x30   : > { %3245 = vmatprep.mubr.msk.f32.mxu0 %vm295_vm0, %v3846_v25 }
  0x33   : > { %3246 = vmatmul.mubr.msk.f32.gmra.mrb[16].mxu0 %vm295_vm0, %v3853_v26 }
  0x34   : > { %3248 = vmatprep.mubr.msk.f32.mxu0 %vm295_vm0, %v3856_v27 }
  0x37   : > { %3249 = vmatmul.mubr.msk.f32.gmra.mrb[18].mxu0 %vm295_vm0, %v3863_v28 }
  0x38   : > { %3251 = vmatprep.mubr.msk.f32.mxu0 %vm295_vm0, %v3866_v29 }
  0x3b   : > { %3252 = vmatmul.mubr.msk.f32.gmra.mrb[20].mxu0 %vm295_vm0, %v3873_v30 }
  0x3c   : > { %3254 = vmatprep.mubr.msk.f32.mxu0 %vm295_vm0, %v3876_v31 }
  0x3f   : > { %3255 = vmatmul.mubr.msk.f32.gmra.mrb[22].mxu0 %vm295_vm0, %v3883_v32 }
  0x40   : > { %3257 = vmatprep.mubr.msk.f32.mxu0 %vm295_vm0, %v3886_v33 }
  0x43   : > { %3258 = vmatmul.mubr.msk.f32.gmra.mrb[24].mxu0 %vm295_vm0, %v3893_v34 }
  0x44   : > { %3260 = vmatprep.mubr.msk.f32.mxu0 %vm295_vm0, %v3896_v35 }
  0x47   : > { %3261 = vmatmul.mubr.msk.f32.gmra.mrb[26].mxu0 %vm295_vm0, %v3903_v36 }
  0x48   : > { %3263 = vmatprep.mubr.msk.f32.mxu0 %vm295_vm0, %v3906_v37 }
  0x4b   : > { %3264 = vmatmul.mubr.msk.f32.gmra.mrb[28].mxu0 %vm295_vm0, %v3913_v38 }
  0x4c   : > { %3266 = vmatprep.mubr.msk.f32.mxu0 %vm295_vm0, %v3916_v39 }
  0x4f   : > { %3267 = vmatmul.mubr.msk.f32.gmra.mrb[30].mxu0 %vm295_vm0, %v3923_v40 }
  0x50   : > { %3273 = vmatprep.mubr.msk.f32.mxu0 %vm295_vm0, %v225_v41 }
  0x53   : > { %3274 = vmatmul.mubr.msk.f32.vlgmr.msra.gmra.mrb[0].mxu0 %vm295_vm0, %v226_v42 }
  0x54   : > { %3540 = vmatpush3.bf16.msra.mxu0 %v3773_v11  ;;  %3276 = vmatprep.mubr.msk.f32.mxu0 %vm295_vm0, %v3765_v8 }
  0x57   : > { %3277 = vmatmul.mubr.msk.f32.gmra.mrb[2].mxu0 %vm295_vm0, %v3768_v9 }
  0x58   : > { %3279 = vmatprep.mubr.msk.f32.mxu0 %vm295_vm0, %v3771_v10 }
  0x5b   : > { %3280 = vmatmul.mubr.msk.f32.gmra.mrb[4].mxu0 %vm295_vm0, %v3782_v12 }
  0x5c   : > { %3282 = vmatprep.mubr.msk.f32.mxu0 %vm295_vm0, %v3785_v13 }
  0x5f   : > { %3283 = vmatmul.mubr.msk.f32.gmra.mrb[6].mxu0 %vm295_vm0, %v3793_v14 }
  0x60   : > { %3285 = vmatprep.mubr.msk.f32.mxu0 %vm295_vm0, %v3796_v15 }
  0x63   : > { %3286 = vmatmul.mubr.msk.f32.gmra.mrb[8].mxu0 %vm295_vm0, %v3803_v16 }
  0x64   : > { %3288 = vmatprep.mubr.msk.f32.mxu0 %vm295_vm0, %v3806_v17 }
  0x67   : > { %3289 = vmatmul.mubr.msk.f32.gmra.mrb[10].mxu0 %vm295_vm0, %v3813_v18 }
  0x68   : > { %3291 = vmatprep.mubr.msk.f32.mxu0 %vm295_vm0, %v3816_v19 }
  0x6b   : > { %3292 = vmatmul.mubr.msk.f32.gmra.mrb[12].mxu0 %vm295_vm0, %v3823_v20 }
  0x6c   : > { %3294 = vmatprep.mubr.msk.f32.mxu0 %vm295_vm0, %v3826_v21 }
  0x6f   : > { %3295 = vmatmul.mubr.msk.f32.gmra.mrb[14].mxu0 %vm295_vm0, %v3833_v22 }
  0x70   : > { %3297 = vmatprep.mubr.msk.f32.mxu0 %vm295_vm0, %v3836_v23 }
  0x73   : > { %3298 = vmatmul.mubr.msk.f32.gmra.mrb[16].mxu0 %vm295_vm0, %v3843_v24 }
  0x74   : > { %3300 = vmatprep.mubr.msk.f32.mxu0 %vm295_vm0, %v3846_v25 }
  0x77   : > { %3301 = vmatmul.mubr.msk.f32.gmra.mrb[18].mxu0 %vm295_vm0, %v3853_v26 }
  0x78   : > { %3303 = vmatprep.mubr.msk.f32.mxu0 %vm295_vm0, %v3856_v27 }
  0x7b   : > { %3304 = vmatmul.mubr.msk.f32.gmra.mrb[20].mxu0 %vm295_vm0, %v3863_v28 }
  0x7c   : > { %3306 = vmatprep.mubr.msk.f32.mxu0 %vm295_vm0, %v3866_v29 }
  0x7f   : > { %3307 = vmatmul.mubr.msk.f32.gmra.mrb[22].mxu0 %vm295_vm0, %v3873_v30 }
  0x80   : > { %3309 = vmatprep.mubr.msk.f32.mxu0 %vm295_vm0, %v3876_v31 }
  0x83   : > { %3310 = vmatmul.mubr.msk.f32.gmra.mrb[24].mxu0 %vm295_vm0, %v3883_v32 }
  0x84   : > { %3312 = vmatprep.mubr.msk.f32.mxu0 %vm295_vm0, %v3886_v33 }
  0x87   : > { %3313 = vmatmul.mubr.msk.f32.gmra.mrb[26].mxu0 %vm295_vm0, %v3893_v34 }
  0x88   : > { %3315 = vmatprep.mubr.msk.f32.mxu0 %vm295_vm0, %v3896_v35 }
  0x8b   : > { %3316 = vmatmul.mubr.msk.f32.gmra.mrb[28].mxu0 %vm295_vm0, %v3903_v36 }
  0x8c   : > { %3318 = vmatprep.mubr.msk.f32.mxu0 %vm295_vm0, %v3906_v37 }
  0x8f   : > { %3319 = vmatmul.mubr.msk.f32.gmra.mrb[30].mxu0 %vm295_vm0, %v3913_v38 }
  0x90   : > { %3325 = vmatprep.mubr.msk.f32.mxu0 %vm295_vm0, %v3771_v10 }
  0x93   : > { %3326 = vmatmul.mubr.msk.f32.vlgmr.msra.gmra.mrb[0].mxu0 %vm295_vm0, %v3782_v12 }
  0x94   : > { %3328 = vmatprep.mubr.msk.f32.mxu0 %vm295_vm0, %v3785_v13  ;;  %v4139_v13 = vpack.c.bf16 %v2976_v6, %v2975_v5 }
  0x97   : > { %3329 = vmatmul.mubr.msk.f32.gmra.mrb[2].mxu0 %vm295_vm0, %v3793_v14 }
  0x98   : > { %3331 = vmatprep.mubr.msk.f32.mxu0 %vm295_vm0, %v3796_v15 }
  0x9b   : > { %3332 = vmatmul.mubr.msk.f32.gmra.mrb[4].mxu0 %vm295_vm0, %v3803_v16 }
  0x9c   : > { %3334 = vmatprep.mubr.msk.f32.mxu0 %vm295_vm0, %v3806_v17 }
  0x9f   : > { %3335 = vmatmul.mubr.msk.f32.gmra.mrb[6].mxu0 %vm295_vm0, %v3813_v18 }
  0xa0   : > { %3337 = vmatprep.mubr.msk.f32.mxu0 %vm295_vm0, %v3816_v19 }
  0xa3   : > { %3338 = vmatmul.mubr.msk.f32.gmra.mrb[8].mxu0 %vm295_vm0, %v3823_v20 }
  0xa4   : > { %3340 = vmatprep.mubr.msk.f32.mxu0 %vm295_vm0, %v3826_v21 }
  0xa7   : > { %3341 = vmatmul.mubr.msk.f32.gmra.mrb[10].mxu0 %vm295_vm0, %v3833_v22 }
  0xa8   : > { %3343 = vmatprep.mubr.msk.f32.mxu0 %vm295_vm0, %v3836_v23 }
  0xab   : > { %3344 = vmatmul.mubr.msk.f32.gmra.mrb[12].mxu0 %vm295_vm0, %v3843_v24 }
  0xac   : > { %3346 = vmatprep.mubr.msk.f32.mxu0 %vm295_vm0, %v3846_v25 }
  0xaf   : > { %3347 = vmatmul.mubr.msk.f32.gmra.mrb[14].mxu0 %vm295_vm0, %v3853_v26 }
  0xb0   : > { %3349 = vmatprep.mubr.msk.f32.mxu0 %vm295_vm0, %v3856_v27 }
  0xb3   : > { %3350 = vmatmul.mubr.msk.f32.gmra.mrb[16].mxu0 %vm295_vm0, %v3863_v28 }
  0xb4   : > { %3352 = vmatprep.mubr.msk.f32.mxu0 %vm295_vm0, %v3866_v29 }
  0xb7   : > { %3353 = vmatmul.mubr.msk.f32.gmra.mrb[18].mxu0 %vm295_vm0, %v3873_v30 }
  0xb8   : > { %3355 = vmatprep.mubr.msk.f32.mxu0 %vm295_vm0, %v3876_v31 }
  0xbb   : > { %3356 = vmatmul.mubr.msk.f32.gmra.mrb[20].mxu0 %vm295_vm0, %v3883_v32 }
  0xbc   : > { %3358 = vmatprep.mubr.msk.f32.mxu0 %vm295_vm0, %v3886_v33 }
  0xbf   : > { %3359 = vmatmul.mubr.msk.f32.gmra.mrb[22].mxu0 %vm295_vm0, %v3893_v34 }
  0xc0   : > { %3361 = vmatprep.mubr.msk.f32.mxu0 %vm295_vm0, %v3896_v35 }
  0xc3   : > { %3362 = vmatmul.mubr.msk.f32.gmra.mrb[24].mxu0 %vm295_vm0, %v3903_v36 }
  0xc4   : > { %3364 = vmatprep.mubr.msk.f32.mxu0 %vm295_vm0, %v3906_v37 }
  0xc7   : > { %3365 = vmatmul.mubr.msk.f32.gmra.mrb[26].mxu0 %vm295_vm0, %v3913_v38 }
  0xc8   : > { %3367 = vmatprep.mubr.msk.f32.mxu0 %vm295_vm0, %v3916_v39 }
  0xcb   : > { %3368 = vmatmul.mubr.msk.f32.gmra.mrb[28].mxu0 %vm295_vm0, %v3923_v40 }
  0xcc   : > { %3370 = vmatprep.mubr.msk.f32.mxu0 %vm295_vm0, %v2872_v43 }
  0xcf   : > { %3371 = vmatmul.mubr.msk.f32.gmra.mrb[30].mxu0 %vm295_vm0, %v2873_v44 }
 0x166   : > { %v3327_v53 = vpop.f32.mrb[0].mxu0 }
 0x167   : > { %v1335_v54 = vadd.f32 %v3327_v53, %v4119_v52  ;;  %v1136_v55 = vpop.f32.mrb[1].mxu0 }
 0x168   : > { %v1334_v56 = vadd.f32 %v4119_v52, %v1136_v55 }
 0x169   : > { %v1367_v57 = vmax.f32 %v1335_v54, 0.0 }
 0x16a   : > { %v1366_v58 = vmax.f32 %v1334_v56, 0.0  ;;  %v3330_v59 = vpop.f32.mrb[2].mxu0 }
 0x16b   : > { %1448 = vst.msk [vmem:[#allocation2 + $0x9] sm:$0xff] %vm295_vm0, %v1367_v57  ;;  %v1337_v60 = vadd.f32 %v3330_v59, %v4119_v52  ;;  %v1146_v61 = vpop.f32.mrb[3].mxu0 }
 0x16c   : > { %1447 = vst.msk [vmem:[#allocation2 + $0x1] sm:$0xff] %vm295_vm0, %v1366_v58  ;;  %v1336_v62 = vadd.f32 %v4119_v52, %v1146_v61 }
 0x16d   : > { %v1369_v63 = vmax.f32 %v1337_v60, 0.0 }
 0x16e   : > { %v1368_v0 = vmax.f32 %v1336_v62, 0.0  ;;  %v3333_v1 = vpop.f32.mrb[4].mxu0 }
 0x16f   : > { %1450 = vst.msk [vmem:[#allocation2 + $0x21] sm:$0xff] %vm295_vm0, %v1369_v63  ;;  %v1339_v2 = vadd.f32 %v3333_v1, %v4119_v52  ;;  %v1156_v3 = vpop.f32.mrb[5].mxu0 }
 0x170   : > { %1449 = vst.msk [vmem:[#allocation2 + $0x19] sm:$0xff] %vm295_vm0, %v1368_v0  ;;  %v1338_v4 = vadd.f32 %v4119_v52, %v1156_v3 }
 0x171   : > { %v1371_v7 = vmax.f32 %v1339_v2, 0.0 }
 0x172   : > { %v1370_v8 = vmax.f32 %v1338_v4, 0.0  ;;  %v3336_v9 = vpop.f32.mrb[6].mxu0  ;;  %v1514_v15 = vld [vmem:[#allocation2 + $0x9] sm:$0xff] }
 0x173   : > { %1452 = vst.msk [vmem:[#allocation2 + $0x39] sm:$0xff] %vm295_vm0, %v1371_v7  ;;  %v1341_v10 = vadd.f32 %v3336_v9, %v4119_v52  ;;  %v1166_v11 = vpop.f32.mrb[7].mxu0  ;;  %v1513_v12 = vld [vmem:[#allocation2 + $0x1] sm:$0xff] }
 0x174   : > { %1451 = vst.msk [vmem:[#allocation2 + $0x31] sm:$0xff] %vm295_vm0, %v1370_v8  ;;  %v1340_v14 = vadd.f32 %v4119_v52, %v1166_v11  ;;  %3377 = vmatprep.mubr.msk.f32.mxu1 %vm295_vm0, %v1513_v12 }
 0x175   : > { %v1373_v16 = vmax.f32 %v1341_v10, 0.0  ;;  %3378 = vmatmul.mubr.msk.f32.vlgmr.msra.gmra.mrb[0].mxu1 %vm295_vm0, %v1514_v15 }
 0x176   : > { %v1372_v17 = vmax.f32 %v1340_v14, 0.0  ;;  %3548 = vmatpush3.bf16.msra.mxu1 %v3545_v51  ;;  %v3339_v18 = vpop.f32.mrb[8].mxu0  ;;  %v1516_v23 = vld [vmem:[#allocation2 + $0x21] sm:$0xff] }
 0x177   : > { %1454 = vst.msk [vmem:[#allocation2 + $0x51] sm:$0xff] %vm295_vm0, %v1373_v16  ;;  %v1343_v19 = vadd.f32 %v3339_v18, %v4119_v52  ;;  %v1176_v20 = vpop.f32.mrb[9].mxu0  ;;  %v1515_v21 = vld [vmem:[#allocation2 + $0x19] sm:$0xff]  ;;  %3550 = vmatprep.subr.bf16.mxu1 %v4139_v13 }
 0x178   : > { %1453 = vst.msk [vmem:[#allocation2 + $0x49] sm:$0xff] %vm295_vm0, %v1372_v17  ;;  %v1342_v22 = vadd.f32 %v4119_v52, %v1176_v20  ;;  %3380 = vmatprep.mubr.msk.f32.mxu1 %vm295_vm0, %v1515_v21 }
 0x179   : > { %v1375_v24 = vmax.f32 %v1343_v19, 0.0  ;;  %3381 = vmatmul.mubr.msk.f32.gmra.mrb[2].mxu1 %vm295_vm0, %v1516_v23 }
 0x17a   : > { %v1374_v25 = vmax.f32 %v1342_v22, 0.0  ;;  %v3342_v26 = vpop.f32.mrb[10].mxu0  ;;  %v1518_v31 = vld [vmem:[#allocation2 + $0x39] sm:$0xff] }
 0x17b   : > { %1456 = vst.msk [vmem:[#allocation2 + $0x69] sm:$0xff] %vm295_vm0, %v1375_v24  ;;  %v1345_v27 = vadd.f32 %v3342_v26, %v4119_v52  ;;  %v1186_v28 = vpop.f32.mrb[11].mxu0  ;;  %v1517_v29 = vld [vmem:[#allocation2 + $0x31] sm:$0xff] }
 0x17c   : > { %1455 = vst.msk [vmem:[#allocation2 + $0x61] sm:$0xff] %vm295_vm0, %v1374_v25  ;;  %v1344_v30 = vadd.f32 %v4119_v52, %v1186_v28  ;;  %3383 = vmatprep.mubr.msk.f32.mxu1 %vm295_vm0, %v1517_v29 }
 0x17d   : > { %v1377_v32 = vmax.f32 %v1345_v27, 0.0  ;;  %3384 = vmatmul.mubr.msk.f32.gmra.mrb[4].mxu1 %vm295_vm0, %v1518_v31 }
 0x17e   : > { %v1376_v33 = vmax.f32 %v1344_v30, 0.0  ;;  %v3345_v34 = vpop.f32.mrb[12].mxu0  ;;  %v1520_v39 = vld [vmem:[#allocation2 + $0x51] sm:$0xff] }
 0x17f   : > { %1458 = vst.msk [vmem:[#allocation2 + $0x81] sm:$0xff] %vm295_vm0, %v1377_v32  ;;  %v1347_v35 = vadd.f32 %v3345_v34, %v4119_v52  ;;  %v1196_v36 = vpop.f32.mrb[13].mxu0  ;;  %v1519_v37 = vld [vmem:[#allocation2 + $0x49] sm:$0xff] }
 0x180   : > { %1457 = vst.msk [vmem:[#allocation2 + $0x79] sm:$0xff] %vm295_vm0, %v1376_v33  ;;  %v1346_v38 = vadd.f32 %v4119_v52, %v1196_v36  ;;  %3386 = vmatprep.mubr.msk.f32.mxu1 %vm295_vm0, %v1519_v37 }
 0x181   : > { %v1379_v40 = vmax.f32 %v1347_v35, 0.0  ;;  %3387 = vmatmul.mubr.msk.f32.gmra.mrb[6].mxu1 %vm295_vm0, %v1520_v39 }
 0x182   : > { %v1378_v41 = vmax.f32 %v1346_v38, 0.0  ;;  %v3348_v42 = vpop.f32.mrb[14].mxu0  ;;  %v1522_v47 = vld [vmem:[#allocation2 + $0x69] sm:$0xff] }
 0x183   : > { %1460 = vst.msk [vmem:[#allocation2 + $0x99] sm:$0xff] %vm295_vm0, %v1379_v40  ;;  %v1349_v43 = vadd.f32 %v3348_v42, %v4119_v52  ;;  %v1206_v44 = vpop.f32.mrb[15].mxu0  ;;  %v1521_v45 = vld [vmem:[#allocation2 + $0x61] sm:$0xff] }
 0x184   : > { %1459 = vst.msk [vmem:[#allocation2 + $0x91] sm:$0xff] %vm295_vm0, %v1378_v41  ;;  %v1348_v46 = vadd.f32 %v4119_v52, %v1206_v44  ;;  %3389 = vmatprep.mubr.msk.f32.mxu1 %vm295_vm0, %v1521_v45 }
 0x185   : > { %v1381_v48 = vmax.f32 %v1349_v43, 0.0  ;;  %3390 = vmatmul.mubr.msk.f32.gmra.mrb[8].mxu1 %vm295_vm0, %v1522_v47 }
 0x186   : > { %v1380_v49 = vmax.f32 %v1348_v46, 0.0  ;;  %v3351_v50 = vpop.f32.mrb[16].mxu0  ;;  %v1524_v56 = vld [vmem:[#allocation2 + $0x81] sm:$0xff] }
 0x187   : > { %1462 = vst.msk [vmem:[#allocation2 + $0xb1] sm:$0xff] %vm295_vm0, %v1381_v48  ;;  %v1351_v51 = vadd.f32 %v3351_v50, %v4119_v52  ;;  %v1216_v53 = vpop.f32.mrb[17].mxu0  ;;  %v1523_v54 = vld [vmem:[#allocation2 + $0x79] sm:$0xff] }
 0x188   : > { %1461 = vst.msk [vmem:[#allocation2 + $0xa9] sm:$0xff] %vm295_vm0, %v1380_v49  ;;  %v1350_v55 = vadd.f32 %v4119_v52, %v1216_v53  ;;  %3392 = vmatprep.mubr.msk.f32.mxu1 %vm295_vm0, %v1523_v54 }
 0x189   : > { %v1383_v57 = vmax.f32 %v1351_v51, 0.0  ;;  %3393 = vmatmul.mubr.msk.f32.gmra.mrb[10].mxu1 %vm295_vm0, %v1524_v56 }
 0x18a   : > { %v1382_v58 = vmax.f32 %v1350_v55, 0.0  ;;  %v3354_v59 = vpop.f32.mrb[18].mxu0  ;;  %v1526_v0 = vld [vmem:[#allocation2 + $0x99] sm:$0xff] }
 0x18b   : > { %1464 = vst.msk [vmem:[#allocation2 + $0xc9] sm:$0xff] %vm295_vm0, %v1383_v57  ;;  %v1353_v60 = vadd.f32 %v3354_v59, %v4119_v52  ;;  %v1226_v61 = vpop.f32.mrb[19].mxu0  ;;  %v1525_v62 = vld [vmem:[#allocation2 + $0x91] sm:$0xff]  ;;  %v1480_v59 = vld [vmem:[#allocation2 + $0x8] sm:$0xff] }
 0x18c   : > { %1463 = vst.msk [vmem:[#allocation2 + $0xc1] sm:$0xff] %vm295_vm0, %v1382_v58  ;;  %v1352_v63 = vadd.f32 %v4119_v52, %v1226_v61  ;;  %3395 = vmatprep.mubr.msk.f32.mxu1 %vm295_vm0, %v1525_v62  ;;  %v1479_v58 = vld [vmem:[#allocation2] sm:$0xff]  ;;  %v1483_v62 = vld [vmem:[#allocation2 + $0x30] sm:$0xff] }
 0x18d   : > { %v1385_v1 = vmax.f32 %v1353_v60, 0.0  ;;  %3396 = vmatmul.mubr.msk.f32.gmra.mrb[12].mxu1 %vm295_vm0, %v1526_v0  ;;  %v1481_v60 = vld [vmem:[#allocation2 + $0x18] sm:$0xff]  ;;  %v1482_v61 = vld [vmem:[#allocation2 + $0x20] sm:$0xff]  ;;  %v1485_v0 = vld [vmem:[#allocation2 + $0x48] sm:$0xff] }
 0x18e   : > { %v1384_v2 = vmax.f32 %v1352_v63, 0.0  ;;  %v3357_v3 = vpop.f32.mrb[20].mxu0  ;;  %v1528_v8 = vld [vmem:[#allocation2 + $0xb1] sm:$0xff] }
 0x18f   : > { %1466 = vst.msk [vmem:[#allocation2 + $0xe1] sm:$0xff] %vm295_vm0, %v1385_v1  ;;  %v1355_v4 = vadd.f32 %v3357_v3, %v4119_v52  ;;  %v1236_v5 = vpop.f32.mrb[21].mxu0  ;;  %v1527_v6 = vld [vmem:[#allocation2 + $0xa9] sm:$0xff]  ;;  %v1484_v63 = vld [vmem:[#allocation2 + $0x38] sm:$0xff] }
 0x190   : > { %1465 = vst.msk [vmem:[#allocation2 + $0xd9] sm:$0xff] %vm295_vm0, %v1384_v2  ;;  %v1354_v7 = vadd.f32 %v4119_v52, %v1236_v5  ;;  %3398 = vmatprep.mubr.msk.f32.mxu1 %vm295_vm0, %v1527_v6  ;;  %v1486_v1 = vld [vmem:[#allocation2 + $0x50] sm:$0xff]  ;;  %v1487_v2 = vld [vmem:[#allocation2 + $0x60] sm:$0xff]  ;;  %v1489_v3 = vld [vmem:[#allocation2 + $0x78] sm:$0xff] }
 0x191   : > { %v1387_v9 = vmax.f32 %v1355_v4, 0.0  ;;  %3399 = vmatmul.mubr.msk.f32.gmra.mrb[14].mxu1 %vm295_vm0, %v1528_v8  ;;  %v1490_v4 = vld [vmem:[#allocation2 + $0x80] sm:$0xff]  ;;  %v1491_v5 = vld [vmem:[#allocation2 + $0x90] sm:$0xff]  ;;  %v1492_v6 = vld [vmem:[#allocation2 + $0x98] sm:$0xff] }
 0x192   : > { %v1386_v10 = vmax.f32 %v1354_v7, 0.0  ;;  %v3360_v11 = vpop.f32.mrb[22].mxu0  ;;  %v1530_v17 = vld [vmem:[#allocation2 + $0xc9] sm:$0xff] }
 0x193   : > { %1468 = vst.msk [vmem:[#allocation2 + $0xf9] sm:$0xff] %vm295_vm0, %v1387_v9  ;;  %v1357_v12 = vadd.f32 %v3360_v11, %v4119_v52  ;;  %v1246_v14 = vpop.f32.mrb[23].mxu0  ;;  %v1529_v15 = vld [vmem:[#allocation2 + $0xc1] sm:$0xff]  ;;  %v1494_v8 = vld [vmem:[#allocation2 + $0xb0] sm:$0xff] }
 0x194   : > { %1467 = vst.msk [vmem:[#allocation2 + $0xf1] sm:$0xff] %vm295_vm0, %v1386_v10  ;;  %v1356_v16 = vadd.f32 %v4119_v52, %v1246_v14  ;;  %3401 = vmatprep.mubr.msk.f32.mxu1 %vm295_vm0, %v1529_v15  ;;  %v1493_v7 = vld [vmem:[#allocation2 + $0xa8] sm:$0xff]  ;;  %v1495_v9 = vld [vmem:[#allocation2 + $0xc0] sm:$0xff] }
 0x195   : > { %v1389_v18 = vmax.f32 %v1357_v12, 0.0  ;;  %3402 = vmatmul.mubr.msk.f32.gmra.mrb[16].mxu1 %vm295_vm0, %v1530_v17  ;;  %v1496_v10 = vld [vmem:[#allocation2 + $0xc8] sm:$0xff] }
 0x196   : > { %v1388_v19 = vmax.f32 %v1356_v16, 0.0  ;;  %v3363_v20 = vpop.f32.mrb[24].mxu0  ;;  %v1532_v25 = vld [vmem:[#allocation2 + $0xe1] sm:$0xff] }
 0x197   : > { %1470 = vst.msk [vmem:[#allocation2 + $0x111] sm:$0xff] %vm295_vm0, %v1389_v18  ;;  %v1359_v21 = vadd.f32 %v3363_v20, %v4119_v52  ;;  %v1256_v22 = vpop.f32.mrb[25].mxu0  ;;  %v1531_v23 = vld [vmem:[#allocation2 + $0xd9] sm:$0xff] }
 0x198   : > { %1469 = vst.msk [vmem:[#allocation2 + $0x109] sm:$0xff] %vm295_vm0, %v1388_v19  ;;  %v1358_v24 = vadd.f32 %v4119_v52, %v1256_v22  ;;  %3404 = vmatprep.mubr.msk.f32.mxu1 %vm295_vm0, %v1531_v23  ;;  %v1497_v11 = vld [vmem:[#allocation2 + $0xd8] sm:$0xff]  ;;  %v1498_v12 = vld [vmem:[#allocation2 + $0xe0] sm:$0xff] }
 0x199   : > { %v1391_v26 = vmax.f32 %v1359_v21, 0.0  ;;  %3405 = vmatmul.mubr.msk.f32.gmra.mrb[18].mxu1 %vm295_vm0, %v1532_v25 }
 0x19a   : > { %v1390_v27 = vmax.f32 %v1358_v24, 0.0  ;;  %v3366_v28 = vpop.f32.mrb[26].mxu0  ;;  %v1534_v33 = vld [vmem:[#allocation2 + $0xf9] sm:$0xff] }
 0x19b   : > { %1472 = vst.msk [vmem:[#allocation2 + $0x129] sm:$0xff] %vm295_vm0, %v1391_v26  ;;  %v1361_v29 = vadd.f32 %v3366_v28, %v4119_v52  ;;  %v1266_v30 = vpop.f32.mrb[27].mxu0  ;;  %v1533_v31 = vld [vmem:[#allocation2 + $0xf1] sm:$0xff]  ;;  %v2190_v26 = vld [vmem:[#allocation2 + $0x2] sm:$0xff]  ;;  %v2192_v28 = vld [vmem:[#allocation2 + $0x1a] sm:$0xff] }
 0x19c   : > { %1471 = vst.msk [vmem:[#allocation2 + $0x121] sm:$0xff] %vm295_vm0, %v1390_v27  ;;  %v1360_v32 = vadd.f32 %v4119_v52, %v1266_v30  ;;  %3407 = vmatprep.mubr.msk.f32.mxu1 %vm295_vm0, %v1533_v31  ;;  %v1499_v14 = vld [vmem:[#allocation2 + $0xf0] sm:$0xff]  ;;  %v1500_v15 = vld [vmem:[#allocation2 + $0xf8] sm:$0xff] }
 0x19d   : > { %v1393_v34 = vmax.f32 %v1361_v29, 0.0  ;;  %3408 = vmatmul.mubr.msk.f32.gmra.mrb[20].mxu1 %vm295_vm0, %v1534_v33  ;;  %v2191_v27 = vld [vmem:[#allocation2 + $0xa] sm:$0xff]  ;;  %v2193_v29 = vld [vmem:[#allocation2 + $0x22] sm:$0xff]  ;;  %v2194_v30 = vld [vmem:[#allocation2 + $0x32] sm:$0xff] }
 0x19e   : > { %v1392_v35 = vmax.f32 %v1360_v32, 0.0  ;;  %v3369_v36 = vpop.f32.mrb[28].mxu0  ;;  %v1536_v41 = vld [vmem:[#allocation2 + $0x111] sm:$0xff]  ;;  %v2195_v31 = vld [vmem:[#allocation2 + $0x3a] sm:$0xff] }
 0x19f   : > { %1474 = vst.msk [vmem:[#allocation2 + $0x141] sm:$0xff] %vm295_vm0, %v1393_v34  ;;  %v1363_v37 = vadd.f32 %v3369_v36, %v4119_v52  ;;  %v1276_v38 = vpop.f32.mrb[29].mxu0  ;;  %v1535_v39 = vld [vmem:[#allocation2 + $0x109] sm:$0xff]  ;;  %v2197_v33 = vld [vmem:[#allocation2 + $0x52] sm:$0xff]  ;;  %v2200_v36 = vld [vmem:[#allocation2 + $0x7a] sm:$0xff] }
 0x1a0   : > { %1473 = vst.msk [vmem:[#allocation2 + $0x139] sm:$0xff] %vm295_vm0, %v1392_v35  ;;  %v1362_v40 = vadd.f32 %v4119_v52, %v1276_v38  ;;  %3410 = vmatprep.mubr.msk.f32.mxu1 %vm295_vm0, %v1535_v39  ;;  %v1501_v16 = vld [vmem:[#allocation2 + $0x108] sm:$0xff]  ;;  %v1502_v17 = vld [vmem:[#allocation2 + $0x110] sm:$0xff]  ;;  %v2203_v39 = vld [vmem:[#allocation2 + $0x9a] sm:$0xff] }
 0x1a1   : > { %v1395_v42 = vmax.f32 %v1363_v37, 0.0  ;;  %3411 = vmatmul.mubr.msk.f32.gmra.mrb[22].mxu1 %vm295_vm0, %v1536_v41  ;;  %v2196_v32 = vld [vmem:[#allocation2 + $0x4a] sm:$0xff]  ;;  %v2198_v34 = vld [vmem:[#allocation2 + $0x62] sm:$0xff]  ;;  %v2202_v38 = vld [vmem:[#allocation2 + $0x92] sm:$0xff] }
 0x1a2   : > { %v1394_v43 = vmax.f32 %v1362_v40, 0.0  ;;  %v3372_v44 = vpop.f32.mrb[30].mxu0  ;;  %v1538_v49 = vld [vmem:[#allocation2 + $0x129] sm:$0xff]  ;;  %v2205_v41 = vld [vmem:[#allocation2 + $0xb2] sm:$0xff] }
 0x1a3   : > { %1476 = vst.msk [vmem:[#allocation2 + $0x159] sm:$0xff] %vm295_vm0, %v1395_v42  ;;  %v1365_v45 = vadd.f32 %v3372_v44, %v4119_v52  ;;  %v1286_v46 = vpop.f32.mrb[31].mxu0  ;;  %v1537_v47 = vld [vmem:[#allocation2 + $0x121] sm:$0xff]  ;;  %v2199_v35 = vld [vmem:[#allocation2 + $0x6a] sm:$0xff] }
 0x1a4   : > { %1475 = vst.msk [vmem:[#allocation2 + $0x151] sm:$0xff] %vm295_vm0, %v1394_v43  ;;  %v1364_v48 = vadd.f32 %v4119_v52, %v1286_v46  ;;  %3413 = vmatprep.mubr.msk.f32.mxu1 %vm295_vm0, %v1537_v47  ;;  %v1503_v18 = vld [vmem:[#allocation2 + $0x120] sm:$0xff]  ;;  %v1504_v19 = vld [vmem:[#allocation2 + $0x128] sm:$0xff]  ;;  %v2210_v46 = vld [vmem:[#allocation2 + $0xf2] sm:$0xff] }
 0x1a5   : > { %v1397_v50 = vmax.f32 %v1365_v45, 0.0  ;;  %3414 = vmatmul.mubr.msk.f32.gmra.mrb[24].mxu1 %vm295_vm0, %v1538_v49  ;;  %v2201_v37 = vld [vmem:[#allocation2 + $0x82] sm:$0xff]  ;;  %v2204_v40 = vld [vmem:[#allocation2 + $0xaa] sm:$0xff]  ;;  %v2208_v44 = vld [vmem:[#allocation2 + $0xda] sm:$0xff] }
 0x1a6   : > { %v1396_v51 = vmax.f32 %v1364_v48, 0.0  ;;  %v1540_v54 = vld [vmem:[#allocation2 + $0x141] sm:$0xff]  ;;  %v2207_v43 = vld [vmem:[#allocation2 + $0xca] sm:$0xff]  ;;  %v2213_v49 = vld [vmem:[#allocation2 + $0x112] sm:$0xff] }
 0x1a7   : > { %1478 = vst.msk [vmem:[#allocation2 + $0x171] sm:$0xff] %vm295_vm0, %v1397_v50  ;;  %v1539_v53 = vld [vmem:[#allocation2 + $0x139] sm:$0xff]  ;;  %v2206_v42 = vld [vmem:[#allocation2 + $0xc2] sm:$0xff]  ;;  %v2212_v48 = vld [vmem:[#allocation2 + $0x10a] sm:$0xff] }
 0x1a8   : > { %1477 = vst.msk [vmem:[#allocation2 + $0x169] sm:$0xff] %vm295_vm0, %v1396_v51  ;;  %3416 = vmatprep.mubr.msk.f32.mxu1 %vm295_vm0, %v1539_v53  ;;  %v1505_v20 = vld [vmem:[#allocation2 + $0x138] sm:$0xff]  ;;  %v1506_v21 = vld [vmem:[#allocation2 + $0x140] sm:$0xff]  ;;  %v2215_v51 = vld [vmem:[#allocation2 + $0x12a] sm:$0xff] }
 0x1a9   : > { %3417 = vmatmul.mubr.msk.f32.gmra.mrb[26].mxu1 %vm295_vm0, %v1540_v54  ;;  %v2209_v45 = vld [vmem:[#allocation2 + $0xe2] sm:$0xff]  ;;  %v2211_v47 = vld [vmem:[#allocation2 + $0xfa] sm:$0xff] }
 0x1aa   : > { %v1542_v52 = vld [vmem:[#allocation2 + $0x159] sm:$0xff]  ;;  %v2214_v50 = vld [vmem:[#allocation2 + $0x122] sm:$0xff] }
 0x1ab   : > { %v1541_v55 = vld [vmem:[#allocation2 + $0x151] sm:$0xff]  ;;  %v2216_v53 = vld [vmem:[#allocation2 + $0x13a] sm:$0xff]  ;;  %v2217_v54 = vld [vmem:[#allocation2 + $0x142] sm:$0xff] }
 0x1ac   : > { %3419 = vmatprep.mubr.msk.f32.mxu1 %vm295_vm0, %v1541_v55  ;;  %v1507_v22 = vld [vmem:[#allocation2 + $0x150] sm:$0xff]  ;;  %v1508_v23 = vld [vmem:[#allocation2 + $0x158] sm:$0xff] }
 0x1ad   : > { %3420 = vmatmul.mubr.msk.f32.gmra.mrb[28].mxu1 %vm295_vm0, %v1542_v52  ;;  %v2218_v55 = vld [vmem:[#allocation2 + $0x152] sm:$0xff]  ;;  %v2219_v52 = vld [vmem:[#allocation2 + $0x15a] sm:$0xff] }
 0x1ae   : > { %v1544_v57 = vld [vmem:[#allocation2 + $0x171] sm:$0xff] }
 0x1af   : > { %v1543_v56 = vld [vmem:[#allocation2 + $0x169] sm:$0xff] }
 0x1b0   : > { %3422 = vmatprep.mubr.msk.f32.mxu1 %vm295_vm0, %v1543_v56  ;;  %v1509_v24 = vld [vmem:[#allocation2 + $0x168] sm:$0xff]  ;;  %v1510_v25 = vld [vmem:[#allocation2 + $0x170] sm:$0xff] }
 0x1b1   : > { %3423 = vmatmul.mubr.msk.f32.gmra.mrb[30].mxu1 %vm295_vm0, %v1544_v57  ;;  %v2220_v56 = vld [vmem:[#allocation2 + $0x16a] sm:$0xff]  ;;  %v2221_v57 = vld [vmem:[#allocation2 + $0x172] sm:$0xff] }
 0x1b2   : > { %3429 = vmatprep.mubr.msk.f32.mxu1 %vm295_vm0, %v1479_v58  ;;  %v4294_v58 = vld [vmem:[%s4405_s4] ss:$0 sm:$0xff] }
 0x1b5   : > { %3430 = vmatmul.mubr.msk.f32.vlgmr.msra.gmra.mrb[0].mxu1 %vm295_vm0, %v1480_v59 }
 0x1b6   : > { %3552 = vmatpush3.bf16.msra.mxu1 %v4139_v13  ;;  %3432 = vmatprep.mubr.msk.f32.mxu1 %vm295_vm0, %v1481_v60  ;;  %v1488_v13 = vld [vmem:[#allocation2 + $0x68] sm:$0xff] }
 0x1b9   : > { %3433 = vmatmul.mubr.msk.f32.gmra.mrb[2].mxu1 %vm295_vm0, %v1482_v61 }
 0x1ba   : > { %3435 = vmatprep.mubr.msk.f32.mxu1 %vm295_vm0, %v1483_v62 }
 0x1bd   : > { %3436 = vmatmul.mubr.msk.f32.gmra.mrb[4].mxu1 %vm295_vm0, %v1484_v63 }
 0x1be   : > { %3438 = vmatprep.mubr.msk.f32.mxu1 %vm295_vm0, %v1485_v0 }
 0x1c1   : > { %3439 = vmatmul.mubr.msk.f32.gmra.mrb[6].mxu1 %vm295_vm0, %v1486_v1 }
 0x1c2   : > { %3441 = vmatprep.mubr.msk.f32.mxu1 %vm295_vm0, %v1487_v2 }
 0x1c5   : > { %3442 = vmatmul.mubr.msk.f32.gmra.mrb[8].mxu1 %vm295_vm0, %v1488_v13 }
 0x1c6   : > { %3444 = vmatprep.mubr.msk.f32.mxu1 %vm295_vm0, %v1489_v3 }
 0x1c9   : > { %3445 = vmatmul.mubr.msk.f32.gmra.mrb[10].mxu1 %vm295_vm0, %v1490_v4 }
 0x1ca   : > { %3447 = vmatprep.mubr.msk.f32.mxu1 %vm295_vm0, %v1491_v5 }
 0x1cd   : > { %3448 = vmatmul.mubr.msk.f32.gmra.mrb[12].mxu1 %vm295_vm0, %v1492_v6 }
 0x1ce   : > { %3450 = vmatprep.mubr.msk.f32.mxu1 %vm295_vm0, %v1493_v7 }
 0x1d1   : > { %3451 = vmatmul.mubr.msk.f32.gmra.mrb[14].mxu1 %vm295_vm0, %v1494_v8 }
 0x1d2   : > { %3453 = vmatprep.mubr.msk.f32.mxu1 %vm295_vm0, %v1495_v9 }
 0x1d5   : > { %3454 = vmatmul.mubr.msk.f32.gmra.mrb[16].mxu1 %vm295_vm0, %v1496_v10 }
 0x1d6   : > { %3456 = vmatprep.mubr.msk.f32.mxu1 %vm295_vm0, %v1497_v11 }
 0x1d9   : > { %3457 = vmatmul.mubr.msk.f32.gmra.mrb[18].mxu1 %vm295_vm0, %v1498_v12 }
 0x1da   : > { %3459 = vmatprep.mubr.msk.f32.mxu1 %vm295_vm0, %v1499_v14 }
 0x1dd   : > { %3460 = vmatmul.mubr.msk.f32.gmra.mrb[20].mxu1 %vm295_vm0, %v1500_v15 }
 0x1de   : > { %3462 = vmatprep.mubr.msk.f32.mxu1 %vm295_vm0, %v1501_v16 }
 0x1e1   : > { %3463 = vmatmul.mubr.msk.f32.gmra.mrb[22].mxu1 %vm295_vm0, %v1502_v17 }
 0x1e2   : > { %3465 = vmatprep.mubr.msk.f32.mxu1 %vm295_vm0, %v1503_v18 }
 0x1e5   : > { %3466 = vmatmul.mubr.msk.f32.gmra.mrb[24].mxu1 %vm295_vm0, %v1504_v19 }
 0x1e6   : > { %3468 = vmatprep.mubr.msk.f32.mxu1 %vm295_vm0, %v1505_v20 }
 0x1e9   : > { %3469 = vmatmul.mubr.msk.f32.gmra.mrb[26].mxu1 %vm295_vm0, %v1506_v21 }
 0x1ea   : > { %3471 = vmatprep.mubr.msk.f32.mxu1 %vm295_vm0, %v1507_v22 }
 0x1ed   : > { %3472 = vmatmul.mubr.msk.f32.gmra.mrb[28].mxu1 %vm295_vm0, %v1508_v23 }
 0x1ee   : > { %3474 = vmatprep.mubr.msk.f32.mxu1 %vm295_vm0, %v1509_v24 }
 0x1f1   : > { %3475 = vmatmul.mubr.msk.f32.gmra.mrb[30].mxu1 %vm295_vm0, %v1510_v25 }
 0x1f2   : > { %3481 = vmatprep.mubr.msk.f32.mxu1 %vm295_vm0, %v2190_v26 }
 0x1f5   : > { %3482 = vmatmul.mubr.msk.f32.vlgmr.msra.gmra.mrb[0].mxu1 %vm295_vm0, %v2191_v27 }
 0x1f6   : > { %3484 = vmatprep.mubr.msk.f32.mxu1 %vm295_vm0, %v2192_v28 }
 0x1f9   : > { %3485 = vmatmul.mubr.msk.f32.gmra.mrb[2].mxu1 %vm295_vm0, %v2193_v29 }
 0x1fa   : > { %3487 = vmatprep.mubr.msk.f32.mxu1 %vm295_vm0, %v2194_v30 }
 0x1fd   : > { %3488 = vmatmul.mubr.msk.f32.gmra.mrb[4].mxu1 %vm295_vm0, %v2195_v31 }
 0x1fe   : > { %3490 = vmatprep.mubr.msk.f32.mxu1 %vm295_vm0, %v2196_v32 }
 0x201   : > { %3491 = vmatmul.mubr.msk.f32.gmra.mrb[6].mxu1 %vm295_vm0, %v2197_v33 }
 0x202   : > { %3493 = vmatprep.mubr.msk.f32.mxu1 %vm295_vm0, %v2198_v34 }
 0x205   : > { %3494 = vmatmul.mubr.msk.f32.gmra.mrb[8].mxu1 %vm295_vm0, %v2199_v35 }
 0x206   : > { %3496 = vmatprep.mubr.msk.f32.mxu1 %vm295_vm0, %v2200_v36 }
 0x209   : > { %3497 = vmatmul.mubr.msk.f32.gmra.mrb[10].mxu1 %vm295_vm0, %v2201_v37 }
 0x20a   : > { %3499 = vmatprep.mubr.msk.f32.mxu1 %vm295_vm0, %v2202_v38 }
 0x20d   : > { %3500 = vmatmul.mubr.msk.f32.gmra.mrb[12].mxu1 %vm295_vm0, %v2203_v39 }
 0x20e   : > { %3502 = vmatprep.mubr.msk.f32.mxu1 %vm295_vm0, %v2204_v40 }
 0x211   : > { %3503 = vmatmul.mubr.msk.f32.gmra.mrb[14].mxu1 %vm295_vm0, %v2205_v41 }
 0x212   : > { %3505 = vmatprep.mubr.msk.f32.mxu1 %vm295_vm0, %v2206_v42 }
 0x215   : > { %3506 = vmatmul.mubr.msk.f32.gmra.mrb[16].mxu1 %vm295_vm0, %v2207_v43 }
 0x216   : > { %3508 = vmatprep.mubr.msk.f32.mxu1 %vm295_vm0, %v2208_v44 }
 0x219   : > { %3509 = vmatmul.mubr.msk.f32.gmra.mrb[18].mxu1 %vm295_vm0, %v2209_v45 }
 0x21a   : > { %3511 = vmatprep.mubr.msk.f32.mxu1 %vm295_vm0, %v2210_v46 }
 0x21d   : > { %3512 = vmatmul.mubr.msk.f32.gmra.mrb[20].mxu1 %vm295_vm0, %v2211_v47 }
 0x21e   : > { %3514 = vmatprep.mubr.msk.f32.mxu1 %vm295_vm0, %v2212_v48 }
 0x221   : > { %3515 = vmatmul.mubr.msk.f32.gmra.mrb[22].mxu1 %vm295_vm0, %v2213_v49 }
 0x222   : > { %3517 = vmatprep.mubr.msk.f32.mxu1 %vm295_vm0, %v2214_v50 }
 0x225   : > { %3518 = vmatmul.mubr.msk.f32.gmra.mrb[24].mxu1 %vm295_vm0, %v2215_v51 }
 0x226   : > { %3520 = vmatprep.mubr.msk.f32.mxu1 %vm295_vm0, %v2216_v53 }
 0x229   : > { %3521 = vmatmul.mubr.msk.f32.gmra.mrb[26].mxu1 %vm295_vm0, %v2217_v54 }
 0x22a   : > { %3523 = vmatprep.mubr.msk.f32.mxu1 %vm295_vm0, %v2218_v55 }
 0x22d   : > { %3524 = vmatmul.mubr.msk.f32.gmra.mrb[28].mxu1 %vm295_vm0, %v2219_v52 }
 0x22e   : > { %3526 = vmatprep.mubr.msk.f32.mxu1 %vm295_vm0, %v2220_v56 }
 0x231   : > { %3527 = vmatmul.mubr.msk.f32.gmra.mrb[30].mxu1 %vm295_vm0, %v2221_v57 }
 0x2c8   : > { %v3483_v59 = vpop.f32.mrb[0].mxu1 }
 0x2c9   : > { %v2586_v60 = vadd.f32 %v3483_v59, %v4294_v58  ;;  %v2387_v61 = vpop.f32.mrb[1].mxu1 }
 0x2ca   : > { %v2585_v62 = vadd.f32 %v4294_v58, %v2387_v61 }
 0x2cb   : > { %v2618_v63 = vmax.f32 %v2586_v60, 0.0 }
 0x2cc   : > { %v2617_v0 = vmax.f32 %v2585_v62, 0.0  ;;  %v3486_v1 = vpop.f32.mrb[2].mxu1 }
 0x2cd   : > { %2650 = vst.msk [vmem:[%s4301_s7 + $0x8] sm:$0xff] %vm295_vm0, %v2618_v63  ;;  %v2588_v2 = vadd.f32 %v3486_v1, %v4294_v58  ;;  %v2397_v13 = vpop.f32.mrb[3].mxu1 }
 0x2ce   : > { %2649 = vst.msk [vmem:[%s4301_s7] sm:$0xff] %vm295_vm0, %v2617_v0  ;;  %v2587_v3 = vadd.f32 %v4294_v58, %v2397_v13 }
 0x2cf   : > { %v2620_v4 = vmax.f32 %v2588_v2, 0.0 }
 0x2d0   : > { %v2619_v5 = vmax.f32 %v2587_v3, 0.0  ;;  %v3489_v6 = vpop.f32.mrb[4].mxu1 }
 0x2d1   : > { %2652 = vst.msk [vmem:[%s4301_s7 + $0x18] sm:$0xff] %vm295_vm0, %v2620_v4  ;;  %v2590_v7 = vadd.f32 %v3489_v6, %v4294_v58  ;;  %v2407_v8 = vpop.f32.mrb[5].mxu1 }
 0x2d2   : > { %2651 = vst.msk [vmem:[%s4301_s7 + $0x10] sm:$0xff] %vm295_vm0, %v2619_v5  ;;  %v2589_v9 = vadd.f32 %v4294_v58, %v2407_v8 }
 0x2d3   : > { %v2622_v10 = vmax.f32 %v2590_v7, 0.0 }
 0x2d4   : > { %v2621_v11 = vmax.f32 %v2589_v9, 0.0  ;;  %v3492_v12 = vpop.f32.mrb[6].mxu1 }
 0x2d5   : > { %2654 = vst.msk [vmem:[%s4301_s7 + $0x28] sm:$0xff] %vm295_vm0, %v2622_v10  ;;  %v2592_v14 = vadd.f32 %v3492_v12, %v4294_v58  ;;  %v2417_v15 = vpop.f32.mrb[7].mxu1 }
 0x2d6   : > { %2653 = vst.msk [vmem:[%s4301_s7 + $0x20] sm:$0xff] %vm295_vm0, %v2621_v11  ;;  %v2591_v16 = vadd.f32 %v4294_v58, %v2417_v15 }
 0x2d7   : > { %v2624_v17 = vmax.f32 %v2592_v14, 0.0 }
 0x2d8   : > { %v2623_v18 = vmax.f32 %v2591_v16, 0.0  ;;  %v3495_v19 = vpop.f32.mrb[8].mxu1 }
 0x2d9   : > { %2656 = vst.msk [vmem:[%s4301_s7 + $0x38] sm:$0xff] %vm295_vm0, %v2624_v17  ;;  %v2594_v20 = vadd.f32 %v3495_v19, %v4294_v58  ;;  %v2427_v21 = vpop.f32.mrb[9].mxu1 }
 0x2da   : > { %2655 = vst.msk [vmem:[%s4301_s7 + $0x30] sm:$0xff] %vm295_vm0, %v2623_v18  ;;  %v2593_v22 = vadd.f32 %v4294_v58, %v2427_v21 }
 0x2db   : > { %v2626_v23 = vmax.f32 %v2594_v20, 0.0 }
 0x2dc   : > { %v2625_v24 = vmax.f32 %v2593_v22, 0.0  ;;  %v3498_v25 = vpop.f32.mrb[10].mxu1 }
 0x2dd   : > { %2658 = vst.msk [vmem:[%s4301_s7 + $0x48] sm:$0xff] %vm295_vm0, %v2626_v23  ;;  %v2596_v26 = vadd.f32 %v3498_v25, %v4294_v58  ;;  %v2437_v27 = vpop.f32.mrb[11].mxu1 }
 0x2de   : > { %2657 = vst.msk [vmem:[%s4301_s7 + $0x40] sm:$0xff] %vm295_vm0, %v2625_v24  ;;  %v2595_v28 = vadd.f32 %v4294_v58, %v2437_v27 }
 0x2df   : > { %v2628_v29 = vmax.f32 %v2596_v26, 0.0 }
 0x2e0   : > { %v2627_v30 = vmax.f32 %v2595_v28, 0.0  ;;  %v3501_v31 = vpop.f32.mrb[12].mxu1 }
 0x2e1   : > { %2660 = vst.msk [vmem:[%s4301_s7 + $0x58] sm:$0xff] %vm295_vm0, %v2628_v29  ;;  %v2598_v32 = vadd.f32 %v3501_v31, %v4294_v58  ;;  %v2447_v33 = vpop.f32.mrb[13].mxu1 }
 0x2e2   : > { %2659 = vst.msk [vmem:[%s4301_s7 + $0x50] sm:$0xff] %vm295_vm0, %v2627_v30  ;;  %v2597_v34 = vadd.f32 %v4294_v58, %v2447_v33 }
 0x2e3   : > { %v2630_v35 = vmax.f32 %v2598_v32, 0.0 }
 0x2e4   : > { %v2629_v36 = vmax.f32 %v2597_v34, 0.0  ;;  %v3504_v37 = vpop.f32.mrb[14].mxu1 }
 0x2e5   : > { %2662 = vst.msk [vmem:[%s4301_s7 + $0x68] sm:$0xff] %vm295_vm0, %v2630_v35  ;;  %v2600_v38 = vadd.f32 %v3504_v37, %v4294_v58  ;;  %v2457_v39 = vpop.f32.mrb[15].mxu1 }
 0x2e6   : > { %2661 = vst.msk [vmem:[%s4301_s7 + $0x60] sm:$0xff] %vm295_vm0, %v2629_v36  ;;  %v2599_v40 = vadd.f32 %v4294_v58, %v2457_v39 }
 0x2e7   : > { %v2632_v41 = vmax.f32 %v2600_v38, 0.0 }
 0x2e8   : > { %v2631_v42 = vmax.f32 %v2599_v40, 0.0  ;;  %v3507_v43 = vpop.f32.mrb[16].mxu1 }
 0x2e9   : > { %2664 = vst.msk [vmem:[%s4301_s7 + $0x78] sm:$0xff] %vm295_vm0, %v2632_v41  ;;  %v2602_v44 = vadd.f32 %v3507_v43, %v4294_v58  ;;  %v2467_v45 = vpop.f32.mrb[17].mxu1 }
 0x2ea   : > { %2663 = vst.msk [vmem:[%s4301_s7 + $0x70] sm:$0xff] %vm295_vm0, %v2631_v42  ;;  %v2601_v46 = vadd.f32 %v4294_v58, %v2467_v45 }
 0x2eb   : > { %v2634_v47 = vmax.f32 %v2602_v44, 0.0 }
 0x2ec   : > { %v2633_v48 = vmax.f32 %v2601_v46, 0.0  ;;  %v3510_v49 = vpop.f32.mrb[18].mxu1 }
 0x2ed   : > { %2666 = vst.msk [vmem:[%s4301_s7 + $0x88] sm:$0xff] %vm295_vm0, %v2634_v47  ;;  %v2604_v50 = vadd.f32 %v3510_v49, %v4294_v58  ;;  %v2477_v51 = vpop.f32.mrb[19].mxu1 }
 0x2ee   : > { %2665 = vst.msk [vmem:[%s4301_s7 + $0x80] sm:$0xff] %vm295_vm0, %v2633_v48  ;;  %v2603_v53 = vadd.f32 %v4294_v58, %v2477_v51 }
 0x2ef   : > { %v2636_v54 = vmax.f32 %v2604_v50, 0.0 }
 0x2f0   : > { %v2635_v55 = vmax.f32 %v2603_v53, 0.0  ;;  %v3513_v52 = vpop.f32.mrb[20].mxu1 }
 0x2f1   : > { %2668 = vst.msk [vmem:[%s4301_s7 + $0x98] sm:$0xff] %vm295_vm0, %v2636_v54  ;;  %v2606_v56 = vadd.f32 %v3513_v52, %v4294_v58  ;;  %v2487_v57 = vpop.f32.mrb[21].mxu1 }
 0x2f2   : > { %2667 = vst.msk [vmem:[%s4301_s7 + $0x90] sm:$0xff] %vm295_vm0, %v2635_v55  ;;  %v2605_v59 = vadd.f32 %v4294_v58, %v2487_v57 }
 0x2f3   : > { %v2638_v60 = vmax.f32 %v2606_v56, 0.0 }
 0x2f4   : > { %v2637_v61 = vmax.f32 %v2605_v59, 0.0  ;;  %v3516_v62 = vpop.f32.mrb[22].mxu1 }
 0x2f5   : > { %2670 = vst.msk [vmem:[%s4301_s7 + $0xa8] sm:$0xff] %vm295_vm0, %v2638_v60  ;;  %v2608_v63 = vadd.f32 %v3516_v62, %v4294_v58  ;;  %v2497_v0 = vpop.f32.mrb[23].mxu1 }
 0x2f6   : > { %2669 = vst.msk [vmem:[%s4301_s7 + $0xa0] sm:$0xff] %vm295_vm0, %v2637_v61  ;;  %v2607_v1 = vadd.f32 %v4294_v58, %v2497_v0 }
 0x2f7   : > { %v2640_v2 = vmax.f32 %v2608_v63, 0.0 }
 0x2f8   : > { %v2639_v13 = vmax.f32 %v2607_v1, 0.0  ;;  %v3519_v3 = vpop.f32.mrb[24].mxu1 }
 0x2f9   : > { %2672 = vst.msk [vmem:[%s4301_s7 + $0xb8] sm:$0xff] %vm295_vm0, %v2640_v2  ;;  %v2610_v4 = vadd.f32 %v3519_v3, %v4294_v58  ;;  %v2507_v5 = vpop.f32.mrb[25].mxu1 }
 0x2fa   : > { %2671 = vst.msk [vmem:[%s4301_s7 + $0xb0] sm:$0xff] %vm295_vm0, %v2639_v13  ;;  %v2609_v6 = vadd.f32 %v4294_v58, %v2507_v5 }
 0x2fb   : > { %v2642_v7 = vmax.f32 %v2610_v4, 0.0 }
 0x2fc   : > { %v2641_v8 = vmax.f32 %v2609_v6, 0.0  ;;  %v3522_v9 = vpop.f32.mrb[26].mxu1 }
 0x2fd   : > { %2674 = vst.msk [vmem:[%s4301_s7 + $0xc8] sm:$0xff] %vm295_vm0, %v2642_v7  ;;  %v2612_v10 = vadd.f32 %v3522_v9, %v4294_v58  ;;  %v2517_v11 = vpop.f32.mrb[27].mxu1 }
 0x2fe   : > { %2673 = vst.msk [vmem:[%s4301_s7 + $0xc0] sm:$0xff] %vm295_vm0, %v2641_v8  ;;  %v2611_v12 = vadd.f32 %v4294_v58, %v2517_v11 }
 0x2ff   : > { %v2644_v14 = vmax.f32 %v2612_v10, 0.0 }
 0x300   : > { %v2643_v15 = vmax.f32 %v2611_v12, 0.0  ;;  %v3525_v16 = vpop.f32.mrb[28].mxu1 }
 0x301   : > { %2676 = vst.msk [vmem:[%s4301_s7 + $0xd8] sm:$0xff] %vm295_vm0, %v2644_v14  ;;  %v2614_v17 = vadd.f32 %v3525_v16, %v4294_v58  ;;  %v2527_v18 = vpop.f32.mrb[29].mxu1 }
 0x302   : > { %2675 = vst.msk [vmem:[%s4301_s7 + $0xd0] sm:$0xff] %vm295_vm0, %v2643_v15  ;;  %v2613_v19 = vadd.f32 %v4294_v58, %v2527_v18 }
 0x303   : > { %v2646_v20 = vmax.f32 %v2614_v17, 0.0 }
 0x304   : > { %v2645_v21 = vmax.f32 %v2613_v19, 0.0  ;;  %v3528_v22 = vpop.f32.mrb[30].mxu1 }
 0x305   : > { %2678 = vst.msk [vmem:[%s4301_s7 + $0xe8] sm:$0xff] %vm295_vm0, %v2646_v20  ;;  %v2616_v23 = vadd.f32 %v3528_v22, %v4294_v58  ;;  %v2537_v24 = vpop.f32.mrb[31].mxu1 }
 0x306   : > { %2677 = vst.msk [vmem:[%s4301_s7 + $0xe0] sm:$0xff] %vm295_vm0, %v2645_v21  ;;  %v2615_v25 = vadd.f32 %v4294_v58, %v2537_v24 }
 0x307   : > { %v2648_v26 = vmax.f32 %v2616_v23, 0.0 }
 0x308   : > { %v2647_v27 = vmax.f32 %v2615_v25, 0.0 }
 0x309   : > { %2680 = vst.msk [vmem:[%s4301_s7 + $0xf8] sm:$0xff] %vm295_vm0, %v2648_v26 }
 0x30a   : > { %2679 = vst.msk [vmem:[%s4301_s7 + $0xf0] sm:$0xff] %vm295_vm0, %v2647_v27 }
 0x30b PF: > { %s15_s18 = sadd.s32 1, %s3697_s18  }
 0x30c   : > { %p12_p4 = scmp.ge.s32.totalorder %s15_s18, 4  }
 0x30e   :  { %14 = sbr.rel (!%p12_p4) target bundleno = 1 (0x1), region = 76 }

// kernel: inception_forward.6
= control target key start
LH: loop header
LB: loop body
LE: loop exit
PB: predicated region body
PF: predicated region fallthrough
CT: control target
= control target key end

     0   :  { %s3653_s18 = smov 0   ;;  %s4372_s0 = inlined_call_operand.vmem [shape: f32[2,16,18,16], index: 0, kind: input, shape index: {}]   ;;  %s4373_s1 = inlined_call_operand.vmem [shape: f32[3,16,16], index: 1, kind: input, shape index: {}]   ;;  %s4374_s2 = inlined_call_operand.vmem [shape: f32[1,16], index: 2, kind: input, shape index: {}]   ;;  %s4375_s3 = inlined_call_operand.vmem [shape: f32[3,16,16], index: 3, kind: input, shape index: {}]   ;;  %s4376_s4 = inlined_call_operand.vmem [shape: f32[1,16], index: 4, kind: input, shape index: {}]   ;;  %s4377_s5 = inlined_call_operand.vmem [shape: f32[2,16,16,16], index: 5, kind: output, shape index: {}]  }
   0x1 LB: > { %s2723_s19 = sadd.s32 4294967295, %s3620_s18   ;;  %p2727_p0 = scmp.ge.s32.totalorder %s3620_s18, 1  ;;  %s3620_s18 = sphi %s3653_s18, %s15_s18  }
   0x2   : > { %p187_p1 = scmp.lt.s32.totalorder %s3620_s18, 3 }
   0x4   : > { %p188_p2 = pnand %p2727_p0, %p187_p1 }
   0x5   : > { %v2731_v0 = vld [vmem:[%s4373_s1 + $0x10] sm:$0xff] (!%p188_p2)  ;;  %v2732_v1 = vld [vmem:[%s4373_s1 + $0x18] sm:$0xff] (!%p188_p2)  ;;  %p215_p3 = scmp.lt.s32.totalorder (!%p188_p2), %s2723_s19, 1  ;;  %v257_v2 = vld [vmem:[%s4373_s1] sm:$0xff] (!%p188_p2)  ;;  %vm294_vm0 = vcmask (!%p188_p2), 130048  }
   0x6   : > { %191 = sbr.rel (%p188_p2) target bundleno = 779 (0x30b), region = 40  ;;  %v3452_v3 = vpack.c.bf16 (!%p188_p2), %v2732_v1, %v2731_v0  ;;  %v258_v4 = vld [vmem:[%s4373_s1 + $0x8] sm:$0xff] (!%p188_p2)  ;;  %v2797_v6 = vld [vmem:[%s4373_s1 + $0x20] sm:$0xff] (!%p188_p2) }
   0x7   : > { %v3456_v5 = vpack.c.bf16 (!%p188_p2), %v258_v4, %v257_v2  ;;  %v2798_v7 = vld [vmem:[%s4373_s1 + $0x28] sm:$0xff] (!%p188_p2) }
   0x8   : > { %3453 = vmatprep.subr.bf16.mxu0 (!%p188_p2), %v3452_v3  ;;  %v3690_v11 = vpack.c.bf16 (!%p188_p2), %v2798_v7, %v2797_v6 }
   0x9   : > { %3455 = vmatpush3.bf16.msra.mxu0 (!%p188_p2), %v3452_v3 }
   0xa   : > { %3457 = vmatprep.subr.bf16.mxu0 (!%p188_p2), %v3456_v5 }
   0xd   : > { %s4379_s19 = smov (!%p215_p3, %s2723_s19), 1 }
   0xe   : > { %s3604_s28 = smul.u32 384, %s4379_s19  ;;  %s2935_s29 = sshll.u32 %s4379_s19, 8 }
   0xf   : > { %s4272_s7 = scalar_lea.vmem %s4377_s5, %s2935_s29 }
  0x10   : > { %s3685_s10 = scalar_lea.vmem %s4372_s0, %s3604_s28 }
  0x11   : > { %v259_v8 = vld [vmem:[%s3685_s10 + $0x1] sm:$0xff]  ;;  %v260_v9 = vld [vmem:[%s3685_s10 + $0x9] sm:$0xff]  ;;  %v261_v10 = vld [vmem:[%s3685_s10 + $0x19] sm:$0xff] }
  0x12   : > { %3144 = vmatprep.mubr.msk.f32.mxu0 %vm294_vm0, %v259_v8  ;;  %v262_v12 = vld [vmem:[%s3685_s10 + $0x21] sm:$0xff]  ;;  %v263_v13 = vld [vmem:[%s3685_s10 + $0x31] sm:$0xff]  ;;  %v264_v14 = vld [vmem:[%s3685_s10 + $0x39] sm:$0xff] }
  0x13   : > { %3145 = vmatmul.mubr.msk.f32.vlgmr.msra.gmra.mrb[0].mxu0 %vm294_vm0, %v260_v9  ;;  %v265_v15 = vld [vmem:[%s3685_s10 + $0x49] sm:$0xff]  ;;  %v266_v16 = vld [vmem:[%s3685_s10 + $0x51] sm:$0xff]  ;;  %v267_v17 = vld [vmem:[%s3685_s10 + $0x61] sm:$0xff] }
  0x14   : > { %3459 = vmatpush3.bf16.msra.mxu0 %v3456_v5  ;;  %3147 = vmatprep.mubr.msk.f32.mxu0 %vm294_vm0, %v261_v10  ;;  %v268_v18 = vld [vmem:[%s3685_s10 + $0x69] sm:$0xff]  ;;  %v269_v19 = vld [vmem:[%s3685_s10 + $0x79] sm:$0xff]  ;;  %v270_v20 = vld [vmem:[%s3685_s10 + $0x81] sm:$0xff] }
  0x15   : > { %3461 = vmatprep.subr.bf16.mxu0 %v3690_v11  ;;  %v271_v21 = vld [vmem:[%s3685_s10 + $0x91] sm:$0xff]  ;;  %v272_v22 = vld [vmem:[%s3685_s10 + $0x99] sm:$0xff]  ;;  %v273_v23 = vld [vmem:[%s3685_s10 + $0xa9] sm:$0xff] }
  0x16   : > { %v274_v24 = vld [vmem:[%s3685_s10 + $0xb1] sm:$0xff]  ;;  %v275_v25 = vld [vmem:[%s3685_s10 + $0xc1] sm:$0xff]  ;;  %v276_v26 = vld [vmem:[%s3685_s10 + $0xc9] sm:$0xff] }
  0x17   : > { %3148 = vmatmul.mubr.msk.f32.gmra.mrb[2].mxu0 %vm294_vm0, %v262_v12  ;;  %v277_v27 = vld [vmem:[%s3685_s10 + $0xd9] sm:$0xff]  ;;  %v278_v28 = vld [vmem:[%s3685_s10 + $0xe1] sm:$0xff]  ;;  %v279_v29 = vld [vmem:[%s3685_s10 + $0xf1] sm:$0xff] }
  0x18   : > { %3150 = vmatprep.mubr.msk.f32.mxu0 %vm294_vm0, %v263_v13  ;;  %v280_v30 = vld [vmem:[%s3685_s10 + $0xf9] sm:$0xff]  ;;  %v281_v31 = vld [vmem:[%s3685_s10 + $0x109] sm:$0xff]  ;;  %v282_v32 = vld [vmem:[%s3685_s10 + $0x111] sm:$0xff] }
  0x19   : > { %v283_v33 = vld [vmem:[%s3685_s10 + $0x121] sm:$0xff]  ;;  %v284_v34 = vld [vmem:[%s3685_s10 + $0x129] sm:$0xff]  ;;  %v285_v35 = vld [vmem:[%s3685_s10 + $0x139] sm:$0xff] }
  0x1a   : > { %v286_v36 = vld [vmem:[%s3685_s10 + $0x141] sm:$0xff]  ;;  %v287_v37 = vld [vmem:[%s3685_s10 + $0x151] sm:$0xff]  ;;  %v288_v38 = vld [vmem:[%s3685_s10 + $0x159] sm:$0xff] }
  0x1b   : > { %3151 = vmatmul.mubr.msk.f32.gmra.mrb[4].mxu0 %vm294_vm0, %v264_v14  ;;  %v289_v39 = vld [vmem:[%s3685_s10 + $0x169] sm:$0xff]  ;;  %v290_v40 = vld [vmem:[%s3685_s10 + $0x171] sm:$0xff]  ;;  %v225_v41 = vld [vmem:[%s3685_s10] sm:$0xff] }
  0x1c   : > { %3153 = vmatprep.mubr.msk.f32.mxu0 %vm294_vm0, %v265_v15  ;;  %v226_v42 = vld [vmem:[%s3685_s10 + $0x8] sm:$0xff]  ;;  %v227_v43 = vld [vmem:[%s3685_s10 + $0x18] sm:$0xff]  ;;  %v228_v44 = vld [vmem:[%s3685_s10 + $0x20] sm:$0xff] }
  0x1d   : > { %v229_v45 = vld [vmem:[%s3685_s10 + $0x30] sm:$0xff]  ;;  %v230_v46 = vld [vmem:[%s3685_s10 + $0x38] sm:$0xff]  ;;  %v231_v47 = vld [vmem:[%s3685_s10 + $0x48] sm:$0xff] }
  0x1e   : > { %v232_v48 = vld [vmem:[%s3685_s10 + $0x50] sm:$0xff]  ;;  %v233_v49 = vld [vmem:[%s3685_s10 + $0x60] sm:$0xff]  ;;  %v234_v50 = vld [vmem:[%s3685_s10 + $0x68] sm:$0xff] }
  0x1f   : > { %3154 = vmatmul.mubr.msk.f32.gmra.mrb[6].mxu0 %vm294_vm0, %v266_v16  ;;  %v235_v51 = vld [vmem:[%s3685_s10 + $0x78] sm:$0xff]  ;;  %v236_v52 = vld [vmem:[%s3685_s10 + $0x80] sm:$0xff]  ;;  %v237_v53 = vld [vmem:[%s3685_s10 + $0x90] sm:$0xff] }
  0x20   : > { %3156 = vmatprep.mubr.msk.f32.mxu0 %vm294_vm0, %v267_v17  ;;  %v238_v54 = vld [vmem:[%s3685_s10 + $0x98] sm:$0xff]  ;;  %v239_v55 = vld [vmem:[%s3685_s10 + $0xa8] sm:$0xff]  ;;  %v240_v56 = vld [vmem:[%s3685_s10 + $0xb0] sm:$0xff] }
  0x21   : > { %v241_v57 = vld [vmem:[%s3685_s10 + $0xc0] sm:$0xff]  ;;  %v242_v58 = vld [vmem:[%s3685_s10 + $0xc8] sm:$0xff]  ;;  %v243_v59 = vld [vmem:[%s3685_s10 + $0xd8] sm:$0xff] }
  0x22   : > { %v244_v60 = vld [vmem:[%s3685_s10 + $0xe0] sm:$0xff]  ;;  %v245_v61 = vld [vmem:[%s3685_s10 + $0xf0] sm:$0xff]  ;;  %v246_v62 = vld [vmem:[%s3685_s10 + $0xf8] sm:$0xff] }
  0x23   : > { %3157 = vmatmul.mubr.msk.f32.gmra.mrb[8].mxu0 %vm294_vm0, %v268_v18  ;;  %v247_v63 = vld [vmem:[%s3685_s10 + $0x108] sm:$0xff]  ;;  %v248_v0 = vld [vmem:[%s3685_s10 + $0x110] sm:$0xff]  ;;  %v249_v1 = vld [vmem:[%s3685_s10 + $0x120] sm:$0xff] }
  0x24   : > { %3159 = vmatprep.mubr.msk.f32.mxu0 %vm294_vm0, %v269_v19  ;;  %v250_v2 = vld [vmem:[%s3685_s10 + $0x128] sm:$0xff]  ;;  %v251_v3 = vld [vmem:[%s3685_s10 + $0x138] sm:$0xff]  ;;  %v252_v4 = vld [vmem:[%s3685_s10 + $0x140] sm:$0xff] }
  0x25   : > { %v253_v5 = vld [vmem:[%s3685_s10 + $0x150] sm:$0xff]  ;;  %v254_v6 = vld [vmem:[%s3685_s10 + $0x158] sm:$0xff]  ;;  %v255_v7 = vld [vmem:[%s3685_s10 + $0x168] sm:$0xff] }
  0x26   : > { %v256_v8 = vld [vmem:[%s3685_s10 + $0x170] sm:$0xff]  ;;  %v937_v9 = vld [vmem:[%s3685_s10 + $0x2] sm:$0xff]  ;;  %v942_v14 = vld [vmem:[%s3685_s10 + $0x3a] sm:$0xff] }
  0x27   : > { %3160 = vmatmul.mubr.msk.f32.gmra.mrb[10].mxu0 %vm294_vm0, %v270_v20  ;;  %v938_v10 = vld [vmem:[%s3685_s10 + $0xa] sm:$0xff]  ;;  %v940_v12 = vld [vmem:[%s3685_s10 + $0x22] sm:$0xff]  ;;  %v941_v13 = vld [vmem:[%s3685_s10 + $0x32] sm:$0xff] }
  0x28   : > { %3162 = vmatprep.mubr.msk.f32.mxu0 %vm294_vm0, %v271_v21  ;;  %v943_v15 = vld [vmem:[%s3685_s10 + $0x4a] sm:$0xff]  ;;  %v944_v16 = vld [vmem:[%s3685_s10 + $0x52] sm:$0xff]  ;;  %v945_v17 = vld [vmem:[%s3685_s10 + $0x62] sm:$0xff] }
  0x29   : > { %v946_v18 = vld [vmem:[%s3685_s10 + $0x6a] sm:$0xff]  ;;  %v947_v19 = vld [vmem:[%s3685_s10 + $0x7a] sm:$0xff]  ;;  %v948_v20 = vld [vmem:[%s3685_s10 + $0x82] sm:$0xff] }
  0x2a   : > { %v949_v21 = vld [vmem:[%s3685_s10 + $0x92] sm:$0xff] }
  0x2b   : > { %3163 = vmatmul.mubr.msk.f32.gmra.mrb[12].mxu0 %vm294_vm0, %v272_v22  ;;  %v950_v22 = vld [vmem:[%s3685_s10 + $0x9a] sm:$0xff] }
  0x2c   : > { %3165 = vmatprep.mubr.msk.f32.mxu0 %vm294_vm0, %v273_v23  ;;  %v951_v23 = vld [vmem:[%s3685_s10 + $0xaa] sm:$0xff] }
  0x2f   : > { %3166 = vmatmul.mubr.msk.f32.gmra.mrb[14].mxu0 %vm294_vm0, %v274_v24  ;;  %v952_v24 = vld [vmem:[%s3685_s10 + $0xb2] sm:$0xff] }
  0x30   : > { %3168 = vmatprep.mubr.msk.f32.mxu0 %vm294_vm0, %v275_v25  ;;  %v953_v25 = vld [vmem:[%s3685_s10 + $0xc2] sm:$0xff] }
  0x33   : > { %3169 = vmatmul.mubr.msk.f32.gmra.mrb[16].mxu0 %vm294_vm0, %v276_v26  ;;  %v954_v26 = vld [vmem:[%s3685_s10 + $0xca] sm:$0xff] }
  0x34   : > { %3171 = vmatprep.mubr.msk.f32.mxu0 %vm294_vm0, %v277_v27  ;;  %v955_v27 = vld [vmem:[%s3685_s10 + $0xda] sm:$0xff] }
  0x37   : > { %3172 = vmatmul.mubr.msk.f32.gmra.mrb[18].mxu0 %vm294_vm0, %v278_v28  ;;  %v956_v28 = vld [vmem:[%s3685_s10 + $0xe2] sm:$0xff] }
  0x38   : > { %3174 = vmatprep.mubr.msk.f32.mxu0 %vm294_vm0, %v279_v29  ;;  %v957_v29 = vld [vmem:[%s3685_s10 + $0xf2] sm:$0xff] }
  0x3b   : > { %3175 = vmatmul.mubr.msk.f32.gmra.mrb[20].mxu0 %vm294_vm0, %v280_v30  ;;  %v958_v30 = vld [vmem:[%s3685_s10 + $0xfa] sm:$0xff] }
  0x3c   : > { %3177 = vmatprep.mubr.msk.f32.mxu0 %vm294_vm0, %v281_v31  ;;  %v959_v31 = vld [vmem:[%s3685_s10 + $0x10a] sm:$0xff] }
  0x3f   : > { %3178 = vmatmul.mubr.msk.f32.gmra.mrb[22].mxu0 %vm294_vm0, %v282_v32  ;;  %v960_v32 = vld [vmem:[%s3685_s10 + $0x112] sm:$0xff] }
  0x40   : > { %3180 = vmatprep.mubr.msk.f32.mxu0 %vm294_vm0, %v283_v33  ;;  %v961_v33 = vld [vmem:[%s3685_s10 + $0x122] sm:$0xff] }
  0x43   : > { %3181 = vmatmul.mubr.msk.f32.gmra.mrb[24].mxu0 %vm294_vm0, %v284_v34  ;;  %v962_v34 = vld [vmem:[%s3685_s10 + $0x12a] sm:$0xff] }
  0x44   : > { %3183 = vmatprep.mubr.msk.f32.mxu0 %vm294_vm0, %v285_v35  ;;  %v963_v35 = vld [vmem:[%s3685_s10 + $0x13a] sm:$0xff] }
  0x47   : > { %3184 = vmatmul.mubr.msk.f32.gmra.mrb[26].mxu0 %vm294_vm0, %v286_v36  ;;  %v964_v36 = vld [vmem:[%s3685_s10 + $0x142] sm:$0xff] }
  0x48   : > { %3186 = vmatprep.mubr.msk.f32.mxu0 %vm294_vm0, %v287_v37  ;;  %v965_v37 = vld [vmem:[%s3685_s10 + $0x152] sm:$0xff] }
  0x4b   : > { %3187 = vmatmul.mubr.msk.f32.gmra.mrb[28].mxu0 %vm294_vm0, %v288_v38  ;;  %v966_v38 = vld [vmem:[%s3685_s10 + $0x15a] sm:$0xff] }
  0x4c   : > { %3189 = vmatprep.mubr.msk.f32.mxu0 %vm294_vm0, %v289_v39  ;;  %v967_v39 = vld [vmem:[%s3685_s10 + $0x16a] sm:$0xff] }
  0x4f   : > { %3190 = vmatmul.mubr.msk.f32.gmra.mrb[30].mxu0 %vm294_vm0, %v290_v40  ;;  %v968_v40 = vld [vmem:[%s3685_s10 + $0x172] sm:$0xff] }
  0x50   : > { %3196 = vmatprep.mubr.msk.f32.mxu0 %vm294_vm0, %v225_v41  ;;  %v3622_v41 = vmov 0.0  }
  0x51   : > { %1399 = vst.msk [vmem:[#allocation2 + $0x18] sm:$0xff] %vm294_vm0, %v3622_v41  ;;  %1396 = vst.msk [vmem:[#allocation2] sm:$0xff] %vm294_vm0, %v3622_v41 }
  0x52   : > { %1397 = vst.msk [vmem:[#allocation2 + $0x8] sm:$0xff] %vm294_vm0, %v3622_v41  ;;  %1398 = vst.msk [vmem:[#allocation2 + $0x10] sm:$0xff] %vm294_vm0, %v3622_v41 }
  0x53   : > { %3197 = vmatmul.mubr.msk.f32.vlgmr.msra.gmra.mrb[0].mxu0 %vm294_vm0, %v226_v42  ;;  %1400 = vst.msk [vmem:[#allocation2 + $0x20] sm:$0xff] %vm294_vm0, %v3622_v41  ;;  %1401 = vst.msk [vmem:[#allocation2 + $0x28] sm:$0xff] %vm294_vm0, %v3622_v41  ;;  %v2832_v42 = vld [vmem:[%s4375_s3 + $0x10] sm:$0xff] }
  0x54   : > { %3463 = vmatpush3.bf16.msra.mxu0 %v3690_v11  ;;  %3199 = vmatprep.mubr.msk.f32.mxu0 %vm294_vm0, %v227_v43  ;;  %v939_v11 = vld [vmem:[%s3685_s10 + $0x1a] sm:$0xff]  ;;  %1402 = vst.msk [vmem:[#allocation2 + $0x30] sm:$0xff] %vm294_vm0, %v3622_v41  ;;  %1403 = vst.msk [vmem:[#allocation2 + $0x38] sm:$0xff] %vm294_vm0, %v3622_v41 }
  0x55   : > { %1404 = vst.msk [vmem:[#allocation2 + $0x40] sm:$0xff] %vm294_vm0, %v3622_v41  ;;  %1405 = vst.msk [vmem:[#allocation2 + $0x48] sm:$0xff] %vm294_vm0, %v3622_v41  ;;  %v2833_v43 = vld [vmem:[%s4375_s3 + $0x18] sm:$0xff] }
  0x56   : > { %1406 = vst.msk [vmem:[#allocation2 + $0x50] sm:$0xff] %vm294_vm0, %v3622_v41  ;;  %1407 = vst.msk [vmem:[#allocation2 + $0x58] sm:$0xff] %vm294_vm0, %v3622_v41 }
  0x57   : > { %3200 = vmatmul.mubr.msk.f32.gmra.mrb[2].mxu0 %vm294_vm0, %v228_v44  ;;  %1408 = vst.msk [vmem:[#allocation2 + $0x60] sm:$0xff] %vm294_vm0, %v3622_v41  ;;  %1409 = vst.msk [vmem:[#allocation2 + $0x68] sm:$0xff] %vm294_vm0, %v3622_v41  ;;  %v3464_v44 = vpack.c.bf16 %v2833_v43, %v2832_v42 }
  0x58   : > { %3202 = vmatprep.mubr.msk.f32.mxu0 %vm294_vm0, %v229_v45  ;;  %1410 = vst.msk [vmem:[#allocation2 + $0x70] sm:$0xff] %vm294_vm0, %v3622_v41  ;;  %1411 = vst.msk [vmem:[#allocation2 + $0x78] sm:$0xff] %vm294_vm0, %v3622_v41  ;;  %v1497_v45 = vld [vmem:[%s4375_s3] sm:$0xff] }
  0x59   : > { %1412 = vst.msk [vmem:[#allocation2 + $0x80] sm:$0xff] %vm294_vm0, %v3622_v41  ;;  %1413 = vst.msk [vmem:[#allocation2 + $0x88] sm:$0xff] %vm294_vm0, %v3622_v41  ;;  %3465 = vmatprep.subr.bf16.mxu1 %v3464_v44 }
  0x5a   : > { %1414 = vst.msk [vmem:[#allocation2 + $0x90] sm:$0xff] %vm294_vm0, %v3622_v41  ;;  %1415 = vst.msk [vmem:[#allocation2 + $0x98] sm:$0xff] %vm294_vm0, %v3622_v41  ;;  %3467 = vmatpush3.bf16.msra.mxu1 %v3464_v44 }
  0x5b   : > { %3203 = vmatmul.mubr.msk.f32.gmra.mrb[4].mxu0 %vm294_vm0, %v230_v46  ;;  %1416 = vst.msk [vmem:[#allocation2 + $0xa0] sm:$0xff] %vm294_vm0, %v3622_v41  ;;  %1417 = vst.msk [vmem:[#allocation2 + $0xa8] sm:$0xff] %vm294_vm0, %v3622_v41  ;;  %v1498_v46 = vld [vmem:[%s4375_s3 + $0x8] sm:$0xff] }
  0x5c   : > { %3205 = vmatprep.mubr.msk.f32.mxu0 %vm294_vm0, %v231_v47  ;;  %1418 = vst.msk [vmem:[#allocation2 + $0xb0] sm:$0xff] %vm294_vm0, %v3622_v41  ;;  %1419 = vst.msk [vmem:[#allocation2 + $0xb8] sm:$0xff] %vm294_vm0, %v3622_v41  ;;  %v3468_v47 = vpack.c.bf16 %v1498_v46, %v1497_v45 }
  0x5d   : > { %1420 = vst.msk [vmem:[#allocation2 + $0xc0] sm:$0xff] %vm294_vm0, %v3622_v41  ;;  %1421 = vst.msk [vmem:[#allocation2 + $0xc8] sm:$0xff] %vm294_vm0, %v3622_v41 }
  0x5e   : > { %1422 = vst.msk [vmem:[#allocation2 + $0xd0] sm:$0xff] %vm294_vm0, %v3622_v41  ;;  %1423 = vst.msk [vmem:[#allocation2 + $0xd8] sm:$0xff] %vm294_vm0, %v3622_v41  ;;  %3469 = vmatprep.subr.bf16.mxu1 %v3468_v47 }
  0x5f   : > { %3206 = vmatmul.mubr.msk.f32.gmra.mrb[6].mxu0 %vm294_vm0, %v232_v48  ;;  %1424 = vst.msk [vmem:[#allocation2 + $0xe0] sm:$0xff] %vm294_vm0, %v3622_v41  ;;  %1425 = vst.msk [vmem:[#allocation2 + $0xe8] sm:$0xff] %vm294_vm0, %v3622_v41  ;;  %v3934_v48 = vld [vmem:[%s4374_s2] ss:$0 sm:$0xff] }
  0x60   : > { %3208 = vmatprep.mubr.msk.f32.mxu0 %vm294_vm0, %v233_v49  ;;  %1426 = vst.msk [vmem:[#allocation2 + $0xf0] sm:$0xff] %vm294_vm0, %v3622_v41  ;;  %1427 = vst.msk [vmem:[#allocation2 + $0xf8] sm:$0xff] %vm294_vm0, %v3622_v41 }
  0x61   : > { %1428 = vst.msk [vmem:[#allocation2 + $0x100] sm:$0xff] %vm294_vm0, %v3622_v41  ;;  %1429 = vst.msk [vmem:[#allocation2 + $0x108] sm:$0xff] %vm294_vm0, %v3622_v41 }
  0x62   : > { %1430 = vst.msk [vmem:[#allocation2 + $0x110] sm:$0xff] %vm294_vm0, %v3622_v41  ;;  %1431 = vst.msk [vmem:[#allocation2 + $0x118] sm:$0xff] %vm294_vm0, %v3622_v41 }
  0x63   : > { %3209 = vmatmul.mubr.msk.f32.gmra.mrb[8].mxu0 %vm294_vm0, %v234_v50 }
  0x64   : > { %3211 = vmatprep.mubr.msk.f32.mxu0 %vm294_vm0, %v235_v51 }
  0x67   : > { %3212 = vmatmul.mubr.msk.f32.gmra.mrb[10].mxu0 %vm294_vm0, %v236_v52 }
  0x68   : > { %3214 = vmatprep.mubr.msk.f32.mxu0 %vm294_vm0, %v237_v53 }
  0x6b   : > { %3215 = vmatmul.mubr.msk.f32.gmra.mrb[12].mxu0 %vm294_vm0, %v238_v54 }
  0x6c   : > { %3217 = vmatprep.mubr.msk.f32.mxu0 %vm294_vm0, %v239_v55 }
  0x6f   : > { %3218 = vmatmul.mubr.msk.f32.gmra.mrb[14].mxu0 %vm294_vm0, %v240_v56 }
  0x70   : > { %3220 = vmatprep.mubr.msk.f32.mxu0 %vm294_vm0, %v241_v57 }
  0x73   : > { %3221 = vmatmul.mubr.msk.f32.gmra.mrb[16].mxu0 %vm294_vm0, %v242_v58 }
  0x74   : > { %3223 = vmatprep.mubr.msk.f32.mxu0 %vm294_vm0, %v243_v59 }
  0x77   : > { %3224 = vmatmul.mubr.msk.f32.gmra.mrb[18].mxu0 %vm294_vm0, %v244_v60 }
  0x78   : > { %3226 = vmatprep.mubr.msk.f32.mxu0 %vm294_vm0, %v245_v61 }
  0x7b   : > { %3227 = vmatmul.mubr.msk.f32.gmra.mrb[20].mxu0 %vm294_vm0, %v246_v62 }
  0x7c   : > { %3229 = vmatprep.mubr.msk.f32.mxu0 %vm294_vm0, %v247_v63 }
  0x7f   : > { %3230 = vmatmul.mubr.msk.f32.gmra.mrb[22].mxu0 %vm294_vm0, %v248_v0 }
  0x80   : > { %3232 = vmatprep.mubr.msk.f32.mxu0 %vm294_vm0, %v249_v1  ;;  %v2898_v1 = vld [vmem:[%s4375_s3 + $0x20] sm:$0xff] }
  0x83   : > { %3233 = vmatmul.mubr.msk.f32.gmra.mrb[24].mxu0 %vm294_vm0, %v250_v2  ;;  %v2899_v2 = vld [vmem:[%s4375_s3 + $0x28] sm:$0xff] }
  0x84   : > { %3235 = vmatprep.mubr.msk.f32.mxu0 %vm294_vm0, %v251_v3 }
  0x87   : > { %3236 = vmatmul.mubr.msk.f32.gmra.mrb[26].mxu0 %vm294_vm0, %v252_v4 }
  0x88   : > { %3238 = vmatprep.mubr.msk.f32.mxu0 %vm294_vm0, %v253_v5 }
  0x8b   : > { %3239 = vmatmul.mubr.msk.f32.gmra.mrb[28].mxu0 %vm294_vm0, %v254_v6 }
  0x8c   : > { %3241 = vmatprep.mubr.msk.f32.mxu0 %vm294_vm0, %v255_v7 }
  0x8f   : > { %3242 = vmatmul.mubr.msk.f32.gmra.mrb[30].mxu0 %vm294_vm0, %v256_v8 }
  0x90   : > { %3248 = vmatprep.mubr.msk.f32.mxu0 %vm294_vm0, %v937_v9  ;;  %v3956_v9 = vpack.c.bf16 %v2899_v2, %v2898_v1 }
  0x93   : > { %3249 = vmatmul.mubr.msk.f32.vlgmr.msra.gmra.mrb[0].mxu0 %vm294_vm0, %v938_v10 }
  0x94   : > { %3251 = vmatprep.mubr.msk.f32.mxu0 %vm294_vm0, %v939_v11 }
  0x97   : > { %3252 = vmatmul.mubr.msk.f32.gmra.mrb[2].mxu0 %vm294_vm0, %v940_v12 }
  0x98   : > { %3254 = vmatprep.mubr.msk.f32.mxu0 %vm294_vm0, %v941_v13 }
  0x9b   : > { %3255 = vmatmul.mubr.msk.f32.gmra.mrb[4].mxu0 %vm294_vm0, %v942_v14 }
  0x9c   : > { %3257 = vmatprep.mubr.msk.f32.mxu0 %vm294_vm0, %v943_v15 }
  0x9f   : > { %3258 = vmatmul.mubr.msk.f32.gmra.mrb[6].mxu0 %vm294_vm0, %v944_v16 }
  0xa0   : > { %3260 = vmatprep.mubr.msk.f32.mxu0 %vm294_vm0, %v945_v17 }
  0xa3   : > { %3261 = vmatmul.mubr.msk.f32.gmra.mrb[8].mxu0 %vm294_vm0, %v946_v18 }
  0xa4   : > { %3263 = vmatprep.mubr.msk.f32.mxu0 %vm294_vm0, %v947_v19 }
  0xa7   : > { %3264 = vmatmul.mubr.msk.f32.gmra.mrb[10].mxu0 %vm294_vm0, %v948_v20 }
  0xa8   : > { %3266 = vmatprep.mubr.msk.f32.mxu0 %vm294_vm0, %v949_v21 }
  0xab   : > { %3267 = vmatmul.mubr.msk.f32.gmra.mrb[12].mxu0 %vm294_vm0, %v950_v22 }
  0xac   : > { %3269 = vmatprep.mubr.msk.f32.mxu0 %vm294_vm0, %v951_v23 }
  0xaf   : > { %3270 = vmatmul.mubr.msk.f32.gmra.mrb[14].mxu0 %vm294_vm0, %v952_v24 }
  0xb0   : > { %3272 = vmatprep.mubr.msk.f32.mxu0 %vm294_vm0, %v953_v25 }
  0xb3   : > { %3273 = vmatmul.mubr.msk.f32.gmra.mrb[16].mxu0 %vm294_vm0, %v954_v26 }
  0xb4   : > { %3275 = vmatprep.mubr.msk.f32.mxu0 %vm294_vm0, %v955_v27 }
  0xb7   : > { %3276 = vmatmul.mubr.msk.f32.gmra.mrb[18].mxu0 %vm294_vm0, %v956_v28 }
  0xb8   : > { %3278 = vmatprep.mubr.msk.f32.mxu0 %vm294_vm0, %v957_v29 }
  0xbb   : > { %3279 = vmatmul.mubr.msk.f32.gmra.mrb[20].mxu0 %vm294_vm0, %v958_v30 }
  0xbc   : > { %3281 = vmatprep.mubr.msk.f32.mxu0 %vm294_vm0, %v959_v31 }
  0xbf   : > { %3282 = vmatmul.mubr.msk.f32.gmra.mrb[22].mxu0 %vm294_vm0, %v960_v32 }
  0xc0   : > { %3284 = vmatprep.mubr.msk.f32.mxu0 %vm294_vm0, %v961_v33 }
  0xc3   : > { %3285 = vmatmul.mubr.msk.f32.gmra.mrb[24].mxu0 %vm294_vm0, %v962_v34 }
  0xc4   : > { %3287 = vmatprep.mubr.msk.f32.mxu0 %vm294_vm0, %v963_v35 }
  0xc7   : > { %3288 = vmatmul.mubr.msk.f32.gmra.mrb[26].mxu0 %vm294_vm0, %v964_v36 }
  0xc8   : > { %3290 = vmatprep.mubr.msk.f32.mxu0 %vm294_vm0, %v965_v37 }
  0xcb   : > { %3291 = vmatmul.mubr.msk.f32.gmra.mrb[28].mxu0 %vm294_vm0, %v966_v38 }
  0xcc   : > { %3293 = vmatprep.mubr.msk.f32.mxu0 %vm294_vm0, %v967_v39 }
  0xcf   : > { %3294 = vmatmul.mubr.msk.f32.gmra.mrb[30].mxu0 %vm294_vm0, %v968_v40 }
 0x166   : > { %v3250_v49 = vpop.f32.mrb[0].mxu0 }
 0x167   : > { %v1333_v50 = vadd.f32 %v3250_v49, %v3934_v48  ;;  %v1134_v51 = vpop.f32.mrb[1].mxu0 }
 0x168   : > { %v1332_v52 = vadd.f32 %v3934_v48, %v1134_v51 }
 0x169   : > { %v1365_v53 = vmax.f32 %v1333_v50, 0.0 }
 0x16a   : > { %v1364_v54 = vmax.f32 %v1332_v52, 0.0  ;;  %v3253_v55 = vpop.f32.mrb[2].mxu0 }
 0x16b   : > { %1434 = vst.msk [vmem:[#allocation2 + $0x18] sm:$0xff] %vm294_vm0, %v1365_v53  ;;  %v1335_v56 = vadd.f32 %v3253_v55, %v3934_v48  ;;  %v1144_v57 = vpop.f32.mrb[3].mxu0 }
 0x16c   : > { %1433 = vst.msk [vmem:[#allocation2 + $0x10] sm:$0xff] %vm294_vm0, %v1364_v54  ;;  %v1334_v58 = vadd.f32 %v3934_v48, %v1144_v57 }
 0x16d   : > { %v1367_v59 = vmax.f32 %v1335_v56, 0.0 }
 0x16e   : > { %v1366_v60 = vmax.f32 %v1334_v58, 0.0  ;;  %v3256_v61 = vpop.f32.mrb[4].mxu0 }
 0x16f   : > { %1436 = vst.msk [vmem:[#allocation2 + $0x28] sm:$0xff] %vm294_vm0, %v1367_v59  ;;  %v1337_v62 = vadd.f32 %v3256_v61, %v3934_v48  ;;  %v1154_v63 = vpop.f32.mrb[5].mxu0 }
 0x170   : > { %1435 = vst.msk [vmem:[#allocation2 + $0x20] sm:$0xff] %vm294_vm0, %v1366_v60  ;;  %v1336_v0 = vadd.f32 %v3934_v48, %v1154_v63 }
 0x171   : > { %v1369_v3 = vmax.f32 %v1337_v62, 0.0 }
 0x172   : > { %v1368_v4 = vmax.f32 %v1336_v0, 0.0  ;;  %v3259_v5 = vpop.f32.mrb[6].mxu0  ;;  %v3962_v11 = vld [vmem:[#allocation2 + $0x18] sm:$0xff] }
 0x173   : > { %1438 = vst.msk [vmem:[#allocation2 + $0x38] sm:$0xff] %vm294_vm0, %v1369_v3  ;;  %v1339_v6 = vadd.f32 %v3259_v5, %v3934_v48  ;;  %v1164_v7 = vpop.f32.mrb[7].mxu0  ;;  %v3954_v8 = vld [vmem:[#allocation2 + $0x10] sm:$0xff] }
 0x174   : > { %1437 = vst.msk [vmem:[#allocation2 + $0x30] sm:$0xff] %vm294_vm0, %v1368_v4  ;;  %v1338_v10 = vadd.f32 %v3934_v48, %v1164_v7  ;;  %3300 = vmatprep.mubr.msk.f32.mxu1 %vm294_vm0, %v3954_v8 }
 0x175   : > { %v1371_v12 = vmax.f32 %v1339_v6, 0.0  ;;  %3301 = vmatmul.mubr.msk.f32.vlgmr.msra.gmra.mrb[0].mxu1 %vm294_vm0, %v3962_v11 }
 0x176   : > { %v1370_v13 = vmax.f32 %v1338_v10, 0.0  ;;  %3471 = vmatpush3.bf16.msra.mxu1 %v3468_v47  ;;  %v3262_v14 = vpop.f32.mrb[8].mxu0  ;;  %v3975_v19 = vld [vmem:[#allocation2 + $0x28] sm:$0xff] }
 0x177   : > { %1440 = vst.msk [vmem:[#allocation2 + $0x48] sm:$0xff] %vm294_vm0, %v1371_v12  ;;  %v1341_v15 = vadd.f32 %v3262_v14, %v3934_v48  ;;  %v1174_v16 = vpop.f32.mrb[9].mxu0  ;;  %v3968_v17 = vld [vmem:[#allocation2 + $0x20] sm:$0xff]  ;;  %3473 = vmatprep.subr.bf16.mxu1 %v3956_v9 }
 0x178   : > { %1439 = vst.msk [vmem:[#allocation2 + $0x40] sm:$0xff] %vm294_vm0, %v1370_v13  ;;  %v1340_v18 = vadd.f32 %v3934_v48, %v1174_v16  ;;  %3303 = vmatprep.mubr.msk.f32.mxu1 %vm294_vm0, %v3968_v17 }
 0x179   : > { %v1373_v20 = vmax.f32 %v1341_v15, 0.0  ;;  %3304 = vmatmul.mubr.msk.f32.gmra.mrb[2].mxu1 %vm294_vm0, %v3975_v19 }
 0x17a   : > { %v1372_v21 = vmax.f32 %v1340_v18, 0.0  ;;  %v3265_v22 = vpop.f32.mrb[10].mxu0  ;;  %v3987_v27 = vld [vmem:[#allocation2 + $0x38] sm:$0xff] }
 0x17b   : > { %1442 = vst.msk [vmem:[#allocation2 + $0x58] sm:$0xff] %vm294_vm0, %v1373_v20  ;;  %v1343_v23 = vadd.f32 %v3265_v22, %v3934_v48  ;;  %v1184_v24 = vpop.f32.mrb[11].mxu0  ;;  %v3981_v25 = vld [vmem:[#allocation2 + $0x30] sm:$0xff] }
 0x17c   : > { %1441 = vst.msk [vmem:[#allocation2 + $0x50] sm:$0xff] %vm294_vm0, %v1372_v21  ;;  %v1342_v26 = vadd.f32 %v3934_v48, %v1184_v24  ;;  %3306 = vmatprep.mubr.msk.f32.mxu1 %vm294_vm0, %v3981_v25 }
 0x17d   : > { %v1375_v28 = vmax.f32 %v1343_v23, 0.0  ;;  %3307 = vmatmul.mubr.msk.f32.gmra.mrb[4].mxu1 %vm294_vm0, %v3987_v27 }
 0x17e   : > { %v1374_v29 = vmax.f32 %v1342_v26, 0.0  ;;  %v3268_v30 = vpop.f32.mrb[12].mxu0  ;;  %v3999_v35 = vld [vmem:[#allocation2 + $0x48] sm:$0xff] }
 0x17f   : > { %1444 = vst.msk [vmem:[#allocation2 + $0x68] sm:$0xff] %vm294_vm0, %v1375_v28  ;;  %v1345_v31 = vadd.f32 %v3268_v30, %v3934_v48  ;;  %v1194_v32 = vpop.f32.mrb[13].mxu0  ;;  %v3993_v33 = vld [vmem:[#allocation2 + $0x40] sm:$0xff] }
 0x180   : > { %1443 = vst.msk [vmem:[#allocation2 + $0x60] sm:$0xff] %vm294_vm0, %v1374_v29  ;;  %v1344_v34 = vadd.f32 %v3934_v48, %v1194_v32  ;;  %3309 = vmatprep.mubr.msk.f32.mxu1 %vm294_vm0, %v3993_v33 }
 0x181   : > { %v1377_v36 = vmax.f32 %v1345_v31, 0.0  ;;  %3310 = vmatmul.mubr.msk.f32.gmra.mrb[6].mxu1 %vm294_vm0, %v3999_v35 }
 0x182   : > { %v1376_v37 = vmax.f32 %v1344_v34, 0.0  ;;  %v3271_v38 = vpop.f32.mrb[14].mxu0  ;;  %v4011_v43 = vld [vmem:[#allocation2 + $0x58] sm:$0xff] }
 0x183   : > { %1446 = vst.msk [vmem:[#allocation2 + $0x78] sm:$0xff] %vm294_vm0, %v1377_v36  ;;  %v1347_v39 = vadd.f32 %v3271_v38, %v3934_v48  ;;  %v1204_v40 = vpop.f32.mrb[15].mxu0  ;;  %v4005_v41 = vld [vmem:[#allocation2 + $0x50] sm:$0xff] }
 0x184   : > { %1445 = vst.msk [vmem:[#allocation2 + $0x70] sm:$0xff] %vm294_vm0, %v1376_v37  ;;  %v1346_v42 = vadd.f32 %v3934_v48, %v1204_v40  ;;  %3312 = vmatprep.mubr.msk.f32.mxu1 %vm294_vm0, %v4005_v41 }
 0x185   : > { %v1379_v44 = vmax.f32 %v1347_v39, 0.0  ;;  %3313 = vmatmul.mubr.msk.f32.gmra.mrb[8].mxu1 %vm294_vm0, %v4011_v43 }
 0x186   : > { %v1378_v45 = vmax.f32 %v1346_v42, 0.0  ;;  %v3274_v46 = vpop.f32.mrb[16].mxu0  ;;  %v4023_v52 = vld [vmem:[#allocation2 + $0x68] sm:$0xff] }
 0x187   : > { %1448 = vst.msk [vmem:[#allocation2 + $0x88] sm:$0xff] %vm294_vm0, %v1379_v44  ;;  %v1349_v47 = vadd.f32 %v3274_v46, %v3934_v48  ;;  %v1214_v49 = vpop.f32.mrb[17].mxu0  ;;  %v4017_v50 = vld [vmem:[#allocation2 + $0x60] sm:$0xff] }
 0x188   : > { %1447 = vst.msk [vmem:[#allocation2 + $0x80] sm:$0xff] %vm294_vm0, %v1378_v45  ;;  %v1348_v51 = vadd.f32 %v3934_v48, %v1214_v49  ;;  %3315 = vmatprep.mubr.msk.f32.mxu1 %vm294_vm0, %v4017_v50 }
 0x189   : > { %v1381_v53 = vmax.f32 %v1349_v47, 0.0  ;;  %3316 = vmatmul.mubr.msk.f32.gmra.mrb[10].mxu1 %vm294_vm0, %v4023_v52 }
 0x18a   : > { %v1380_v54 = vmax.f32 %v1348_v51, 0.0  ;;  %v3277_v55 = vpop.f32.mrb[18].mxu0  ;;  %v4035_v60 = vld [vmem:[#allocation2 + $0x78] sm:$0xff] }
 0x18b   : > { %1450 = vst.msk [vmem:[#allocation2 + $0x98] sm:$0xff] %vm294_vm0, %v1381_v53  ;;  %v1351_v56 = vadd.f32 %v3277_v55, %v3934_v48  ;;  %v1224_v57 = vpop.f32.mrb[19].mxu0  ;;  %v4029_v58 = vld [vmem:[#allocation2 + $0x70] sm:$0xff] }
 0x18c   : > { %1449 = vst.msk [vmem:[#allocation2 + $0x90] sm:$0xff] %vm294_vm0, %v1380_v54  ;;  %v1350_v59 = vadd.f32 %v3934_v48, %v1224_v57  ;;  %3318 = vmatprep.mubr.msk.f32.mxu1 %vm294_vm0, %v4029_v58 }
 0x18d   : > { %v1383_v61 = vmax.f32 %v1351_v56, 0.0  ;;  %3319 = vmatmul.mubr.msk.f32.gmra.mrb[12].mxu1 %vm294_vm0, %v4035_v60 }
 0x18e   : > { %v1382_v62 = vmax.f32 %v1350_v59, 0.0  ;;  %v3280_v63 = vpop.f32.mrb[20].mxu0  ;;  %v4047_v4 = vld [vmem:[#allocation2 + $0x88] sm:$0xff] }
 0x18f   : > { %1452 = vst.msk [vmem:[#allocation2 + $0xa8] sm:$0xff] %vm294_vm0, %v1383_v61  ;;  %v1353_v0 = vadd.f32 %v3280_v63, %v3934_v48  ;;  %v1234_v1 = vpop.f32.mrb[21].mxu0  ;;  %v4041_v2 = vld [vmem:[#allocation2 + $0x80] sm:$0xff] }
 0x190   : > { %1451 = vst.msk [vmem:[#allocation2 + $0xa0] sm:$0xff] %vm294_vm0, %v1382_v62  ;;  %v1352_v3 = vadd.f32 %v3934_v48, %v1234_v1  ;;  %3321 = vmatprep.mubr.msk.f32.mxu1 %vm294_vm0, %v4041_v2 }
 0x191   : > { %v1385_v5 = vmax.f32 %v1353_v0, 0.0  ;;  %3322 = vmatmul.mubr.msk.f32.gmra.mrb[14].mxu1 %vm294_vm0, %v4047_v4 }
 0x192   : > { %v1384_v6 = vmax.f32 %v1352_v3, 0.0  ;;  %v3283_v7 = vpop.f32.mrb[22].mxu0  ;;  %v4059_v15 = vld [vmem:[#allocation2 + $0x98] sm:$0xff] }
 0x193   : > { %1454 = vst.msk [vmem:[#allocation2 + $0xb8] sm:$0xff] %vm294_vm0, %v1385_v5  ;;  %v1355_v10 = vadd.f32 %v3283_v7, %v3934_v48  ;;  %v1244_v12 = vpop.f32.mrb[23].mxu0  ;;  %v4053_v13 = vld [vmem:[#allocation2 + $0x90] sm:$0xff]  ;;  %v1465_v5 = vld [vmem:[#allocation2] sm:$0xff]  ;;  %v1466_v7 = vld [vmem:[#allocation2 + $0x8] sm:$0xff] }
 0x194   : > { %1453 = vst.msk [vmem:[#allocation2 + $0xb0] sm:$0xff] %vm294_vm0, %v1384_v6  ;;  %v1354_v14 = vadd.f32 %v3934_v48, %v1244_v12  ;;  %3324 = vmatprep.mubr.msk.f32.mxu1 %vm294_vm0, %v4053_v13 }
 0x195   : > { %v1387_v16 = vmax.f32 %v1355_v10, 0.0  ;;  %3325 = vmatmul.mubr.msk.f32.gmra.mrb[16].mxu1 %vm294_vm0, %v4059_v15 }
 0x196   : > { %v1386_v18 = vmax.f32 %v1354_v14, 0.0  ;;  %v3286_v20 = vpop.f32.mrb[24].mxu0  ;;  %v4071_v26 = vld [vmem:[#allocation2 + $0xa8] sm:$0xff] }
 0x197   : > { %1456 = vst.msk [vmem:[#allocation2 + $0xc8] sm:$0xff] %vm294_vm0, %v1387_v16  ;;  %v1357_v21 = vadd.f32 %v3286_v20, %v3934_v48  ;;  %v1254_v22 = vpop.f32.mrb[25].mxu0  ;;  %v4065_v23 = vld [vmem:[#allocation2 + $0xa0] sm:$0xff] }
 0x198   : > { %1455 = vst.msk [vmem:[#allocation2 + $0xc0] sm:$0xff] %vm294_vm0, %v1386_v18  ;;  %v1356_v24 = vadd.f32 %v3934_v48, %v1254_v22  ;;  %3327 = vmatprep.mubr.msk.f32.mxu1 %vm294_vm0, %v4065_v23 }
 0x199   : > { %v1389_v28 = vmax.f32 %v1357_v21, 0.0  ;;  %3328 = vmatmul.mubr.msk.f32.gmra.mrb[18].mxu1 %vm294_vm0, %v4071_v26 }
 0x19a   : > { %v1388_v29 = vmax.f32 %v1356_v24, 0.0  ;;  %v3289_v30 = vpop.f32.mrb[26].mxu0  ;;  %v4083_v37 = vld [vmem:[#allocation2 + $0xb8] sm:$0xff] }
 0x19b   : > { %1458 = vst.msk [vmem:[#allocation2 + $0xd8] sm:$0xff] %vm294_vm0, %v1389_v28  ;;  %v1359_v31 = vadd.f32 %v3289_v30, %v3934_v48  ;;  %v1264_v32 = vpop.f32.mrb[27].mxu0  ;;  %v4077_v34 = vld [vmem:[#allocation2 + $0xb0] sm:$0xff] }
 0x19c   : > { %1457 = vst.msk [vmem:[#allocation2 + $0xd0] sm:$0xff] %vm294_vm0, %v1388_v29  ;;  %v1358_v36 = vadd.f32 %v3934_v48, %v1264_v32  ;;  %3330 = vmatprep.mubr.msk.f32.mxu1 %vm294_vm0, %v4077_v34 }
 0x19d   : > { %v1391_v38 = vmax.f32 %v1359_v31, 0.0  ;;  %3331 = vmatmul.mubr.msk.f32.gmra.mrb[20].mxu1 %vm294_vm0, %v4083_v37 }
 0x19e   : > { %v1390_v39 = vmax.f32 %v1358_v36, 0.0  ;;  %v3292_v40 = vpop.f32.mrb[28].mxu0  ;;  %v4095_v47 = vld [vmem:[#allocation2 + $0xc8] sm:$0xff] }
 0x19f   : > { %1460 = vst.msk [vmem:[#allocation2 + $0xe8] sm:$0xff] %vm294_vm0, %v1391_v38  ;;  %v1361_v42 = vadd.f32 %v3292_v40, %v3934_v48  ;;  %v1274_v44 = vpop.f32.mrb[29].mxu0  ;;  %v4089_v45 = vld [vmem:[#allocation2 + $0xc0] sm:$0xff] }
 0x1a0   : > { %1459 = vst.msk [vmem:[#allocation2 + $0xe0] sm:$0xff] %vm294_vm0, %v1390_v39  ;;  %v1360_v46 = vadd.f32 %v3934_v48, %v1274_v44  ;;  %3333 = vmatprep.mubr.msk.f32.mxu1 %vm294_vm0, %v4089_v45 }
 0x1a1   : > { %v1393_v49 = vmax.f32 %v1361_v42, 0.0  ;;  %3334 = vmatmul.mubr.msk.f32.gmra.mrb[22].mxu1 %vm294_vm0, %v4095_v47 }
 0x1a2   : > { %v1392_v51 = vmax.f32 %v1360_v46, 0.0  ;;  %v3295_v53 = vpop.f32.mrb[30].mxu0  ;;  %v4107_v59 = vld [vmem:[#allocation2 + $0xd8] sm:$0xff] }
 0x1a3   : > { %1462 = vst.msk [vmem:[#allocation2 + $0xf8] sm:$0xff] %vm294_vm0, %v1393_v49  ;;  %v1363_v54 = vadd.f32 %v3295_v53, %v3934_v48  ;;  %v1284_v55 = vpop.f32.mrb[31].mxu0  ;;  %v4101_v56 = vld [vmem:[#allocation2 + $0xd0] sm:$0xff] }
 0x1a4   : > { %1461 = vst.msk [vmem:[#allocation2 + $0xf0] sm:$0xff] %vm294_vm0, %v1392_v51  ;;  %v1362_v57 = vadd.f32 %v3934_v48, %v1284_v55  ;;  %3336 = vmatprep.mubr.msk.f32.mxu1 %vm294_vm0, %v4101_v56 }
 0x1a5   : > { %v1395_v61 = vmax.f32 %v1363_v54, 0.0  ;;  %3337 = vmatmul.mubr.msk.f32.gmra.mrb[24].mxu1 %vm294_vm0, %v4107_v59 }
 0x1a6   : > { %v1394_v62 = vmax.f32 %v1362_v57, 0.0  ;;  %v4117_v48 = vld [vmem:[#allocation2 + $0xe8] sm:$0xff] }
 0x1a7   : > { %1464 = vst.msk [vmem:[#allocation2 + $0x108] sm:$0xff] %vm294_vm0, %v1395_v61  ;;  %v4112_v63 = vld [vmem:[#allocation2 + $0xe0] sm:$0xff] }
 0x1a8   : > { %1463 = vst.msk [vmem:[#allocation2 + $0x100] sm:$0xff] %vm294_vm0, %v1394_v62  ;;  %3339 = vmatprep.mubr.msk.f32.mxu1 %vm294_vm0, %v4112_v63 }
 0x1a9   : > { %3340 = vmatmul.mubr.msk.f32.gmra.mrb[26].mxu1 %vm294_vm0, %v4117_v48 }
 0x1aa   : > { %v4125_v1 = vld [vmem:[#allocation2 + $0xf8] sm:$0xff] }
 0x1ab   : > { %v4121_v0 = vld [vmem:[#allocation2 + $0xf0] sm:$0xff] }
 0x1ac   : > { %3342 = vmatprep.mubr.msk.f32.mxu1 %vm294_vm0, %v4121_v0 }
 0x1ad   : > { %3343 = vmatmul.mubr.msk.f32.gmra.mrb[28].mxu1 %vm294_vm0, %v4125_v1 }
 0x1ae   : > { %v4133_v6 = vld [vmem:[#allocation2 + $0x108] sm:$0xff] }
 0x1af   : > { %v4129_v3 = vld [vmem:[#allocation2 + $0x100] sm:$0xff] }
 0x1b0   : > { %3345 = vmatprep.mubr.msk.f32.mxu1 %vm294_vm0, %v4129_v3 }
 0x1b1   : > { %3346 = vmatmul.mubr.msk.f32.gmra.mrb[30].mxu1 %vm294_vm0, %v4133_v6 }
 0x1b2   : > { %3352 = vmatprep.mubr.msk.f32.mxu1 %vm294_vm0, %v1465_v5 }
 0x1b5   : > { %3353 = vmatmul.mubr.msk.f32.vlgmr.msra.gmra.mrb[0].mxu1 %vm294_vm0, %v1466_v7 }
 0x1b6   : > { %3475 = vmatpush3.bf16.msra.mxu1 %v3956_v9  ;;  %3355 = vmatprep.mubr.msk.f32.mxu1 %vm294_vm0, %v3954_v8  ;;  %v2207_v8 = vld [vmem:[#allocation2 + $0x110] sm:$0xff]  ;;  %v2208_v9 = vld [vmem:[#allocation2 + $0x118] sm:$0xff] }
 0x1b9   : > { %3356 = vmatmul.mubr.msk.f32.gmra.mrb[2].mxu1 %vm294_vm0, %v3962_v11  ;;  %v4265_v11 = vld [vmem:[%s4376_s4] ss:$0 sm:$0xff] }
 0x1ba   : > { %3358 = vmatprep.mubr.msk.f32.mxu1 %vm294_vm0, %v3968_v17 }
 0x1bd   : > { %3359 = vmatmul.mubr.msk.f32.gmra.mrb[4].mxu1 %vm294_vm0, %v3975_v19 }
 0x1be   : > { %3361 = vmatprep.mubr.msk.f32.mxu1 %vm294_vm0, %v3981_v25 }
 0x1c1   : > { %3362 = vmatmul.mubr.msk.f32.gmra.mrb[6].mxu1 %vm294_vm0, %v3987_v27 }
 0x1c2   : > { %3364 = vmatprep.mubr.msk.f32.mxu1 %vm294_vm0, %v3993_v33 }
 0x1c5   : > { %3365 = vmatmul.mubr.msk.f32.gmra.mrb[8].mxu1 %vm294_vm0, %v3999_v35 }
 0x1c6   : > { %3367 = vmatprep.mubr.msk.f32.mxu1 %vm294_vm0, %v4005_v41 }
 0x1c9   : > { %3368 = vmatmul.mubr.msk.f32.gmra.mrb[10].mxu1 %vm294_vm0, %v4011_v43 }
 0x1ca   : > { %3370 = vmatprep.mubr.msk.f32.mxu1 %vm294_vm0, %v4017_v50 }
 0x1cd   : > { %3371 = vmatmul.mubr.msk.f32.gmra.mrb[12].mxu1 %vm294_vm0, %v4023_v52 }
 0x1ce   : > { %3373 = vmatprep.mubr.msk.f32.mxu1 %vm294_vm0, %v4029_v58 }
 0x1d1   : > { %3374 = vmatmul.mubr.msk.f32.gmra.mrb[14].mxu1 %vm294_vm0, %v4035_v60 }
 0x1d2   : > { %3376 = vmatprep.mubr.msk.f32.mxu1 %vm294_vm0, %v4041_v2 }
 0x1d5   : > { %3377 = vmatmul.mubr.msk.f32.gmra.mrb[16].mxu1 %vm294_vm0, %v4047_v4 }
 0x1d6   : > { %3379 = vmatprep.mubr.msk.f32.mxu1 %vm294_vm0, %v4053_v13 }
 0x1d9   : > { %3380 = vmatmul.mubr.msk.f32.gmra.mrb[18].mxu1 %vm294_vm0, %v4059_v15 }
 0x1da   : > { %3382 = vmatprep.mubr.msk.f32.mxu1 %vm294_vm0, %v4065_v23 }
 0x1dd   : > { %3383 = vmatmul.mubr.msk.f32.gmra.mrb[20].mxu1 %vm294_vm0, %v4071_v26 }
 0x1de   : > { %3385 = vmatprep.mubr.msk.f32.mxu1 %vm294_vm0, %v4077_v34 }
 0x1e1   : > { %3386 = vmatmul.mubr.msk.f32.gmra.mrb[22].mxu1 %vm294_vm0, %v4083_v37 }
 0x1e2   : > { %3388 = vmatprep.mubr.msk.f32.mxu1 %vm294_vm0, %v4089_v45 }
 0x1e5   : > { %3389 = vmatmul.mubr.msk.f32.gmra.mrb[24].mxu1 %vm294_vm0, %v4095_v47 }
 0x1e6   : > { %3391 = vmatprep.mubr.msk.f32.mxu1 %vm294_vm0, %v4101_v56 }
 0x1e9   : > { %3392 = vmatmul.mubr.msk.f32.gmra.mrb[26].mxu1 %vm294_vm0, %v4107_v59 }
 0x1ea   : > { %3394 = vmatprep.mubr.msk.f32.mxu1 %vm294_vm0, %v4112_v63 }
 0x1ed   : > { %3395 = vmatmul.mubr.msk.f32.gmra.mrb[28].mxu1 %vm294_vm0, %v4117_v48 }
 0x1ee   : > { %3397 = vmatprep.mubr.msk.f32.mxu1 %vm294_vm0, %v4121_v0 }
 0x1f1   : > { %3398 = vmatmul.mubr.msk.f32.gmra.mrb[30].mxu1 %vm294_vm0, %v4125_v1 }
 0x1f2   : > { %3404 = vmatprep.mubr.msk.f32.mxu1 %vm294_vm0, %v3968_v17 }
 0x1f5   : > { %3405 = vmatmul.mubr.msk.f32.vlgmr.msra.gmra.mrb[0].mxu1 %vm294_vm0, %v3975_v19 }
 0x1f6   : > { %3407 = vmatprep.mubr.msk.f32.mxu1 %vm294_vm0, %v3981_v25 }
 0x1f9   : > { %3408 = vmatmul.mubr.msk.f32.gmra.mrb[2].mxu1 %vm294_vm0, %v3987_v27 }
 0x1fa   : > { %3410 = vmatprep.mubr.msk.f32.mxu1 %vm294_vm0, %v3993_v33 }
 0x1fd   : > { %3411 = vmatmul.mubr.msk.f32.gmra.mrb[4].mxu1 %vm294_vm0, %v3999_v35 }
 0x1fe   : > { %3413 = vmatprep.mubr.msk.f32.mxu1 %vm294_vm0, %v4005_v41 }
 0x201   : > { %3414 = vmatmul.mubr.msk.f32.gmra.mrb[6].mxu1 %vm294_vm0, %v4011_v43 }
 0x202   : > { %3416 = vmatprep.mubr.msk.f32.mxu1 %vm294_vm0, %v4017_v50 }
 0x205   : > { %3417 = vmatmul.mubr.msk.f32.gmra.mrb[8].mxu1 %vm294_vm0, %v4023_v52 }
 0x206   : > { %3419 = vmatprep.mubr.msk.f32.mxu1 %vm294_vm0, %v4029_v58 }
 0x209   : > { %3420 = vmatmul.mubr.msk.f32.gmra.mrb[10].mxu1 %vm294_vm0, %v4035_v60 }
 0x20a   : > { %3422 = vmatprep.mubr.msk.f32.mxu1 %vm294_vm0, %v4041_v2 }
 0x20d   : > { %3423 = vmatmul.mubr.msk.f32.gmra.mrb[12].mxu1 %vm294_vm0, %v4047_v4 }
 0x20e   : > { %3425 = vmatprep.mubr.msk.f32.mxu1 %vm294_vm0, %v4053_v13 }
 0x211   : > { %3426 = vmatmul.mubr.msk.f32.gmra.mrb[14].mxu1 %vm294_vm0, %v4059_v15 }
 0x212   : > { %3428 = vmatprep.mubr.msk.f32.mxu1 %vm294_vm0, %v4065_v23 }
 0x215   : > { %3429 = vmatmul.mubr.msk.f32.gmra.mrb[16].mxu1 %vm294_vm0, %v4071_v26 }
 0x216   : > { %3431 = vmatprep.mubr.msk.f32.mxu1 %vm294_vm0, %v4077_v34 }
 0x219   : > { %3432 = vmatmul.mubr.msk.f32.gmra.mrb[18].mxu1 %vm294_vm0, %v4083_v37 }
 0x21a   : > { %3434 = vmatprep.mubr.msk.f32.mxu1 %vm294_vm0, %v4089_v45 }
 0x21d   : > { %3435 = vmatmul.mubr.msk.f32.gmra.mrb[20].mxu1 %vm294_vm0, %v4095_v47 }
 0x21e   : > { %3437 = vmatprep.mubr.msk.f32.mxu1 %vm294_vm0, %v4101_v56 }
 0x221   : > { %3438 = vmatmul.mubr.msk.f32.gmra.mrb[22].mxu1 %vm294_vm0, %v4107_v59 }
 0x222   : > { %3440 = vmatprep.mubr.msk.f32.mxu1 %vm294_vm0, %v4112_v63 }
 0x225   : > { %3441 = vmatmul.mubr.msk.f32.gmra.mrb[24].mxu1 %vm294_vm0, %v4117_v48 }
 0x226   : > { %3443 = vmatprep.mubr.msk.f32.mxu1 %vm294_vm0, %v4121_v0 }
 0x229   : > { %3444 = vmatmul.mubr.msk.f32.gmra.mrb[26].mxu1 %vm294_vm0, %v4125_v1 }
 0x22a   : > { %3446 = vmatprep.mubr.msk.f32.mxu1 %vm294_vm0, %v4129_v3 }
 0x22d   : > { %3447 = vmatmul.mubr.msk.f32.gmra.mrb[28].mxu1 %vm294_vm0, %v4133_v6 }
 0x22e   : > { %3449 = vmatprep.mubr.msk.f32.mxu1 %vm294_vm0, %v2207_v8 }
 0x231   : > { %3450 = vmatmul.mubr.msk.f32.gmra.mrb[30].mxu1 %vm294_vm0, %v2208_v9 }
 0x2c8   : > { %v3406_v17 = vpop.f32.mrb[0].mxu1 }
 0x2c9   : > { %v2573_v19 = vadd.f32 %v3406_v17, %v4265_v11  ;;  %v2374_v25 = vpop.f32.mrb[1].mxu1 }
 0x2ca   : > { %v2572_v27 = vadd.f32 %v4265_v11, %v2374_v25 }
 0x2cb   : > { %v2605_v33 = vmax.f32 %v2573_v19, 0.0 }
 0x2cc   : > { %v2604_v35 = vmax.f32 %v2572_v27, 0.0  ;;  %v3409_v41 = vpop.f32.mrb[2].mxu1 }
 0x2cd   : > { %2637 = vst.msk [vmem:[%s4272_s7 + $0x8] sm:$0xff] %vm294_vm0, %v2605_v33  ;;  %v2575_v43 = vadd.f32 %v3409_v41, %v4265_v11  ;;  %v2384_v50 = vpop.f32.mrb[3].mxu1 }
 0x2ce   : > { %2636 = vst.msk [vmem:[%s4272_s7] sm:$0xff] %vm294_vm0, %v2604_v35  ;;  %v2574_v52 = vadd.f32 %v4265_v11, %v2384_v50 }
 0x2cf   : > { %v2607_v58 = vmax.f32 %v2575_v43, 0.0 }
 0x2d0   : > { %v2606_v60 = vmax.f32 %v2574_v52, 0.0  ;;  %v3412_v2 = vpop.f32.mrb[4].mxu1 }
 0x2d1   : > { %2639 = vst.msk [vmem:[%s4272_s7 + $0x18] sm:$0xff] %vm294_vm0, %v2607_v58  ;;  %v2577_v4 = vadd.f32 %v3412_v2, %v4265_v11  ;;  %v2394_v10 = vpop.f32.mrb[5].mxu1 }
 0x2d2   : > { %2638 = vst.msk [vmem:[%s4272_s7 + $0x10] sm:$0xff] %vm294_vm0, %v2606_v60  ;;  %v2576_v12 = vadd.f32 %v4265_v11, %v2394_v10 }
 0x2d3   : > { %v2609_v13 = vmax.f32 %v2577_v4, 0.0 }
 0x2d4   : > { %v2608_v14 = vmax.f32 %v2576_v12, 0.0  ;;  %v3415_v15 = vpop.f32.mrb[6].mxu1 }
 0x2d5   : > { %2641 = vst.msk [vmem:[%s4272_s7 + $0x28] sm:$0xff] %vm294_vm0, %v2609_v13  ;;  %v2579_v16 = vadd.f32 %v3415_v15, %v4265_v11  ;;  %v2404_v18 = vpop.f32.mrb[7].mxu1 }
 0x2d6   : > { %2640 = vst.msk [vmem:[%s4272_s7 + $0x20] sm:$0xff] %vm294_vm0, %v2608_v14  ;;  %v2578_v20 = vadd.f32 %v4265_v11, %v2404_v18 }
 0x2d7   : > { %v2611_v21 = vmax.f32 %v2579_v16, 0.0 }
 0x2d8   : > { %v2610_v22 = vmax.f32 %v2578_v20, 0.0  ;;  %v3418_v23 = vpop.f32.mrb[8].mxu1 }
 0x2d9   : > { %2643 = vst.msk [vmem:[%s4272_s7 + $0x38] sm:$0xff] %vm294_vm0, %v2611_v21  ;;  %v2581_v24 = vadd.f32 %v3418_v23, %v4265_v11  ;;  %v2414_v26 = vpop.f32.mrb[9].mxu1 }
 0x2da   : > { %2642 = vst.msk [vmem:[%s4272_s7 + $0x30] sm:$0xff] %vm294_vm0, %v2610_v22  ;;  %v2580_v28 = vadd.f32 %v4265_v11, %v2414_v26 }
 0x2db   : > { %v2613_v29 = vmax.f32 %v2581_v24, 0.0 }
 0x2dc   : > { %v2612_v30 = vmax.f32 %v2580_v28, 0.0  ;;  %v3421_v31 = vpop.f32.mrb[10].mxu1 }
 0x2dd   : > { %2645 = vst.msk [vmem:[%s4272_s7 + $0x48] sm:$0xff] %vm294_vm0, %v2613_v29  ;;  %v2583_v32 = vadd.f32 %v3421_v31, %v4265_v11  ;;  %v2424_v34 = vpop.f32.mrb[11].mxu1 }
 0x2de   : > { %2644 = vst.msk [vmem:[%s4272_s7 + $0x40] sm:$0xff] %vm294_vm0, %v2612_v30  ;;  %v2582_v36 = vadd.f32 %v4265_v11, %v2424_v34 }
 0x2df   : > { %v2615_v37 = vmax.f32 %v2583_v32, 0.0 }
 0x2e0   : > { %v2614_v38 = vmax.f32 %v2582_v36, 0.0  ;;  %v3424_v39 = vpop.f32.mrb[12].mxu1 }
 0x2e1   : > { %2647 = vst.msk [vmem:[%s4272_s7 + $0x58] sm:$0xff] %vm294_vm0, %v2615_v37  ;;  %v2585_v40 = vadd.f32 %v3424_v39, %v4265_v11  ;;  %v2434_v42 = vpop.f32.mrb[13].mxu1 }
 0x2e2   : > { %2646 = vst.msk [vmem:[%s4272_s7 + $0x50] sm:$0xff] %vm294_vm0, %v2614_v38  ;;  %v2584_v44 = vadd.f32 %v4265_v11, %v2434_v42 }
 0x2e3   : > { %v2617_v45 = vmax.f32 %v2585_v40, 0.0 }
 0x2e4   : > { %v2616_v46 = vmax.f32 %v2584_v44, 0.0  ;;  %v3427_v47 = vpop.f32.mrb[14].mxu1 }
 0x2e5   : > { %2649 = vst.msk [vmem:[%s4272_s7 + $0x68] sm:$0xff] %vm294_vm0, %v2617_v45  ;;  %v2587_v49 = vadd.f32 %v3427_v47, %v4265_v11  ;;  %v2444_v51 = vpop.f32.mrb[15].mxu1 }
 0x2e6   : > { %2648 = vst.msk [vmem:[%s4272_s7 + $0x60] sm:$0xff] %vm294_vm0, %v2616_v46  ;;  %v2586_v53 = vadd.f32 %v4265_v11, %v2444_v51 }
 0x2e7   : > { %v2619_v54 = vmax.f32 %v2587_v49, 0.0 }
 0x2e8   : > { %v2618_v55 = vmax.f32 %v2586_v53, 0.0  ;;  %v3430_v56 = vpop.f32.mrb[16].mxu1 }
 0x2e9   : > { %2651 = vst.msk [vmem:[%s4272_s7 + $0x78] sm:$0xff] %vm294_vm0, %v2619_v54  ;;  %v2589_v57 = vadd.f32 %v3430_v56, %v4265_v11  ;;  %v2454_v59 = vpop.f32.mrb[17].mxu1 }
 0x2ea   : > { %2650 = vst.msk [vmem:[%s4272_s7 + $0x70] sm:$0xff] %vm294_vm0, %v2618_v55  ;;  %v2588_v61 = vadd.f32 %v4265_v11, %v2454_v59 }
 0x2eb   : > { %v2621_v62 = vmax.f32 %v2589_v57, 0.0 }
 0x2ec   : > { %v2620_v63 = vmax.f32 %v2588_v61, 0.0  ;;  %v3433_v48 = vpop.f32.mrb[18].mxu1 }
 0x2ed   : > { %2653 = vst.msk [vmem:[%s4272_s7 + $0x88] sm:$0xff] %vm294_vm0, %v2621_v62  ;;  %v2591_v0 = vadd.f32 %v3433_v48, %v4265_v11  ;;  %v2464_v1 = vpop.f32.mrb[19].mxu1 }
 0x2ee   : > { %2652 = vst.msk [vmem:[%s4272_s7 + $0x80] sm:$0xff] %vm294_vm0, %v2620_v63  ;;  %v2590_v3 = vadd.f32 %v4265_v11, %v2464_v1 }
 0x2ef   : > { %v2623_v5 = vmax.f32 %v2591_v0, 0.0 }
 0x2f0   : > { %v2622_v6 = vmax.f32 %v2590_v3, 0.0  ;;  %v3436_v7 = vpop.f32.mrb[20].mxu1 }
 0x2f1   : > { %2655 = vst.msk [vmem:[%s4272_s7 + $0x98] sm:$0xff] %vm294_vm0, %v2623_v5  ;;  %v2593_v8 = vadd.f32 %v3436_v7, %v4265_v11  ;;  %v2474_v9 = vpop.f32.mrb[21].mxu1 }
 0x2f2   : > { %2654 = vst.msk [vmem:[%s4272_s7 + $0x90] sm:$0xff] %vm294_vm0, %v2622_v6  ;;  %v2592_v17 = vadd.f32 %v4265_v11, %v2474_v9 }
 0x2f3   : > { %v2625_v19 = vmax.f32 %v2593_v8, 0.0 }
 0x2f4   : > { %v2624_v25 = vmax.f32 %v2592_v17, 0.0  ;;  %v3439_v27 = vpop.f32.mrb[22].mxu1 }
 0x2f5   : > { %2657 = vst.msk [vmem:[%s4272_s7 + $0xa8] sm:$0xff] %vm294_vm0, %v2625_v19  ;;  %v2595_v33 = vadd.f32 %v3439_v27, %v4265_v11  ;;  %v2484_v35 = vpop.f32.mrb[23].mxu1 }
 0x2f6   : > { %2656 = vst.msk [vmem:[%s4272_s7 + $0xa0] sm:$0xff] %vm294_vm0, %v2624_v25  ;;  %v2594_v41 = vadd.f32 %v4265_v11, %v2484_v35 }
 0x2f7   : > { %v2627_v43 = vmax.f32 %v2595_v33, 0.0 }
 0x2f8   : > { %v2626_v50 = vmax.f32 %v2594_v41, 0.0  ;;  %v3442_v52 = vpop.f32.mrb[24].mxu1 }
 0x2f9   : > { %2659 = vst.msk [vmem:[%s4272_s7 + $0xb8] sm:$0xff] %vm294_vm0, %v2627_v43  ;;  %v2597_v58 = vadd.f32 %v3442_v52, %v4265_v11  ;;  %v2494_v60 = vpop.f32.mrb[25].mxu1 }
 0x2fa   : > { %2658 = vst.msk [vmem:[%s4272_s7 + $0xb0] sm:$0xff] %vm294_vm0, %v2626_v50  ;;  %v2596_v2 = vadd.f32 %v4265_v11, %v2494_v60 }
 0x2fb   : > { %v2629_v4 = vmax.f32 %v2597_v58, 0.0 }
 0x2fc   : > { %v2628_v10 = vmax.f32 %v2596_v2, 0.0  ;;  %v3445_v12 = vpop.f32.mrb[26].mxu1 }
 0x2fd   : > { %2661 = vst.msk [vmem:[%s4272_s7 + $0xc8] sm:$0xff] %vm294_vm0, %v2629_v4  ;;  %v2599_v13 = vadd.f32 %v3445_v12, %v4265_v11  ;;  %v2504_v14 = vpop.f32.mrb[27].mxu1 }
 0x2fe   : > { %2660 = vst.msk [vmem:[%s4272_s7 + $0xc0] sm:$0xff] %vm294_vm0, %v2628_v10  ;;  %v2598_v15 = vadd.f32 %v4265_v11, %v2504_v14 }
 0x2ff   : > { %v2631_v16 = vmax.f32 %v2599_v13, 0.0 }
 0x300   : > { %v2630_v18 = vmax.f32 %v2598_v15, 0.0  ;;  %v3448_v20 = vpop.f32.mrb[28].mxu1 }
 0x301   : > { %2663 = vst.msk [vmem:[%s4272_s7 + $0xd8] sm:$0xff] %vm294_vm0, %v2631_v16  ;;  %v2601_v21 = vadd.f32 %v3448_v20, %v4265_v11  ;;  %v2514_v22 = vpop.f32.mrb[29].mxu1 }
 0x302   : > { %2662 = vst.msk [vmem:[%s4272_s7 + $0xd0] sm:$0xff] %vm294_vm0, %v2630_v18  ;;  %v2600_v23 = vadd.f32 %v4265_v11, %v2514_v22 }
 0x303   : > { %v2633_v24 = vmax.f32 %v2601_v21, 0.0 }
 0x304   : > { %v2632_v26 = vmax.f32 %v2600_v23, 0.0  ;;  %v3451_v28 = vpop.f32.mrb[30].mxu1 }
 0x305   : > { %2665 = vst.msk [vmem:[%s4272_s7 + $0xe8] sm:$0xff] %vm294_vm0, %v2633_v24  ;;  %v2603_v29 = vadd.f32 %v3451_v28, %v4265_v11  ;;  %v2524_v30 = vpop.f32.mrb[31].mxu1 }
 0x306   : > { %2664 = vst.msk [vmem:[%s4272_s7 + $0xe0] sm:$0xff] %vm294_vm0, %v2632_v26  ;;  %v2602_v31 = vadd.f32 %v4265_v11, %v2524_v30 }
 0x307   : > { %v2635_v32 = vmax.f32 %v2603_v29, 0.0 }
 0x308   : > { %v2634_v34 = vmax.f32 %v2602_v31, 0.0 }
 0x309   : > { %2667 = vst.msk [vmem:[%s4272_s7 + $0xf8] sm:$0xff] %vm294_vm0, %v2635_v32 }
 0x30a   : > { %2666 = vst.msk [vmem:[%s4272_s7 + $0xf0] sm:$0xff] %vm294_vm0, %v2634_v34 }
 0x30b PF: > { %s15_s18 = sadd.s32 1, %s3620_s18  }
 0x30c   : > { %p12_p4 = scmp.ge.s32.totalorder %s15_s18, 4  }
 0x30e   :  { %14 = sbr.rel (!%p12_p4) target bundleno = 1 (0x1), region = 76 }

</bundles_post_ra>
